<compile_context>
chip_gen: v5e
topology: v5e:2x2
jax: 0.10.0
libtpu: 0.0.40
codegen_flags: <defaults>
</compile_context>

<pallas_src>
import functools

import numpy as np
import jax
import jax.numpy as jnp
from jax.experimental import pallas as pl
from jax.experimental.pallas import tpu as pltpu


# Set to jnp.bfloat16 on v6e/v7x when batch/spatial sizes are scaled up.
COMPUTE_DTYPE = jnp.float32


CONFIG = {
    "inputLayer": {"channels": 4, "height": 16, "width": 16},
    "convLayers": [
        {"filters": 8, "kernelSize": 3, "stride": 1, "padding": 1},
        {"filters": 16, "kernelSize": 3, "stride": 1, "padding": 1},
    ],
    "activationLayers": ["relu", "relu"],
    "poolingLayers": [
        {"kernelSize": 2, "stride": 2},
        {"kernelSize": 2, "stride": 2},
    ],
    "FullyConnectedLayer": [{"units": 32, "activation": "relu"}],
    "outputLayer": {"units": 10, "activation": "softmax"},
}


# ---------------------------------------------------------------------------
# Static geometry for the flat-row conv/pool pipeline
# ---------------------------------------------------------------------------
def _conv_stage_geometry(config):
    """Per-stage static geometry.

    Activations are kept per sample as a flat (rows, channels) VMEM tile with
    row index = h * W_pad + w.  With stride-1 convs, every (kh, kw) tap of the
    conv reads a *contiguous* row-slice at offset kh*W_pad + kw, so the conv is
    a sum of k*k shifted sub-matmuls.  The conv output keeps the padded width
    (garbage columns at w >= W_valid are computed but never selected).
    """
    stages = []
    H = config["inputLayer"]["height"]
    W = config["inputLayer"]["width"]
    C = config["inputLayer"]["channels"]
    for conv, pool, act in zip(config["convLayers"], config["poolingLayers"],
                               config["activationLayers"]):
        k, s, p = conv["kernelSize"], conv["stride"], conv["padding"]
        assert s == 1, "fused kernel supports stride-1 convolutions"
        O = conv["filters"]
        Hp, Wp = H + 2 * p, W + 2 * p
        in_rows = Hp * Wp + (k - 1)            # flat padded rows (+k-1 zero rows)
        Ho, Wo = Hp - k + 1, Wp - k + 1        # valid conv output spatial size
        R = Ho * Wp                            # conv output rows (padded width)
        conv_offsets = [kh * Wp + kw for kh in range(k) for kw in range(k)]
        kp, sp = pool["kernelSize"], pool["stride"]
        Hq = (Ho - kp) // sp + 1
        Wq = (Wo - kp) // sp + 1
        pool_offsets = [dh * Wp + dw for dh in range(kp) for dw in range(kp)]
        L = R - max(pool_offsets)              # common length for window-max slices
        anchors = [(sp * hq) * Wp + (sp * wq) for hq in range(Hq) for wq in range(Wq)]
        stages.append(dict(k=k, p=p, C=C, O=O, Hp=Hp, Wp=Wp, in_rows=in_rows,
                           Ho=Ho, Wo=Wo, R=R, conv_offsets=conv_offsets,
                           kp=kp, sp=sp, Hq=Hq, Wq=Wq,
                           pool_offsets=pool_offsets, L=L, anchors=anchors,
                           act=act))
        H, W, C = Hq, Wq, O
    return stages, (H, W, C)


def _selection_matrices(stages):
    """0/1 matrices that compact pool anchors and zero-pad for the next conv."""
    sels = []
    for i, st in enumerate(stages):
        if i + 1 < len(stages):
            nxt = stages[i + 1]
            sel = np.zeros((nxt["in_rows"], st["L"]), np.float32)
            p2, Wp2 = nxt["p"], nxt["Wp"]
            for hq in range(st["Hq"]):
                for wq in range(st["Wq"]):
                    dst = (hq + p2) * Wp2 + (wq + p2)
                    src = st["anchors"][hq * st["Wq"] + wq]
                    sel[dst, src] = 1.0
        else:
            sel = np.zeros((st["Hq"] * st["Wq"], st["L"]), np.float32)
            for idx, src in enumerate(st["anchors"]):
                sel[idx, src] = 1.0
        sels.append(jnp.asarray(sel))
    return sels


# ---------------------------------------------------------------------------
# Parameters (PyTorch layout) + one-time packing for the fused kernel
# ---------------------------------------------------------------------------
def init_params(config, key):
    params = {"conv": [], "fc": []}
    in_c = config["inputLayer"]["channels"]
    h = config["inputLayer"]["height"]
    w = config["inputLayer"]["width"]
    for conv, pool in zip(config["convLayers"], config["poolingLayers"]):
        k = conv["kernelSize"]
        out_c = conv["filters"]
        key, kw_, kb_ = jax.random.split(key, 3)
        fan_in = in_c * k * k
        W = jax.random.normal(kw_, (out_c, in_c, k, k), jnp.float32) / jnp.sqrt(fan_in)
        b = jax.random.normal(kb_, (out_c,), jnp.float32) * 0.01
        params["conv"].append((W, b))
        h = (h + 2 * conv["padding"] - k) // conv["stride"] + 1
        w = (w + 2 * conv["padding"] - k) // conv["stride"] + 1
        h = (h - pool["kernelSize"]) // pool["stride"] + 1
        w = (w - pool["kernelSize"]) // pool["stride"] + 1
        in_c = out_c

    prev = in_c * h * w
    fc_sizes = [fc["units"] for fc in config["FullyConnectedLayer"]]
    fc_sizes.append(config["outputLayer"]["units"])
    for units in fc_sizes:
        key, kw_, kb_ = jax.random.split(key, 3)
        W = jax.random.normal(kw_, (units, prev), jnp.float32) / jnp.sqrt(prev)
        b = jax.random.normal(kb_, (units,), jnp.float32) * 0.01
        params["fc"].append((W, b))
        prev = units
    return params


def pack_params(params, config):
    """One-time weight packing (perf feedback: no per-forward relayouts)."""
    stages, (Hf, Wf, Cf) = _conv_stage_geometry(config)
    packed = {"conv_w": [], "conv_b": [], "sel": _selection_matrices(stages),
              "fc_w": [], "fc_b": []}
    for (W, b), st in zip(params["conv"], stages):
        k = st["k"]
        # (O, C, kh, kw) -> (kh*kw, C, O): one (C, O) matrix per conv tap.
        packed["conv_w"].append(
            jnp.transpose(W, (2, 3, 1, 0)).reshape(k * k, W.shape[1], W.shape[0]))
        packed["conv_b"].append(b.reshape(1, -1).astype(jnp.float32))
    # FC1: fold PyTorch's NCHW flatten permutation into the weight, keyed by the
    # kernel's (spatial_row, channel) layout -> (Hf*Wf, Cf, units).
    W1, b1 = params["fc"][0]
    U0 = W1.shape[0]
    w1p = W1.reshape(U0, Cf, Hf, Wf).transpose(2, 3, 1, 0).reshape(Hf * Wf, Cf, U0)
    packed["fc_w"].append(w1p)
    packed["fc_b"].append(b1.reshape(1, -1))
    for (W, b) in params["fc"][1:]:
        packed["fc_w"].append(W.T)             # (in, out)
        packed["fc_b"].append(b.reshape(1, -1))
    return packed


# ---------------------------------------------------------------------------
# The fused Pallas kernel (one grid step == one sample, end-to-end)
# ---------------------------------------------------------------------------
def _apply_act(z, name):
    name = name.lower()
    if name == "relu":
        return jnp.maximum(z, 0.0)
    if name == "sigmoid":
        return 1.0 / (1.0 + jnp.exp(-z))
    if name == "softmax":
        z = z - jnp.max(z, axis=-1, keepdims=True)
        e = jnp.exp(z)
        return e * pl.reciprocal(jnp.sum(e, axis=-1, keepdims=True), approx=True)
    if name == "none":
        return z
    raise ValueError(f"Unsupported activation: {name}")


def _fused_cnn_kernel(*refs, stages, fc_acts, n_fc):
    nconv = len(stages)
    idx = 0
    x_ref = refs[idx]; idx += 1
    conv_w = refs[idx:idx + nconv]; idx += nconv
    conv_b = refs[idx:idx + nconv]; idx += nconv
    sel = refs[idx:idx + nconv]; idx += nconv
    fc_w = refs[idx:idx + n_fc]; idx += n_fc
    fc_b = refs[idx:idx + n_fc]; idx += n_fc
    o_ref = refs[idx]; idx += 1
    z_scr = refs[idx:idx + nconv]; idx += nconv
    p_scr = refs[idx:idx + nconv]; idx += nconv

    # ----- conv + act + maxpool stages; everything stays in VMEM -------------
    for i, st in enumerate(stages):
        # conv = sum of k*k shifted sub-matmuls on the flat (rows, C) tile
        acc = jnp.zeros((st["R"], st["O"]), jnp.float32)
        for j, off in enumerate(st["conv_offsets"]):
            if i == 0:
                a = x_ref[0, pl.ds(off, st["R"]), :]
            else:
                a = p_scr[i - 1][pl.ds(off, st["R"]), :]
            acc = acc + jnp.dot(a.astype(COMPUTE_DTYPE),
                                conv_w[i][j].astype(COMPUTE_DTYPE),
                                preferred_element_type=jnp.float32)
        z_scr[i][...] = _apply_act(acc + conv_b[i][...], st["act"])

        # maxpool fused into the epilogue: window max over shifted VMEM slices,
        # then anchor compaction (+ zero padding for the next conv) as a single
        # 0/1 selection matmul.
        wmax = None
        for off in st["pool_offsets"]:
            v = z_scr[i][pl.ds(off, st["L"]), :]
            wmax = v if wmax is None else jnp.maximum(wmax, v)
        p_scr[i][...] = jnp.dot(sel[i][...], wmax,
                                preferred_element_type=jnp.float32)

    # ----- FC head (per-sample).  The first FC folds the NCHW flatten into its
    # pre-permuted per-spatial-position weights -> no in-kernel transpose. -----
    n_pos = stages[-1]["Hq"] * stages[-1]["Wq"]
    h = fc_b[0][...]
    for r in range(n_pos):
        a = p_scr[-1][pl.ds(r, 1), :]
        h = h + jnp.dot(a.astype(COMPUTE_DTYPE),
                        fc_w[0][r].astype(COMPUTE_DTYPE),
                        preferred_element_type=jnp.float32)
    h = _apply_act(h, fc_acts[0])
    for j in range(1, n_fc):
        h = jnp.dot(h.astype(COMPUTE_DTYPE), fc_w[j][...].astype(COMPUTE_DTYPE),
                    preferred_element_type=jnp.float32) + fc_b[j][...]
        h = _apply_act(h, fc_acts[j])
    o_ref[0] = h


def make_forward(config):
    stages, _ = _conv_stage_geometry(config)
    fc_acts = [fc.get("activation", "relu") for fc in config["FullyConnectedLayer"]]
    fc_acts.append(config["outputLayer"]["activation"])
    n_fc = len(fc_acts)
    n_out = config["outputLayer"]["units"]
    nconv = len(stages)

    kernel = functools.partial(_fused_cnn_kernel, stages=stages,
                               fc_acts=fc_acts, n_fc=n_fc)

    def forward(x_nchw, packed):
        N = x_nchw.shape[0]
        st0 = stages[0]
        # Glue on the INPUT only: NCHW -> NHWC, spatial zero-pad, flatten rows,
        # + (k-1) extra zero rows so every conv tap is a contiguous row slice.
        x = jnp.transpose(x_nchw, (0, 2, 3, 1)).astype(jnp.float32)
        p0 = st0["p"]
        x = jnp.pad(x, ((0, 0), (p0, p0), (p0, p0), (0, 0)))
        x = x.reshape(N, st0["Hp"] * st0["Wp"], st0["C"])
        x = jnp.pad(x, ((0, 0), (0, st0["k"] - 1), (0, 0)))

        def rep_spec(arr):
            nd = arr.ndim
            return pl.BlockSpec(arr.shape, lambda b, _nd=nd: (0,) * _nd)

        operands = ([x] + list(packed["conv_w"]) + list(packed["conv_b"])
                    + list(packed["sel"]) + list(packed["fc_w"])
                    + list(packed["fc_b"]))
        in_specs = [pl.BlockSpec((1,) + x.shape[1:], lambda b: (b, 0, 0))]
        in_specs += [rep_spec(a) for a in operands[1:]]

        scratch = [pltpu.VMEM((st["R"], st["O"]), jnp.float32) for st in stages]
        for i, st in enumerate(stages):
            rows = stages[i + 1]["in_rows"] if i + 1 < nconv else st["Hq"] * st["Wq"]
            scratch.append(pltpu.VMEM((rows, st["O"]), jnp.float32))

        out = pl.pallas_call(
            kernel,
            out_shape=jax.ShapeDtypeStruct((N, 1, n_out), jnp.float32),
            grid_spec=pltpu.PrefetchScalarGridSpec(
                num_scalar_prefetch=0,
                grid=(N,),
                in_specs=in_specs,
                out_specs=pl.BlockSpec((1, 1, n_out), lambda b: (b, 0, 0)),
                scratch_shapes=scratch),
            compiler_params=pltpu.CompilerParams(
                dimension_semantics=("parallel",)),   # v7x: 2 TCs split the batch
        )(*operands)
        return out.reshape(N, n_out)

    return jax.jit(forward)


# ---------------------------------------------------------------------------
# Pure-JAX/XLA reference (mirrors the PyTorch module) for correctness checking
# ---------------------------------------------------------------------------
def reference_forward(x_nchw, params, config):
    x = x_nchw.astype(jnp.float32)
    for (W, b), conv, act, pool in zip(params["conv"], config["convLayers"],
                                       config["activationLayers"],
                                       config["poolingLayers"]):
        x = jax.lax.conv_general_dilated(
            x, W, window_strides=(conv["stride"], conv["stride"]),
            padding=[(conv["padding"], conv["padding"])] * 2,
            dimension_numbers=("NCHW", "OIHW", "NCHW"))
        x = x + b.reshape(1, -1, 1, 1)
        x = jnp.maximum(x, 0.0)
        x = jax.lax.reduce_window(
            x, -jnp.inf, jax.lax.max,
            (1, 1, pool["kernelSize"], pool["kernelSize"]),
            (1, 1, pool["stride"], pool["stride"]), "VALID")
    x = x.reshape(x.shape[0], -1)
    fc_acts = [fc.get("activation", "relu") for fc in config["FullyConnectedLayer"]]
    fc_acts.append(config["outputLayer"]["activation"])
    for (W, b), act in zip(params["fc"], fc_acts):
        x = x @ W.T + b
        if act == "relu":
            x = jnp.maximum(x, 0.0)
        elif act == "sigmoid":
            x = jax.nn.sigmoid(x)
        elif act == "softmax":
            x = jax.nn.softmax(x, axis=-1)
    return x


# ---------------------------------------------------------------------------
if __name__ == "__main__":
    key = jax.random.PRNGKey(0)
    key, k_in, k_params = jax.random.split(key, 3)

    batch = 2
    cin = CONFIG["inputLayer"]["channels"]
    h = CONFIG["inputLayer"]["height"]
    w = CONFIG["inputLayer"]["width"]
    x = jax.random.normal(k_in, (batch, cin, h, w), jnp.float32)  # NCHW like PyTorch

    params = init_params(CONFIG, k_params)
    packed = pack_params(params, CONFIG)      # one-time pre-pack (no per-call relayout)
    forward = make_forward(CONFIG)

    out = jax.block_until_ready(forward(x, packed))

    assert out.shape == (batch, CONFIG["outputLayer"]["units"])
    # softmax rows sum to ~1 (approx reciprocal => slightly loose tolerance)
    assert bool(jnp.allclose(jnp.sum(out, axis=1), 1.0, atol=1e-2))
    # match the pure-JAX/XLA reference of the original module
    ref = reference_forward(x, params, CONFIG)
    assert bool(jnp.allclose(out, ref, atol=1e-2)), "fused kernel mismatch vs reference"
    print("KERNEL_OK")
</pallas_src>

<mosaic_0001>
module attributes {stable_mosaic.version = 11 : i64} {
  func.func @_fused_cnn_kernel(%arg0: i32, %arg1: memref<1x326x4xf32, #tpu.memory_space<vmem>>, %arg2: memref<9x4x8xf32, #tpu.memory_space<vmem>>, %arg3: memref<9x8x16xf32, #tpu.memory_space<vmem>>, %arg4: memref<1x8xf32, #tpu.memory_space<vmem>>, %arg5: memref<1x16xf32, #tpu.memory_space<vmem>>, %arg6: memref<102x269xf32, #tpu.memory_space<vmem>>, %arg7: memref<16x69xf32, #tpu.memory_space<vmem>>, %arg8: memref<16x16x32xf32, #tpu.memory_space<vmem>>, %arg9: memref<32x10xf32, #tpu.memory_space<vmem>>, %arg10: memref<1x32xf32, #tpu.memory_space<vmem>>, %arg11: memref<1x10xf32, #tpu.memory_space<vmem>>, %arg12: memref<1x1x10xf32, #tpu.memory_space<vmem>>, %arg13: memref<288x8xf32, #tpu.memory_space<vmem>>, %arg14: memref<80x16xf32, #tpu.memory_space<vmem>>, %arg15: memref<102x8xf32, #tpu.memory_space<vmem>>, %arg16: memref<16x16xf32, #tpu.memory_space<vmem>>) attributes {dimension_semantics = [#tpu.dimension_semantics<parallel>], iteration_bounds = array<i64: 2>, scalar_prefetch = 0 : i64, scratch_operands = 4 : i64, tpu.core_type = #tpu.core_type<tc>, window_params = [{transform_indices = @transform_0, window_bounds = array<i64: 1, 326, 4>}, {pipeline_mode = #tpu.pipeline_mode<synchronous>, transform_indices = @transform_1, window_bounds = array<i64: 9, 4, 8>}, {pipeline_mode = #tpu.pipeline_mode<synchronous>, transform_indices = @transform_2, window_bounds = array<i64: 9, 8, 16>}, {pipeline_mode = #tpu.pipeline_mode<synchronous>, transform_indices = @transform_3, window_bounds = array<i64: 1, 8>}, {pipeline_mode = #tpu.pipeline_mode<synchronous>, transform_indices = @transform_4, window_bounds = array<i64: 1, 16>}, {pipeline_mode = #tpu.pipeline_mode<synchronous>, transform_indices = @transform_5, window_bounds = array<i64: 102, 269>}, {pipeline_mode = #tpu.pipeline_mode<synchronous>, transform_indices = @transform_6, window_bounds = array<i64: 16, 69>}, {pipeline_mode = #tpu.pipeline_mode<synchronous>, transform_indices = @transform_7, window_bounds = array<i64: 16, 16, 32>}, {pipeline_mode = #tpu.pipeline_mode<synchronous>, transform_indices = @transform_8, window_bounds = array<i64: 32, 10>}, {pipeline_mode = #tpu.pipeline_mode<synchronous>, transform_indices = @transform_9, window_bounds = array<i64: 1, 32>}, {pipeline_mode = #tpu.pipeline_mode<synchronous>, transform_indices = @transform_10, window_bounds = array<i64: 1, 10>}, {transform_indices = @transform_11, window_bounds = array<i64: 1, 1, 10>}]} {
    %cst = arith.constant 0.000000e+00 : f32
    %0 = vector.broadcast %cst : f32 to vector<288x8xf32>
    %c0 = arith.constant 0 : index
    %c0_0 = arith.constant 0 : index
    %c0_1 = arith.constant 0 : index
    %1 = vector.load %arg1[%c0, %c0_0, %c0_1] : memref<1x326x4xf32, #tpu.memory_space<vmem>>, vector<1x288x4xf32>
    %2 = vector.shape_cast %1 : vector<1x288x4xf32> to vector<288x4xf32>
    %c0_2 = arith.constant 0 : index
    %c0_3 = arith.constant 0 : index
    %c0_4 = arith.constant 0 : index
    %3 = vector.load %arg2[%c0_2, %c0_3, %c0_4] : memref<9x4x8xf32, #tpu.memory_space<vmem>>, vector<1x4x8xf32>
    %4 = vector.shape_cast %3 : vector<1x4x8xf32> to vector<4x8xf32>
    %cst_5 = arith.constant dense<0.000000e+00> : vector<288x8xf32>
    %5 = tpu.matmul %2, %4, %cst_5 {dimension_numbers = #tpu.dot_dimension_numbers<[1], [0], [0], [1], [0, 0, 1, 1], [], []>} : vector<288x4xf32>, vector<4x8xf32>, vector<288x8xf32> -> vector<288x8xf32>
    %6 = arith.addf %0, %5 : vector<288x8xf32>
    %c0_6 = arith.constant 0 : index
    %c1 = arith.constant 1 : index
    %c0_7 = arith.constant 0 : index
    %7 = vector.load %arg1[%c0_6, %c1, %c0_7] : memref<1x326x4xf32, #tpu.memory_space<vmem>>, vector<1x288x4xf32>
    %8 = vector.shape_cast %7 : vector<1x288x4xf32> to vector<288x4xf32>
    %c1_8 = arith.constant 1 : index
    %c0_9 = arith.constant 0 : index
    %c0_10 = arith.constant 0 : index
    %9 = vector.load %arg2[%c1_8, %c0_9, %c0_10] : memref<9x4x8xf32, #tpu.memory_space<vmem>>, vector<1x4x8xf32>
    %10 = vector.shape_cast %9 : vector<1x4x8xf32> to vector<4x8xf32>
    %cst_11 = arith.constant dense<0.000000e+00> : vector<288x8xf32>
    %11 = tpu.matmul %8, %10, %cst_11 {dimension_numbers = #tpu.dot_dimension_numbers<[1], [0], [0], [1], [0, 0, 1, 1], [], []>} : vector<288x4xf32>, vector<4x8xf32>, vector<288x8xf32> -> vector<288x8xf32>
    %12 = arith.addf %6, %11 : vector<288x8xf32>
    %c0_12 = arith.constant 0 : index
    %c2 = arith.constant 2 : index
    %c0_13 = arith.constant 0 : index
    %13 = vector.load %arg1[%c0_12, %c2, %c0_13] : memref<1x326x4xf32, #tpu.memory_space<vmem>>, vector<1x288x4xf32>
    %14 = vector.shape_cast %13 : vector<1x288x4xf32> to vector<288x4xf32>
    %c2_14 = arith.constant 2 : index
    %c0_15 = arith.constant 0 : index
    %c0_16 = arith.constant 0 : index
    %15 = vector.load %arg2[%c2_14, %c0_15, %c0_16] : memref<9x4x8xf32, #tpu.memory_space<vmem>>, vector<1x4x8xf32>
    %16 = vector.shape_cast %15 : vector<1x4x8xf32> to vector<4x8xf32>
    %cst_17 = arith.constant dense<0.000000e+00> : vector<288x8xf32>
    %17 = tpu.matmul %14, %16, %cst_17 {dimension_numbers = #tpu.dot_dimension_numbers<[1], [0], [0], [1], [0, 0, 1, 1], [], []>} : vector<288x4xf32>, vector<4x8xf32>, vector<288x8xf32> -> vector<288x8xf32>
    %18 = arith.addf %12, %17 : vector<288x8xf32>
    %c0_18 = arith.constant 0 : index
    %c18 = arith.constant 18 : index
    %c0_19 = arith.constant 0 : index
    %19 = vector.load %arg1[%c0_18, %c18, %c0_19] : memref<1x326x4xf32, #tpu.memory_space<vmem>>, vector<1x288x4xf32>
    %20 = vector.shape_cast %19 : vector<1x288x4xf32> to vector<288x4xf32>
    %c3 = arith.constant 3 : index
    %c0_20 = arith.constant 0 : index
    %c0_21 = arith.constant 0 : index
    %21 = vector.load %arg2[%c3, %c0_20, %c0_21] : memref<9x4x8xf32, #tpu.memory_space<vmem>>, vector<1x4x8xf32>
    %22 = vector.shape_cast %21 : vector<1x4x8xf32> to vector<4x8xf32>
    %cst_22 = arith.constant dense<0.000000e+00> : vector<288x8xf32>
    %23 = tpu.matmul %20, %22, %cst_22 {dimension_numbers = #tpu.dot_dimension_numbers<[1], [0], [0], [1], [0, 0, 1, 1], [], []>} : vector<288x4xf32>, vector<4x8xf32>, vector<288x8xf32> -> vector<288x8xf32>
    %24 = arith.addf %18, %23 : vector<288x8xf32>
    %c0_23 = arith.constant 0 : index
    %c19 = arith.constant 19 : index
    %c0_24 = arith.constant 0 : index
    %25 = vector.load %arg1[%c0_23, %c19, %c0_24] : memref<1x326x4xf32, #tpu.memory_space<vmem>>, vector<1x288x4xf32>
    %26 = vector.shape_cast %25 : vector<1x288x4xf32> to vector<288x4xf32>
    %c4 = arith.constant 4 : index
    %c0_25 = arith.constant 0 : index
    %c0_26 = arith.constant 0 : index
    %27 = vector.load %arg2[%c4, %c0_25, %c0_26] : memref<9x4x8xf32, #tpu.memory_space<vmem>>, vector<1x4x8xf32>
    %28 = vector.shape_cast %27 : vector<1x4x8xf32> to vector<4x8xf32>
    %cst_27 = arith.constant dense<0.000000e+00> : vector<288x8xf32>
    %29 = tpu.matmul %26, %28, %cst_27 {dimension_numbers = #tpu.dot_dimension_numbers<[1], [0], [0], [1], [0, 0, 1, 1], [], []>} : vector<288x4xf32>, vector<4x8xf32>, vector<288x8xf32> -> vector<288x8xf32>
    %30 = arith.addf %24, %29 : vector<288x8xf32>
    %c0_28 = arith.constant 0 : index
    %c20 = arith.constant 20 : index
    %c0_29 = arith.constant 0 : index
    %31 = vector.load %arg1[%c0_28, %c20, %c0_29] : memref<1x326x4xf32, #tpu.memory_space<vmem>>, vector<1x288x4xf32>
    %32 = vector.shape_cast %31 : vector<1x288x4xf32> to vector<288x4xf32>
    %c5 = arith.constant 5 : index
    %c0_30 = arith.constant 0 : index
    %c0_31 = arith.constant 0 : index
    %33 = vector.load %arg2[%c5, %c0_30, %c0_31] : memref<9x4x8xf32, #tpu.memory_space<vmem>>, vector<1x4x8xf32>
    %34 = vector.shape_cast %33 : vector<1x4x8xf32> to vector<4x8xf32>
    %cst_32 = arith.constant dense<0.000000e+00> : vector<288x8xf32>
    %35 = tpu.matmul %32, %34, %cst_32 {dimension_numbers = #tpu.dot_dimension_numbers<[1], [0], [0], [1], [0, 0, 1, 1], [], []>} : vector<288x4xf32>, vector<4x8xf32>, vector<288x8xf32> -> vector<288x8xf32>
    %36 = arith.addf %30, %35 : vector<288x8xf32>
    %c0_33 = arith.constant 0 : index
    %c36 = arith.constant 36 : index
    %c0_34 = arith.constant 0 : index
    %37 = vector.load %arg1[%c0_33, %c36, %c0_34] : memref<1x326x4xf32, #tpu.memory_space<vmem>>, vector<1x288x4xf32>
    %38 = vector.shape_cast %37 : vector<1x288x4xf32> to vector<288x4xf32>
    %c6 = arith.constant 6 : index
    %c0_35 = arith.constant 0 : index
    %c0_36 = arith.constant 0 : index
    %39 = vector.load %arg2[%c6, %c0_35, %c0_36] : memref<9x4x8xf32, #tpu.memory_space<vmem>>, vector<1x4x8xf32>
    %40 = vector.shape_cast %39 : vector<1x4x8xf32> to vector<4x8xf32>
    %cst_37 = arith.constant dense<0.000000e+00> : vector<288x8xf32>
    %41 = tpu.matmul %38, %40, %cst_37 {dimension_numbers = #tpu.dot_dimension_numbers<[1], [0], [0], [1], [0, 0, 1, 1], [], []>} : vector<288x4xf32>, vector<4x8xf32>, vector<288x8xf32> -> vector<288x8xf32>
    %42 = arith.addf %36, %41 : vector<288x8xf32>
    %c0_38 = arith.constant 0 : index
    %c37 = arith.constant 37 : index
    %c0_39 = arith.constant 0 : index
    %43 = vector.load %arg1[%c0_38, %c37, %c0_39] : memref<1x326x4xf32, #tpu.memory_space<vmem>>, vector<1x288x4xf32>
    %44 = vector.shape_cast %43 : vector<1x288x4xf32> to vector<288x4xf32>
    %c7 = arith.constant 7 : index
    %c0_40 = arith.constant 0 : index
    %c0_41 = arith.constant 0 : index
    %45 = vector.load %arg2[%c7, %c0_40, %c0_41] : memref<9x4x8xf32, #tpu.memory_space<vmem>>, vector<1x4x8xf32>
    %46 = vector.shape_cast %45 : vector<1x4x8xf32> to vector<4x8xf32>
    %cst_42 = arith.constant dense<0.000000e+00> : vector<288x8xf32>
    %47 = tpu.matmul %44, %46, %cst_42 {dimension_numbers = #tpu.dot_dimension_numbers<[1], [0], [0], [1], [0, 0, 1, 1], [], []>} : vector<288x4xf32>, vector<4x8xf32>, vector<288x8xf32> -> vector<288x8xf32>
    %48 = arith.addf %42, %47 : vector<288x8xf32>
    %c0_43 = arith.constant 0 : index
    %c38 = arith.constant 38 : index
    %c0_44 = arith.constant 0 : index
    %49 = vector.load %arg1[%c0_43, %c38, %c0_44] : memref<1x326x4xf32, #tpu.memory_space<vmem>>, vector<1x288x4xf32>
    %50 = vector.shape_cast %49 : vector<1x288x4xf32> to vector<288x4xf32>
    %c8 = arith.constant 8 : index
    %c0_45 = arith.constant 0 : index
    %c0_46 = arith.constant 0 : index
    %51 = vector.load %arg2[%c8, %c0_45, %c0_46] : memref<9x4x8xf32, #tpu.memory_space<vmem>>, vector<1x4x8xf32>
    %52 = vector.shape_cast %51 : vector<1x4x8xf32> to vector<4x8xf32>
    %cst_47 = arith.constant dense<0.000000e+00> : vector<288x8xf32>
    %53 = tpu.matmul %50, %52, %cst_47 {dimension_numbers = #tpu.dot_dimension_numbers<[1], [0], [0], [1], [0, 0, 1, 1], [], []>} : vector<288x4xf32>, vector<4x8xf32>, vector<288x8xf32> -> vector<288x8xf32>
    %54 = arith.addf %48, %53 : vector<288x8xf32>
    %c0_48 = arith.constant 0 : index
    %c0_49 = arith.constant 0 : index
    %55 = vector.load %arg4[%c0_48, %c0_49] : memref<1x8xf32, #tpu.memory_space<vmem>>, vector<1x8xf32>
    %56 = vector.broadcast %55 : vector<1x8xf32> to vector<288x8xf32>
    %57 = arith.addf %54, %56 : vector<288x8xf32>
    %cst_50 = arith.constant 0.000000e+00 : f32
    %58 = vector.broadcast %cst_50 : f32 to vector<288x8xf32>
    %59 = arith.maximumf %57, %58 : vector<288x8xf32>
    %c0_51 = arith.constant 0 : index
    %c0_52 = arith.constant 0 : index
    %60 = vector.load %arg13[%c0_51, %c0_52] : memref<288x8xf32, #tpu.memory_space<vmem>>, vector<288x8xf32>
    tpu.vector_store %arg13[%c0_51, %c0_52], %59 {strides = array<i32>} : memref<288x8xf32, #tpu.memory_space<vmem>>, vector<288x8xf32>,
    %c0_53 = arith.constant 0 : index
    %c0_54 = arith.constant 0 : index
    %61 = vector.load %arg13[%c0_53, %c0_54] : memref<288x8xf32, #tpu.memory_space<vmem>>, vector<269x8xf32>
    %c1_55 = arith.constant 1 : index
    %c0_56 = arith.constant 0 : index
    %62 = vector.load %arg13[%c1_55, %c0_56] : memref<288x8xf32, #tpu.memory_space<vmem>>, vector<269x8xf32>
    %63 = arith.maximumf %61, %62 : vector<269x8xf32>
    %c18_57 = arith.constant 18 : index
    %c0_58 = arith.constant 0 : index
    %64 = vector.load %arg13[%c18_57, %c0_58] : memref<288x8xf32, #tpu.memory_space<vmem>>, vector<269x8xf32>
    %65 = arith.maximumf %63, %64 : vector<269x8xf32>
    %c19_59 = arith.constant 19 : index
    %c0_60 = arith.constant 0 : index
    %66 = vector.load %arg13[%c19_59, %c0_60] : memref<288x8xf32, #tpu.memory_space<vmem>>, vector<269x8xf32>
    %67 = arith.maximumf %65, %66 : vector<269x8xf32>
    %c0_61 = arith.constant 0 : index
    %c0_62 = arith.constant 0 : index
    %68 = vector.load %arg6[%c0_61, %c0_62] : memref<102x269xf32, #tpu.memory_space<vmem>>, vector<102x269xf32>
    %cst_63 = arith.constant dense<0.000000e+00> : vector<102x8xf32>
    %69 = tpu.matmul %68, %67, %cst_63 {dimension_numbers = #tpu.dot_dimension_numbers<[1], [0], [0], [1], [0, 0, 1, 1], [], []>} : vector<102x269xf32>, vector<269x8xf32>, vector<102x8xf32> -> vector<102x8xf32>
    %c0_64 = arith.constant 0 : index
    %c0_65 = arith.constant 0 : index
    %70 = vector.load %arg15[%c0_64, %c0_65] : memref<102x8xf32, #tpu.memory_space<vmem>>, vector<102x8xf32>
    tpu.vector_store %arg15[%c0_64, %c0_65], %69 {strides = array<i32>} : memref<102x8xf32, #tpu.memory_space<vmem>>, vector<102x8xf32>,
    %cst_66 = arith.constant 0.000000e+00 : f32
    %71 = vector.broadcast %cst_66 : f32 to vector<80x16xf32>
    %c0_67 = arith.constant 0 : index
    %c0_68 = arith.constant 0 : index
    %72 = vector.load %arg15[%c0_67, %c0_68] : memref<102x8xf32, #tpu.memory_space<vmem>>, vector<80x8xf32>
    %c0_69 = arith.constant 0 : index
    %c0_70 = arith.constant 0 : index
    %c0_71 = arith.constant 0 : index
    %73 = vector.load %arg3[%c0_69, %c0_70, %c0_71] : memref<9x8x16xf32, #tpu.memory_space<vmem>>, vector<1x8x16xf32>
    %74 = vector.shape_cast %73 : vector<1x8x16xf32> to vector<8x16xf32>
    %cst_72 = arith.constant dense<0.000000e+00> : vector<80x16xf32>
    %75 = tpu.matmul %72, %74, %cst_72 {dimension_numbers = #tpu.dot_dimension_numbers<[1], [0], [0], [1], [0, 0, 1, 1], [], []>} : vector<80x8xf32>, vector<8x16xf32>, vector<80x16xf32> -> vector<80x16xf32>
    %76 = arith.addf %71, %75 : vector<80x16xf32>
    %c1_73 = arith.constant 1 : index
    %c0_74 = arith.constant 0 : index
    %77 = vector.load %arg15[%c1_73, %c0_74] : memref<102x8xf32, #tpu.memory_space<vmem>>, vector<80x8xf32>
    %c1_75 = arith.constant 1 : index
    %c0_76 = arith.constant 0 : index
    %c0_77 = arith.constant 0 : index
    %78 = vector.load %arg3[%c1_75, %c0_76, %c0_77] : memref<9x8x16xf32, #tpu.memory_space<vmem>>, vector<1x8x16xf32>
    %79 = vector.shape_cast %78 : vector<1x8x16xf32> to vector<8x16xf32>
    %cst_78 = arith.constant dense<0.000000e+00> : vector<80x16xf32>
    %80 = tpu.matmul %77, %79, %cst_78 {dimension_numbers = #tpu.dot_dimension_numbers<[1], [0], [0], [1], [0, 0, 1, 1], [], []>} : vector<80x8xf32>, vector<8x16xf32>, vector<80x16xf32> -> vector<80x16xf32>
    %81 = arith.addf %76, %80 : vector<80x16xf32>
    %c2_79 = arith.constant 2 : index
    %c0_80 = arith.constant 0 : index
    %82 = vector.load %arg15[%c2_79, %c0_80] : memref<102x8xf32, #tpu.memory_space<vmem>>, vector<80x8xf32>
    %c2_81 = arith.constant 2 : index
    %c0_82 = arith.constant 0 : index
    %c0_83 = arith.constant 0 : index
    %83 = vector.load %arg3[%c2_81, %c0_82, %c0_83] : memref<9x8x16xf32, #tpu.memory_space<vmem>>, vector<1x8x16xf32>
    %84 = vector.shape_cast %83 : vector<1x8x16xf32> to vector<8x16xf32>
    %cst_84 = arith.constant dense<0.000000e+00> : vector<80x16xf32>
    %85 = tpu.matmul %82, %84, %cst_84 {dimension_numbers = #tpu.dot_dimension_numbers<[1], [0], [0], [1], [0, 0, 1, 1], [], []>} : vector<80x8xf32>, vector<8x16xf32>, vector<80x16xf32> -> vector<80x16xf32>
    %86 = arith.addf %81, %85 : vector<80x16xf32>
    %c10 = arith.constant 10 : index
    %c0_85 = arith.constant 0 : index
    %87 = vector.load %arg15[%c10, %c0_85] : memref<102x8xf32, #tpu.memory_space<vmem>>, vector<80x8xf32>
    %c3_86 = arith.constant 3 : index
    %c0_87 = arith.constant 0 : index
    %c0_88 = arith.constant 0 : index
    %88 = vector.load %arg3[%c3_86, %c0_87, %c0_88] : memref<9x8x16xf32, #tpu.memory_space<vmem>>, vector<1x8x16xf32>
    %89 = vector.shape_cast %88 : vector<1x8x16xf32> to vector<8x16xf32>
    %cst_89 = arith.constant dense<0.000000e+00> : vector<80x16xf32>
    %90 = tpu.matmul %87, %89, %cst_89 {dimension_numbers = #tpu.dot_dimension_numbers<[1], [0], [0], [1], [0, 0, 1, 1], [], []>} : vector<80x8xf32>, vector<8x16xf32>, vector<80x16xf32> -> vector<80x16xf32>
    %91 = arith.addf %86, %90 : vector<80x16xf32>
    %c11 = arith.constant 11 : index
    %c0_90 = arith.constant 0 : index
    %92 = vector.load %arg15[%c11, %c0_90] : memref<102x8xf32, #tpu.memory_space<vmem>>, vector<80x8xf32>
    %c4_91 = arith.constant 4 : index
    %c0_92 = arith.constant 0 : index
    %c0_93 = arith.constant 0 : index
    %93 = vector.load %arg3[%c4_91, %c0_92, %c0_93] : memref<9x8x16xf32, #tpu.memory_space<vmem>>, vector<1x8x16xf32>
    %94 = vector.shape_cast %93 : vector<1x8x16xf32> to vector<8x16xf32>
    %cst_94 = arith.constant dense<0.000000e+00> : vector<80x16xf32>
    %95 = tpu.matmul %92, %94, %cst_94 {dimension_numbers = #tpu.dot_dimension_numbers<[1], [0], [0], [1], [0, 0, 1, 1], [], []>} : vector<80x8xf32>, vector<8x16xf32>, vector<80x16xf32> -> vector<80x16xf32>
    %96 = arith.addf %91, %95 : vector<80x16xf32>
    %c12 = arith.constant 12 : index
    %c0_95 = arith.constant 0 : index
    %97 = vector.load %arg15[%c12, %c0_95] : memref<102x8xf32, #tpu.memory_space<vmem>>, vector<80x8xf32>
    %c5_96 = arith.constant 5 : index
    %c0_97 = arith.constant 0 : index
    %c0_98 = arith.constant 0 : index
    %98 = vector.load %arg3[%c5_96, %c0_97, %c0_98] : memref<9x8x16xf32, #tpu.memory_space<vmem>>, vector<1x8x16xf32>
    %99 = vector.shape_cast %98 : vector<1x8x16xf32> to vector<8x16xf32>
    %cst_99 = arith.constant dense<0.000000e+00> : vector<80x16xf32>
    %100 = tpu.matmul %97, %99, %cst_99 {dimension_numbers = #tpu.dot_dimension_numbers<[1], [0], [0], [1], [0, 0, 1, 1], [], []>} : vector<80x8xf32>, vector<8x16xf32>, vector<80x16xf32> -> vector<80x16xf32>
    %101 = arith.addf %96, %100 : vector<80x16xf32>
    %c20_100 = arith.constant 20 : index
    %c0_101 = arith.constant 0 : index
    %102 = vector.load %arg15[%c20_100, %c0_101] : memref<102x8xf32, #tpu.memory_space<vmem>>, vector<80x8xf32>
    %c6_102 = arith.constant 6 : index
    %c0_103 = arith.constant 0 : index
    %c0_104 = arith.constant 0 : index
    %103 = vector.load %arg3[%c6_102, %c0_103, %c0_104] : memref<9x8x16xf32, #tpu.memory_space<vmem>>, vector<1x8x16xf32>
    %104 = vector.shape_cast %103 : vector<1x8x16xf32> to vector<8x16xf32>
    %cst_105 = arith.constant dense<0.000000e+00> : vector<80x16xf32>
    %105 = tpu.matmul %102, %104, %cst_105 {dimension_numbers = #tpu.dot_dimension_numbers<[1], [0], [0], [1], [0, 0, 1, 1], [], []>} : vector<80x8xf32>, vector<8x16xf32>, vector<80x16xf32> -> vector<80x16xf32>
    %106 = arith.addf %101, %105 : vector<80x16xf32>
    %c21 = arith.constant 21 : index
    %c0_106 = arith.constant 0 : index
    %107 = vector.load %arg15[%c21, %c0_106] : memref<102x8xf32, #tpu.memory_space<vmem>>, vector<80x8xf32>
    %c7_107 = arith.constant 7 : index
    %c0_108 = arith.constant 0 : index
    %c0_109 = arith.constant 0 : index
    %108 = vector.load %arg3[%c7_107, %c0_108, %c0_109] : memref<9x8x16xf32, #tpu.memory_space<vmem>>, vector<1x8x16xf32>
    %109 = vector.shape_cast %108 : vector<1x8x16xf32> to vector<8x16xf32>
    %cst_110 = arith.constant dense<0.000000e+00> : vector<80x16xf32>
    %110 = tpu.matmul %107, %109, %cst_110 {dimension_numbers = #tpu.dot_dimension_numbers<[1], [0], [0], [1], [0, 0, 1, 1], [], []>} : vector<80x8xf32>, vector<8x16xf32>, vector<80x16xf32> -> vector<80x16xf32>
    %111 = arith.addf %106, %110 : vector<80x16xf32>
    %c22 = arith.constant 22 : index
    %c0_111 = arith.constant 0 : index
    %112 = vector.load %arg15[%c22, %c0_111] : memref<102x8xf32, #tpu.memory_space<vmem>>, vector<80x8xf32>
    %c8_112 = arith.constant 8 : index
    %c0_113 = arith.constant 0 : index
    %c0_114 = arith.constant 0 : index
    %113 = vector.load %arg3[%c8_112, %c0_113, %c0_114] : memref<9x8x16xf32, #tpu.memory_space<vmem>>, vector<1x8x16xf32>
    %114 = vector.shape_cast %113 : vector<1x8x16xf32> to vector<8x16xf32>
    %cst_115 = arith.constant dense<0.000000e+00> : vector<80x16xf32>
    %115 = tpu.matmul %112, %114, %cst_115 {dimension_numbers = #tpu.dot_dimension_numbers<[1], [0], [0], [1], [0, 0, 1, 1], [], []>} : vector<80x8xf32>, vector<8x16xf32>, vector<80x16xf32> -> vector<80x16xf32>
    %116 = arith.addf %111, %115 : vector<80x16xf32>
    %c0_116 = arith.constant 0 : index
    %c0_117 = arith.constant 0 : index
    %117 = vector.load %arg5[%c0_116, %c0_117] : memref<1x16xf32, #tpu.memory_space<vmem>>, vector<1x16xf32>
    %118 = vector.broadcast %117 : vector<1x16xf32> to vector<80x16xf32>
    %119 = arith.addf %116, %118 : vector<80x16xf32>
    %cst_118 = arith.constant 0.000000e+00 : f32
    %120 = vector.broadcast %cst_118 : f32 to vector<80x16xf32>
    %121 = arith.maximumf %119, %120 : vector<80x16xf32>
    %c0_119 = arith.constant 0 : index
    %c0_120 = arith.constant 0 : index
    %122 = vector.load %arg14[%c0_119, %c0_120] : memref<80x16xf32, #tpu.memory_space<vmem>>, vector<80x16xf32>
    tpu.vector_store %arg14[%c0_119, %c0_120], %121 {strides = array<i32>} : memref<80x16xf32, #tpu.memory_space<vmem>>, vector<80x16xf32>,
    %c0_121 = arith.constant 0 : index
    %c0_122 = arith.constant 0 : index
    %123 = vector.load %arg14[%c0_121, %c0_122] : memref<80x16xf32, #tpu.memory_space<vmem>>, vector<69x16xf32>
    %c1_123 = arith.constant 1 : index
    %c0_124 = arith.constant 0 : index
    %124 = vector.load %arg14[%c1_123, %c0_124] : memref<80x16xf32, #tpu.memory_space<vmem>>, vector<69x16xf32>
    %125 = arith.maximumf %123, %124 : vector<69x16xf32>
    %c10_125 = arith.constant 10 : index
    %c0_126 = arith.constant 0 : index
    %126 = vector.load %arg14[%c10_125, %c0_126] : memref<80x16xf32, #tpu.memory_space<vmem>>, vector<69x16xf32>
    %127 = arith.maximumf %125, %126 : vector<69x16xf32>
    %c11_127 = arith.constant 11 : index
    %c0_128 = arith.constant 0 : index
    %128 = vector.load %arg14[%c11_127, %c0_128] : memref<80x16xf32, #tpu.memory_space<vmem>>, vector<69x16xf32>
    %129 = arith.maximumf %127, %128 : vector<69x16xf32>
    %c0_129 = arith.constant 0 : index
    %c0_130 = arith.constant 0 : index
    %130 = vector.load %arg7[%c0_129, %c0_130] : memref<16x69xf32, #tpu.memory_space<vmem>>, vector<16x69xf32>
    %cst_131 = arith.constant dense<0.000000e+00> : vector<16x16xf32>
    %131 = tpu.matmul %130, %129, %cst_131 {dimension_numbers = #tpu.dot_dimension_numbers<[1], [0], [0], [1], [0, 0, 1, 1], [], []>} : vector<16x69xf32>, vector<69x16xf32>, vector<16x16xf32> -> vector<16x16xf32>
    %c0_132 = arith.constant 0 : index
    %c0_133 = arith.constant 0 : index
    %132 = vector.load %arg16[%c0_132, %c0_133] : memref<16x16xf32, #tpu.memory_space<vmem>>, vector<16x16xf32>
    tpu.vector_store %arg16[%c0_132, %c0_133], %131 {strides = array<i32>} : memref<16x16xf32, #tpu.memory_space<vmem>>, vector<16x16xf32>,
    %c0_134 = arith.constant 0 : index
    %c0_135 = arith.constant 0 : index
    %133 = vector.load %arg10[%c0_134, %c0_135] : memref<1x32xf32, #tpu.memory_space<vmem>>, vector<1x32xf32>
    %c0_136 = arith.constant 0 : index
    %c0_137 = arith.constant 0 : index
    %134 = vector.load %arg16[%c0_136, %c0_137] : memref<16x16xf32, #tpu.memory_space<vmem>>, vector<1x16xf32>
    %c0_138 = arith.constant 0 : index
    %c0_139 = arith.constant 0 : index
    %c0_140 = arith.constant 0 : index
    %135 = vector.load %arg8[%c0_138, %c0_139, %c0_140] : memref<16x16x32xf32, #tpu.memory_space<vmem>>, vector<1x16x32xf32>
    %136 = vector.shape_cast %135 : vector<1x16x32xf32> to vector<16x32xf32>
    %cst_141 = arith.constant dense<0.000000e+00> : vector<1x32xf32>
    %137 = tpu.matmul %134, %136, %cst_141 {dimension_numbers = #tpu.dot_dimension_numbers<[1], [0], [0], [1], [0, 0, 1, 1], [], []>} : vector<1x16xf32>, vector<16x32xf32>, vector<1x32xf32> -> vector<1x32xf32>
    %138 = arith.addf %133, %137 : vector<1x32xf32>
    %c1_142 = arith.constant 1 : index
    %c0_143 = arith.constant 0 : index
    %139 = vector.load %arg16[%c1_142, %c0_143] : memref<16x16xf32, #tpu.memory_space<vmem>>, vector<1x16xf32>
    %c1_144 = arith.constant 1 : index
    %c0_145 = arith.constant 0 : index
    %c0_146 = arith.constant 0 : index
    %140 = vector.load %arg8[%c1_144, %c0_145, %c0_146] : memref<16x16x32xf32, #tpu.memory_space<vmem>>, vector<1x16x32xf32>
    %141 = vector.shape_cast %140 : vector<1x16x32xf32> to vector<16x32xf32>
    %cst_147 = arith.constant dense<0.000000e+00> : vector<1x32xf32>
    %142 = tpu.matmul %139, %141, %cst_147 {dimension_numbers = #tpu.dot_dimension_numbers<[1], [0], [0], [1], [0, 0, 1, 1], [], []>} : vector<1x16xf32>, vector<16x32xf32>, vector<1x32xf32> -> vector<1x32xf32>
    %143 = arith.addf %138, %142 : vector<1x32xf32>
    %c2_148 = arith.constant 2 : index
    %c0_149 = arith.constant 0 : index
    %144 = vector.load %arg16[%c2_148, %c0_149] : memref<16x16xf32, #tpu.memory_space<vmem>>, vector<1x16xf32>
    %c2_150 = arith.constant 2 : index
    %c0_151 = arith.constant 0 : index
    %c0_152 = arith.constant 0 : index
    %145 = vector.load %arg8[%c2_150, %c0_151, %c0_152] : memref<16x16x32xf32, #tpu.memory_space<vmem>>, vector<1x16x32xf32>
    %146 = vector.shape_cast %145 : vector<1x16x32xf32> to vector<16x32xf32>
    %cst_153 = arith.constant dense<0.000000e+00> : vector<1x32xf32>
    %147 = tpu.matmul %144, %146, %cst_153 {dimension_numbers = #tpu.dot_dimension_numbers<[1], [0], [0], [1], [0, 0, 1, 1], [], []>} : vector<1x16xf32>, vector<16x32xf32>, vector<1x32xf32> -> vector<1x32xf32>
    %148 = arith.addf %143, %147 : vector<1x32xf32>
    %c3_154 = arith.constant 3 : index
    %c0_155 = arith.constant 0 : index
    %149 = vector.load %arg16[%c3_154, %c0_155] : memref<16x16xf32, #tpu.memory_space<vmem>>, vector<1x16xf32>
    %c3_156 = arith.constant 3 : index
    %c0_157 = arith.constant 0 : index
    %c0_158 = arith.constant 0 : index
    %150 = vector.load %arg8[%c3_156, %c0_157, %c0_158] : memref<16x16x32xf32, #tpu.memory_space<vmem>>, vector<1x16x32xf32>
    %151 = vector.shape_cast %150 : vector<1x16x32xf32> to vector<16x32xf32>
    %cst_159 = arith.constant dense<0.000000e+00> : vector<1x32xf32>
    %152 = tpu.matmul %149, %151, %cst_159 {dimension_numbers = #tpu.dot_dimension_numbers<[1], [0], [0], [1], [0, 0, 1, 1], [], []>} : vector<1x16xf32>, vector<16x32xf32>, vector<1x32xf32> -> vector<1x32xf32>
    %153 = arith.addf %148, %152 : vector<1x32xf32>
    %c4_160 = arith.constant 4 : index
    %c0_161 = arith.constant 0 : index
    %154 = vector.load %arg16[%c4_160, %c0_161] : memref<16x16xf32, #tpu.memory_space<vmem>>, vector<1x16xf32>
    %c4_162 = arith.constant 4 : index
    %c0_163 = arith.constant 0 : index
    %c0_164 = arith.constant 0 : index
    %155 = vector.load %arg8[%c4_162, %c0_163, %c0_164] : memref<16x16x32xf32, #tpu.memory_space<vmem>>, vector<1x16x32xf32>
    %156 = vector.shape_cast %155 : vector<1x16x32xf32> to vector<16x32xf32>
    %cst_165 = arith.constant dense<0.000000e+00> : vector<1x32xf32>
    %157 = tpu.matmul %154, %156, %cst_165 {dimension_numbers = #tpu.dot_dimension_numbers<[1], [0], [0], [1], [0, 0, 1, 1], [], []>} : vector<1x16xf32>, vector<16x32xf32>, vector<1x32xf32> -> vector<1x32xf32>
    %158 = arith.addf %153, %157 : vector<1x32xf32>
    %c5_166 = arith.constant 5 : index
    %c0_167 = arith.constant 0 : index
    %159 = vector.load %arg16[%c5_166, %c0_167] : memref<16x16xf32, #tpu.memory_space<vmem>>, vector<1x16xf32>
    %c5_168 = arith.constant 5 : index
    %c0_169 = arith.constant 0 : index
    %c0_170 = arith.constant 0 : index
    %160 = vector.load %arg8[%c5_168, %c0_169, %c0_170] : memref<16x16x32xf32, #tpu.memory_space<vmem>>, vector<1x16x32xf32>
    %161 = vector.shape_cast %160 : vector<1x16x32xf32> to vector<16x32xf32>
    %cst_171 = arith.constant dense<0.000000e+00> : vector<1x32xf32>
    %162 = tpu.matmul %159, %161, %cst_171 {dimension_numbers = #tpu.dot_dimension_numbers<[1], [0], [0], [1], [0, 0, 1, 1], [], []>} : vector<1x16xf32>, vector<16x32xf32>, vector<1x32xf32> -> vector<1x32xf32>
    %163 = arith.addf %158, %162 : vector<1x32xf32>
    %c6_172 = arith.constant 6 : index
    %c0_173 = arith.constant 0 : index
    %164 = vector.load %arg16[%c6_172, %c0_173] : memref<16x16xf32, #tpu.memory_space<vmem>>, vector<1x16xf32>
    %c6_174 = arith.constant 6 : index
    %c0_175 = arith.constant 0 : index
    %c0_176 = arith.constant 0 : index
    %165 = vector.load %arg8[%c6_174, %c0_175, %c0_176] : memref<16x16x32xf32, #tpu.memory_space<vmem>>, vector<1x16x32xf32>
    %166 = vector.shape_cast %165 : vector<1x16x32xf32> to vector<16x32xf32>
    %cst_177 = arith.constant dense<0.000000e+00> : vector<1x32xf32>
    %167 = tpu.matmul %164, %166, %cst_177 {dimension_numbers = #tpu.dot_dimension_numbers<[1], [0], [0], [1], [0, 0, 1, 1], [], []>} : vector<1x16xf32>, vector<16x32xf32>, vector<1x32xf32> -> vector<1x32xf32>
    %168 = arith.addf %163, %167 : vector<1x32xf32>
    %c7_178 = arith.constant 7 : index
    %c0_179 = arith.constant 0 : index
    %169 = vector.load %arg16[%c7_178, %c0_179] : memref<16x16xf32, #tpu.memory_space<vmem>>, vector<1x16xf32>
    %c7_180 = arith.constant 7 : index
    %c0_181 = arith.constant 0 : index
    %c0_182 = arith.constant 0 : index
    %170 = vector.load %arg8[%c7_180, %c0_181, %c0_182] : memref<16x16x32xf32, #tpu.memory_space<vmem>>, vector<1x16x32xf32>
    %171 = vector.shape_cast %170 : vector<1x16x32xf32> to vector<16x32xf32>
    %cst_183 = arith.constant dense<0.000000e+00> : vector<1x32xf32>
    %172 = tpu.matmul %169, %171, %cst_183 {dimension_numbers = #tpu.dot_dimension_numbers<[1], [0], [0], [1], [0, 0, 1, 1], [], []>} : vector<1x16xf32>, vector<16x32xf32>, vector<1x32xf32> -> vector<1x32xf32>
    %173 = arith.addf %168, %172 : vector<1x32xf32>
    %c8_184 = arith.constant 8 : index
    %c0_185 = arith.constant 0 : index
    %174 = vector.load %arg16[%c8_184, %c0_185] : memref<16x16xf32, #tpu.memory_space<vmem>>, vector<1x16xf32>
    %c8_186 = arith.constant 8 : index
    %c0_187 = arith.constant 0 : index
    %c0_188 = arith.constant 0 : index
    %175 = vector.load %arg8[%c8_186, %c0_187, %c0_188] : memref<16x16x32xf32, #tpu.memory_space<vmem>>, vector<1x16x32xf32>
    %176 = vector.shape_cast %175 : vector<1x16x32xf32> to vector<16x32xf32>
    %cst_189 = arith.constant dense<0.000000e+00> : vector<1x32xf32>
    %177 = tpu.matmul %174, %176, %cst_189 {dimension_numbers = #tpu.dot_dimension_numbers<[1], [0], [0], [1], [0, 0, 1, 1], [], []>} : vector<1x16xf32>, vector<16x32xf32>, vector<1x32xf32> -> vector<1x32xf32>
    %178 = arith.addf %173, %177 : vector<1x32xf32>
    %c9 = arith.constant 9 : index
    %c0_190 = arith.constant 0 : index
    %179 = vector.load %arg16[%c9, %c0_190] : memref<16x16xf32, #tpu.memory_space<vmem>>, vector<1x16xf32>
    %c9_191 = arith.constant 9 : index
    %c0_192 = arith.constant 0 : index
    %c0_193 = arith.constant 0 : index
    %180 = vector.load %arg8[%c9_191, %c0_192, %c0_193] : memref<16x16x32xf32, #tpu.memory_space<vmem>>, vector<1x16x32xf32>
    %181 = vector.shape_cast %180 : vector<1x16x32xf32> to vector<16x32xf32>
    %cst_194 = arith.constant dense<0.000000e+00> : vector<1x32xf32>
    %182 = tpu.matmul %179, %181, %cst_194 {dimension_numbers = #tpu.dot_dimension_numbers<[1], [0], [0], [1], [0, 0, 1, 1], [], []>} : vector<1x16xf32>, vector<16x32xf32>, vector<1x32xf32> -> vector<1x32xf32>
    %183 = arith.addf %178, %182 : vector<1x32xf32>
    %c10_195 = arith.constant 10 : index
    %c0_196 = arith.constant 0 : index
    %184 = vector.load %arg16[%c10_195, %c0_196] : memref<16x16xf32, #tpu.memory_space<vmem>>, vector<1x16xf32>
    %c10_197 = arith.constant 10 : index
    %c0_198 = arith.constant 0 : index
    %c0_199 = arith.constant 0 : index
    %185 = vector.load %arg8[%c10_197, %c0_198, %c0_199] : memref<16x16x32xf32, #tpu.memory_space<vmem>>, vector<1x16x32xf32>
    %186 = vector.shape_cast %185 : vector<1x16x32xf32> to vector<16x32xf32>
    %cst_200 = arith.constant dense<0.000000e+00> : vector<1x32xf32>
    %187 = tpu.matmul %184, %186, %cst_200 {dimension_numbers = #tpu.dot_dimension_numbers<[1], [0], [0], [1], [0, 0, 1, 1], [], []>} : vector<1x16xf32>, vector<16x32xf32>, vector<1x32xf32> -> vector<1x32xf32>
    %188 = arith.addf %183, %187 : vector<1x32xf32>
    %c11_201 = arith.constant 11 : index
    %c0_202 = arith.constant 0 : index
    %189 = vector.load %arg16[%c11_201, %c0_202] : memref<16x16xf32, #tpu.memory_space<vmem>>, vector<1x16xf32>
    %c11_203 = arith.constant 11 : index
    %c0_204 = arith.constant 0 : index
    %c0_205 = arith.constant 0 : index
    %190 = vector.load %arg8[%c11_203, %c0_204, %c0_205] : memref<16x16x32xf32, #tpu.memory_space<vmem>>, vector<1x16x32xf32>
    %191 = vector.shape_cast %190 : vector<1x16x32xf32> to vector<16x32xf32>
    %cst_206 = arith.constant dense<0.000000e+00> : vector<1x32xf32>
    %192 = tpu.matmul %189, %191, %cst_206 {dimension_numbers = #tpu.dot_dimension_numbers<[1], [0], [0], [1], [0, 0, 1, 1], [], []>} : vector<1x16xf32>, vector<16x32xf32>, vector<1x32xf32> -> vector<1x32xf32>
    %193 = arith.addf %188, %192 : vector<1x32xf32>
    %c12_207 = arith.constant 12 : index
    %c0_208 = arith.constant 0 : index
    %194 = vector.load %arg16[%c12_207, %c0_208] : memref<16x16xf32, #tpu.memory_space<vmem>>, vector<1x16xf32>
    %c12_209 = arith.constant 12 : index
    %c0_210 = arith.constant 0 : index
    %c0_211 = arith.constant 0 : index
    %195 = vector.load %arg8[%c12_209, %c0_210, %c0_211] : memref<16x16x32xf32, #tpu.memory_space<vmem>>, vector<1x16x32xf32>
    %196 = vector.shape_cast %195 : vector<1x16x32xf32> to vector<16x32xf32>
    %cst_212 = arith.constant dense<0.000000e+00> : vector<1x32xf32>
    %197 = tpu.matmul %194, %196, %cst_212 {dimension_numbers = #tpu.dot_dimension_numbers<[1], [0], [0], [1], [0, 0, 1, 1], [], []>} : vector<1x16xf32>, vector<16x32xf32>, vector<1x32xf32> -> vector<1x32xf32>
    %198 = arith.addf %193, %197 : vector<1x32xf32>
    %c13 = arith.constant 13 : index
    %c0_213 = arith.constant 0 : index
    %199 = vector.load %arg16[%c13, %c0_213] : memref<16x16xf32, #tpu.memory_space<vmem>>, vector<1x16xf32>
    %c13_214 = arith.constant 13 : index
    %c0_215 = arith.constant 0 : index
    %c0_216 = arith.constant 0 : index
    %200 = vector.load %arg8[%c13_214, %c0_215, %c0_216] : memref<16x16x32xf32, #tpu.memory_space<vmem>>, vector<1x16x32xf32>
    %201 = vector.shape_cast %200 : vector<1x16x32xf32> to vector<16x32xf32>
    %cst_217 = arith.constant dense<0.000000e+00> : vector<1x32xf32>
    %202 = tpu.matmul %199, %201, %cst_217 {dimension_numbers = #tpu.dot_dimension_numbers<[1], [0], [0], [1], [0, 0, 1, 1], [], []>} : vector<1x16xf32>, vector<16x32xf32>, vector<1x32xf32> -> vector<1x32xf32>
    %203 = arith.addf %198, %202 : vector<1x32xf32>
    %c14 = arith.constant 14 : index
    %c0_218 = arith.constant 0 : index
    %204 = vector.load %arg16[%c14, %c0_218] : memref<16x16xf32, #tpu.memory_space<vmem>>, vector<1x16xf32>
    %c14_219 = arith.constant 14 : index
    %c0_220 = arith.constant 0 : index
    %c0_221 = arith.constant 0 : index
    %205 = vector.load %arg8[%c14_219, %c0_220, %c0_221] : memref<16x16x32xf32, #tpu.memory_space<vmem>>, vector<1x16x32xf32>
    %206 = vector.shape_cast %205 : vector<1x16x32xf32> to vector<16x32xf32>
    %cst_222 = arith.constant dense<0.000000e+00> : vector<1x32xf32>
    %207 = tpu.matmul %204, %206, %cst_222 {dimension_numbers = #tpu.dot_dimension_numbers<[1], [0], [0], [1], [0, 0, 1, 1], [], []>} : vector<1x16xf32>, vector<16x32xf32>, vector<1x32xf32> -> vector<1x32xf32>
    %208 = arith.addf %203, %207 : vector<1x32xf32>
    %c15 = arith.constant 15 : index
    %c0_223 = arith.constant 0 : index
    %209 = vector.load %arg16[%c15, %c0_223] : memref<16x16xf32, #tpu.memory_space<vmem>>, vector<1x16xf32>
    %c15_224 = arith.constant 15 : index
    %c0_225 = arith.constant 0 : index
    %c0_226 = arith.constant 0 : index
    %210 = vector.load %arg8[%c15_224, %c0_225, %c0_226] : memref<16x16x32xf32, #tpu.memory_space<vmem>>, vector<1x16x32xf32>
    %211 = vector.shape_cast %210 : vector<1x16x32xf32> to vector<16x32xf32>
    %cst_227 = arith.constant dense<0.000000e+00> : vector<1x32xf32>
    %212 = tpu.matmul %209, %211, %cst_227 {dimension_numbers = #tpu.dot_dimension_numbers<[1], [0], [0], [1], [0, 0, 1, 1], [], []>} : vector<1x16xf32>, vector<16x32xf32>, vector<1x32xf32> -> vector<1x32xf32>
    %213 = arith.addf %208, %212 : vector<1x32xf32>
    %cst_228 = arith.constant 0.000000e+00 : f32
    %214 = vector.broadcast %cst_228 : f32 to vector<1x32xf32>
    %215 = arith.maximumf %213, %214 : vector<1x32xf32>
    %c0_229 = arith.constant 0 : index
    %c0_230 = arith.constant 0 : index
    %216 = vector.load %arg9[%c0_229, %c0_230] : memref<32x10xf32, #tpu.memory_space<vmem>>, vector<32x10xf32>
    %cst_231 = arith.constant dense<0.000000e+00> : vector<1x10xf32>
    %217 = tpu.matmul %215, %216, %cst_231 {dimension_numbers = #tpu.dot_dimension_numbers<[1], [0], [0], [1], [0, 0, 1, 1], [], []>} : vector<1x32xf32>, vector<32x10xf32>, vector<1x10xf32> -> vector<1x10xf32>
    %c0_232 = arith.constant 0 : index
    %c0_233 = arith.constant 0 : index
    %218 = vector.load %arg11[%c0_232, %c0_233] : memref<1x10xf32, #tpu.memory_space<vmem>>, vector<1x10xf32>
    %219 = arith.addf %217, %218 : vector<1x10xf32>
    %cst_234 = arith.constant dense<0xFF800000> : vector<1xf32>
    %220 = vector.multi_reduction <maximumf>, %219, %cst_234 [1] : vector<1x10xf32> to vector<1xf32>
    %221 = vector.shape_cast %220 : vector<1xf32> to vector<1x1xf32>
    %222 = vector.broadcast %221 : vector<1x1xf32> to vector<1x10xf32>
    %223 = arith.subf %219, %222 : vector<1x10xf32>
    %224 = math.exp %223 : vector<1x10xf32>
    %cst_235 = arith.constant dense<0.000000e+00> : vector<1xf32>
    %225 = vector.multi_reduction <add>, %224, %cst_235 [1] : vector<1x10xf32> to vector<1xf32>
    %226 = vector.shape_cast %225 : vector<1xf32> to vector<1x1xf32>
    %227 = tpu.reciprocal %226 {approx = true} : vector<1x1xf32> -> vector<1x1xf32>
    %228 = vector.broadcast %227 : vector<1x1xf32> to vector<1x10xf32>
    %229 = arith.mulf %224, %228 : vector<1x10xf32>
    %c0_236 = arith.constant 0 : index
    %c0_237 = arith.constant 0 : index
    %c0_238 = arith.constant 0 : index
    %230 = vector.load %arg12[%c0_236, %c0_237, %c0_238] : memref<1x1x10xf32, #tpu.memory_space<vmem>>, vector<1x1x10xf32>
    %231 = vector.shape_cast %230 : vector<1x1x10xf32> to vector<1x10xf32>
    %232 = vector.shape_cast %229 : vector<1x10xf32> to vector<1x1x10xf32>
    tpu.vector_store %arg12[%c0_236, %c0_237, %c0_238], %232 {strides = array<i32>} : memref<1x1x10xf32, #tpu.memory_space<vmem>>, vector<1x1x10xf32>,
    return
  }
  func.func @transform_0(%arg0: i32) -> (i32, i32, i32) {
    %c0_i32 = arith.constant 0 : i32
    %c0_i32_0 = arith.constant 0 : i32
    %c0_i32_1 = arith.constant 0 : i32
    return %arg0, %c0_i32, %c0_i32_0 : i32, i32, i32
  }
  func.func @transform_1(%arg0: i32) -> (i32, i32, i32) {
    %c0_i32 = arith.constant 0 : i32
    %c0_i32_0 = arith.constant 0 : i32
    %c0_i32_1 = arith.constant 0 : i32
    %c0_i32_2 = arith.constant 0 : i32
    return %c0_i32, %c0_i32_0, %c0_i32_1 : i32, i32, i32
  }
  func.func @transform_2(%arg0: i32) -> (i32, i32, i32) {
    %c0_i32 = arith.constant 0 : i32
    %c0_i32_0 = arith.constant 0 : i32
    %c0_i32_1 = arith.constant 0 : i32
    %c0_i32_2 = arith.constant 0 : i32
    return %c0_i32, %c0_i32_0, %c0_i32_1 : i32, i32, i32
  }
  func.func @transform_3(%arg0: i32) -> (i32, i32) {
    %c0_i32 = arith.constant 0 : i32
    %c0_i32_0 = arith.constant 0 : i32
    %c0_i32_1 = arith.constant 0 : i32
    return %c0_i32, %c0_i32_0 : i32, i32
  }
  func.func @transform_4(%arg0: i32) -> (i32, i32) {
    %c0_i32 = arith.constant 0 : i32
    %c0_i32_0 = arith.constant 0 : i32
    %c0_i32_1 = arith.constant 0 : i32
    return %c0_i32, %c0_i32_0 : i32, i32
  }
  func.func @transform_5(%arg0: i32) -> (i32, i32) {
    %c0_i32 = arith.constant 0 : i32
    %c0_i32_0 = arith.constant 0 : i32
    %c0_i32_1 = arith.constant 0 : i32
    return %c0_i32, %c0_i32_0 : i32, i32
  }
  func.func @transform_6(%arg0: i32) -> (i32, i32) {
    %c0_i32 = arith.constant 0 : i32
    %c0_i32_0 = arith.constant 0 : i32
    %c0_i32_1 = arith.constant 0 : i32
    return %c0_i32, %c0_i32_0 : i32, i32
  }
  func.func @transform_7(%arg0: i32) -> (i32, i32, i32) {
    %c0_i32 = arith.constant 0 : i32
    %c0_i32_0 = arith.constant 0 : i32
    %c0_i32_1 = arith.constant 0 : i32
    %c0_i32_2 = arith.constant 0 : i32
    return %c0_i32, %c0_i32_0, %c0_i32_1 : i32, i32, i32
  }
  func.func @transform_8(%arg0: i32) -> (i32, i32) {
    %c0_i32 = arith.constant 0 : i32
    %c0_i32_0 = arith.constant 0 : i32
    %c0_i32_1 = arith.constant 0 : i32
    return %c0_i32, %c0_i32_0 : i32, i32
  }
  func.func @transform_9(%arg0: i32) -> (i32, i32) {
    %c0_i32 = arith.constant 0 : i32
    %c0_i32_0 = arith.constant 0 : i32
    %c0_i32_1 = arith.constant 0 : i32
    return %c0_i32, %c0_i32_0 : i32, i32
  }
  func.func @transform_10(%arg0: i32) -> (i32, i32) {
    %c0_i32 = arith.constant 0 : i32
    %c0_i32_0 = arith.constant 0 : i32
    %c0_i32_1 = arith.constant 0 : i32
    return %c0_i32, %c0_i32_0 : i32, i32
  }
  func.func @transform_11(%arg0: i32) -> (i32, i32, i32) {
    %c0_i32 = arith.constant 0 : i32
    %c0_i32_0 = arith.constant 0 : i32
    %c0_i32_1 = arith.constant 0 : i32
    return %arg0, %c0_i32, %c0_i32_0 : i32, i32, i32
  }
}

</mosaic_0001>

<bundles_post_ra>
// kernel: forward.1
= control target key start
LH: loop header
LB: loop body
LE: loop exit
PB: predicated region body
PF: predicated region fallthrough
CT: control target
= control target key end

     0   :  { %s7623_s0 = inlined_call_operand.vmem [shape: f32[2,326,4], index: 0, kind: input, shape index: {}]   ;;  %s7624_s1 = inlined_call_operand.vmem [shape: f32[9,4,8], index: 1, kind: input, shape index: {}]   ;;  %s7625_s2 = inlined_call_operand.vmem [shape: f32[9,8,16], index: 2, kind: input, shape index: {}]   ;;  %s7626_s3 = inlined_call_operand.vmem [shape: f32[1,8], index: 3, kind: input, shape index: {}]   ;;  %s7627_s4 = inlined_call_operand.vmem [shape: f32[1,16], index: 4, kind: input, shape index: {}]   ;;  %s7628_s5 = inlined_call_operand.vmem [shape: f32[102,269], index: 5, kind: input, shape index: {}]   ;;  %s7629_s6 = inlined_call_operand.vmem [shape: f32[16,69], index: 6, kind: input, shape index: {}]   ;;  %s7630_s7 = inlined_call_operand.vmem [shape: f32[16,16,32], index: 7, kind: input, shape index: {}]   ;;  %s7631_s8 = inlined_call_operand.vmem [shape: f32[32,10], index: 8, kind: input, shape index: {}]   ;;  %s7632_s9 = inlined_call_operand.vmem [shape: f32[1,32], index: 9, kind: input, shape index: {}]   ;;  %s7633_s10 = inlined_call_operand.vmem [shape: f32[1,10], index: 10, kind: input, shape index: {}]   ;;  %s7634_s11 = inlined_call_operand.hbm [shape: f32[2,1,10], index: 11, kind: output, shape index: {}]  }
   0x1   :  { %7635 = sst [smem:[#allocation21_spill]] %s7623_s0 }
   0x2   :  { %16 = vsyncpa [#allocation7], 0 }
   0x3   :  { %18 = vsyncpa [#allocation7 + $0x1], 0  ;;  %s5964_s17 = smov 0   ;;  %s5966_s18 = smov 0  }
   0x4   :  { %s5968_s19 = smov 0   ;;  %s5970_s20 = smov 0  }
   0x5 LB: > { %s5985_s21 = sadd.s32 4294967295, %s5902_s20   ;;  %s5283_s22 = sadd.s32 4294967294, %s5902_s20   ;;  %s5902_s20 = sphi %s5970_s20, %s7666_s20   ;;  %s5898_s19 = sphi %s5968_s19, %s7665_s19   ;;  %s5894_s18 = sphi %s5966_s18, %s7664_s18   ;;  %s5890_s17 = sphi %s5964_s17, %s7663_s17  }
   0x6   : > { %s5989_s23 = sadd.s32 1, %s5902_s20   ;;  %s267_s24 = sadd.s32 1, %s5898_s19 }
   0x7   : > { %s264_s25 = ssub.s32 %s5902_s20, %s5989_s23  ;;  %p277_p0 = scmp.ne.s32.totalorder %s5898_s19, %s5894_s18 }
   0x8   : > { %p265_p1 = scmp.eq.s32.totalorder %s264_s25, 0  ;;  %p278_p2 = scmp.eq.s32.totalorder %s5985_s21, 1 }
   0x9   : > { %p283_p3 = scmp.ne.s32.totalorder %s5894_s18, %s5890_s17  ;;  %p284_p4 = scmp.eq.s32.totalorder %s5283_s22, 1 }
   0xa   : > { %s6000_s26 = scalar_select %p265_p1, %s5898_s19, %s267_s24  }
   0xb   : > { %p6002_p5 = por %p278_p2, %p277_p0  ;;  %p6006_p6 = por %p284_p4, %p283_p3 }
   0xc   : > { %p5286_p7 = scmp.ge.s32.totalorder %s5902_s20, 1  ;;  %p340_p8 = scmp.lt.s32.totalorder %s5902_s20, 3 }
   0xe   : > { %p341_p9 = pnand %p5286_p7, %p340_p8 }
  0x10   : > { %344 = sbr.rel (%p341_p9) target bundleno = 2321 (0x911), region = 64 }
  0x15   : > { %v5288_v0 = vld [vmem:[%s7624_s1 + $0x4] sm:$0xf]  ;;  %vm568_vm0 = vcmask 1043456   ;;  %v420_v1 = vld [vmem:[%s7624_s1] sm:$0xf]  ;;  %p379_p10 = scmp.lt.s32.totalorder %s5985_s21, 1 }
  0x16   : > { %5289 = vmatpush.msk.msra.mxu0 %vm568_vm0, %v5288_v0  ;;  %5326 = vmatpush.msk.msra.mxu1 %vm568_vm0, %v420_v1  ;;  %v5363_v2 = vld [vmem:[%s7624_s1 + $0x8] sm:$0xf]  ;;  %v5401_v3 = vld [vmem:[%s7624_s1 + $0xc] sm:$0xf]  ;;  %vm459_vm1 = vcmask 31744   ;;  %s7638_s0 = sld [smem:[#allocation21_spill]] }
  0x17   : > { %5364 = vmatpush.msk.msra.mxu2 %vm568_vm0, %v5363_v2  ;;  %s380_s24 = scalar_select %p379_p10, %s5985_s21, 1  ;;  %5402 = vmatpush.msk.msra.mxu3 %vm568_vm0, %v5401_v3  ;;  %vm3179_vm2 = vcmask 64512   ;;  %vm3533_vm3 = vcmask 1044480   ;;  %vm3493_vm4 = vcmask 105472   ;;  %vm3717_vm5 = vcmask 62464  }
  0x18   : > { %vm4613_vm6 = vcmask 130048   ;;  %vm4689_vm7 = vcmask 564224   ;;  %vm5178_vm8 = vcmask 261120   ;;  %vm5202_vm9 = vcmask 73728  }
  0x19   : > { %s5793_s25 = smul.u32 328, %s380_s24  ;;  %s5224_s24 = scalar_lea.hbm %s7634_s11, %s5985_s21 }
  0x1a   : > { %s5228_s30 = sshll.u32 %s5224_s24, 4  ;;  %s5860_s21 = scalar_lea.hbm %s7634_s11, 2  ;;  %s5229_s30 = int_to_ptr.hbm [resolvable:$true] %s5228_s30 }
  0x1b   : > { %s5854_s14 = sshra.s32 %s5229_s30, 4  ;;  %s5855_s14 = int_to_ptr.hbm [resolvable:$true] %s5854_s14 }
  0x1c   : > { %s6033_s12 = scalar_lea.vmem %s7638_s0, %s5793_s25  ;;  %s5856_s15 = scalar_lea.hbm %s5855_s14, 1 }
  0x1d   : > { %v421_v4 = vld [vmem:[%s6033_s12 + $0x1] sm:$0xff]  ;;  %v1243_v7 = vld [vmem:[%s6033_s12 + $0x12] sm:$0xff]  ;;  %v422_v8 = vld [vmem:[%s6033_s12 + $0x9] sm:$0xff]  ;;  %p5857_p11 = scmp.ne.s32.totalorder %s5855_s14, %s5856_s15  ;;  %p5861_p0 = scmp.lt.s32.totalorder %s5855_s14, %s7634_s11 }
  0x1e   : > { %v384_v5 = vld [vmem:[%s6033_s12] sm:$0xff]  ;;  %5290 = vmatmul.msk.f32.vlgmr.msra.gmra.mxu0 %vm459_vm1, %v421_v4  ;;  %5403 = vmatmul.msk.f32.vlgmr.msra.gmra.mxu3 %vm459_vm1, %v1243_v7  ;;  %v385_v9 = vld [vmem:[%s6033_s12 + $0x8] sm:$0xff]  ;;  %v423_v12 = vld [vmem:[%s6033_s12 + $0x11] sm:$0xff]  ;;  %p5862_p1 = scmp.lt.s32.totalorder %s5860_s21, %s5856_s15 }
  0x1f   : > { %v933_v6 = vld [vmem:[%s6033_s12 + $0x2] sm:$0xff]  ;;  %5327 = vmatmul.msk.f32.vlgmr.msra.gmra.mxu1 %vm459_vm1, %v384_v5  ;;  %v934_v10 = vld [vmem:[%s6033_s12 + $0xa] sm:$0xff]  ;;  %v1244_v11 = vld [vmem:[%s6033_s12 + $0x1a] sm:$0xff]  ;;  %p5858_p12 = pnand %p5857_p11, %p6002_p5 }
  0x20   : > { %5365 = vmatmul.msk.f32.vlgmr.msra.gmra.mxu2 %vm459_vm1, %v933_v6  ;;  %v386_v13 = vld [vmem:[%s6033_s12 + $0x10] sm:$0xff]  ;;  %v1245_v14 = vld [vmem:[%s6033_s12 + $0x22] sm:$0xff]  ;;  %v424_v15 = vld [vmem:[%s6033_s12 + $0x19] sm:$0xff]  ;;  %p5863_p2 = por %p5862_p1, %p5861_p0 }
  0x21   : > { %v387_v16 = vld [vmem:[%s6033_s12 + $0x18] sm:$0xff]  ;;  %v1246_v17 = vld [vmem:[%s6033_s12 + $0x2a] sm:$0xff]  ;;  %v425_v18 = vld [vmem:[%s6033_s12 + $0x21] sm:$0xff]  ;;  %p5859_p13 = pneg %p5858_p12 }
  0x22   : > { %v388_v19 = vld [vmem:[%s6033_s12 + $0x20] sm:$0xff]  ;;  %v1247_v20 = vld [vmem:[%s6033_s12 + $0x32] sm:$0xff]  ;;  %v426_v21 = vld [vmem:[%s6033_s12 + $0x29] sm:$0xff] }
  0x23   : > { %v389_v22 = vld [vmem:[%s6033_s12 + $0x28] sm:$0xff]  ;;  %v1248_v23 = vld [vmem:[%s6033_s12 + $0x3a] sm:$0xff]  ;;  %v427_v24 = vld [vmem:[%s6033_s12 + $0x31] sm:$0xff]  ;;  %p5864_p3 = pnand %p5863_p2, %p5859_p13 }
  0x24   : > { %v390_v25 = vld [vmem:[%s6033_s12 + $0x30] sm:$0xff]  ;;  %v1249_v26 = vld [vmem:[%s6033_s12 + $0x42] sm:$0xff]  ;;  %v428_v27 = vld [vmem:[%s6033_s12 + $0x39] sm:$0xff] }
  0x25   : > { %v391_v28 = vld [vmem:[%s6033_s12 + $0x38] sm:$0xff]  ;;  %v1250_v29 = vld [vmem:[%s6033_s12 + $0x4a] sm:$0xff]  ;;  %v429_v30 = vld [vmem:[%s6033_s12 + $0x41] sm:$0xff] }
  0x26   : > { %5291 = vmatmul.msk.f32.gmra.mxu0 %vm459_vm1, %v422_v8  ;;  %5404 = vmatmul.msk.f32.gmra.mxu3 %vm459_vm1, %v1244_v11  ;;  %v392_v31 = vld [vmem:[%s6033_s12 + $0x40] sm:$0xff]  ;;  %v1251_v32 = vld [vmem:[%s6033_s12 + $0x52] sm:$0xff]  ;;  %v430_v33 = vld [vmem:[%s6033_s12 + $0x49] sm:$0xff] }
  0x27   : > { %5328 = vmatmul.msk.f32.gmra.mxu1 %vm459_vm1, %v385_v9  ;;  %v393_v34 = vld [vmem:[%s6033_s12 + $0x48] sm:$0xff]  ;;  %v1252_v35 = vld [vmem:[%s6033_s12 + $0x5a] sm:$0xff]  ;;  %v431_v36 = vld [vmem:[%s6033_s12 + $0x51] sm:$0xff] }
  0x28   : > { %5366 = vmatmul.msk.f32.gmra.mxu2 %vm459_vm1, %v934_v10  ;;  %v394_v37 = vld [vmem:[%s6033_s12 + $0x50] sm:$0xff]  ;;  %v1253_v38 = vld [vmem:[%s6033_s12 + $0x62] sm:$0xff]  ;;  %v432_v39 = vld [vmem:[%s6033_s12 + $0x59] sm:$0xff] }
  0x29   : > { %v395_v40 = vld [vmem:[%s6033_s12 + $0x58] sm:$0xff]  ;;  %v1254_v41 = vld [vmem:[%s6033_s12 + $0x6a] sm:$0xff]  ;;  %v433_v42 = vld [vmem:[%s6033_s12 + $0x61] sm:$0xff] }
  0x2a   : > { %v396_v43 = vld [vmem:[%s6033_s12 + $0x60] sm:$0xff]  ;;  %v1255_v44 = vld [vmem:[%s6033_s12 + $0x72] sm:$0xff]  ;;  %v434_v45 = vld [vmem:[%s6033_s12 + $0x69] sm:$0xff] }
  0x2b   : > { %v397_v46 = vld [vmem:[%s6033_s12 + $0x68] sm:$0xff]  ;;  %v1256_v47 = vld [vmem:[%s6033_s12 + $0x7a] sm:$0xff]  ;;  %v435_v48 = vld [vmem:[%s6033_s12 + $0x71] sm:$0xff] }
  0x2c   : > { %v398_v49 = vld [vmem:[%s6033_s12 + $0x70] sm:$0xff]  ;;  %v1257_v50 = vld [vmem:[%s6033_s12 + $0x82] sm:$0xff]  ;;  %v436_v51 = vld [vmem:[%s6033_s12 + $0x79] sm:$0xff] }
  0x2d   : > { %v399_v52 = vld [vmem:[%s6033_s12 + $0x78] sm:$0xff]  ;;  %v1258_v53 = vld [vmem:[%s6033_s12 + $0x8a] sm:$0xff]  ;;  %v437_v56 = vld [vmem:[%s6033_s12 + $0x81] sm:$0xff] }
  0x2e   : > { %5292 = vmatmul.msk.f32.gmra.mxu0 %vm459_vm1, %v423_v12  ;;  %5405 = vmatmul.msk.f32.gmra.mxu3 %vm459_vm1, %v1245_v14  ;;  %v400_v57 = vld [vmem:[%s6033_s12 + $0x80] sm:$0xff]  ;;  %v1259_v58 = vld [vmem:[%s6033_s12 + $0x92] sm:$0xff]  ;;  %v438_v1 = vld [vmem:[%s6033_s12 + $0x89] sm:$0xff] }
  0x2f   : > { %5329 = vmatmul.msk.f32.gmra.mxu1 %vm459_vm1, %v386_v13  ;;  %v401_v2 = vld [vmem:[%s6033_s12 + $0x88] sm:$0xff]  ;;  %v1260_v3 = vld [vmem:[%s6033_s12 + $0x9a] sm:$0xff]  ;;  %v402_v12 = vld [vmem:[%s6033_s12 + $0x90] sm:$0xff] }
  0x30   : > { %5367 = vmatmul.msk.f32.gmra.mxu2 %vm459_vm1, %v1243_v7  ;;  %v1261_v13 = vld [vmem:[%s6033_s12 + $0xa2] sm:$0xff] }
  0x36   : > { %5293 = vmatmul.msk.f32.gmra.mxu0 %vm459_vm1, %v424_v15  ;;  %5406 = vmatmul.msk.f32.gmra.mxu3 %vm459_vm1, %v1246_v17 }
  0x37   : > { %5330 = vmatmul.msk.f32.gmra.mxu1 %vm459_vm1, %v387_v16 }
  0x38   : > { %5368 = vmatmul.msk.f32.gmra.mxu2 %vm459_vm1, %v1244_v11  ;;  %v439_v11 = vld [vmem:[%s6033_s12 + $0x91] sm:$0xff] }
  0x3e   : > { %5294 = vmatmul.msk.f32.gmra.mxu0 %vm459_vm1, %v425_v18  ;;  %5407 = vmatmul.msk.f32.gmra.mxu3 %vm459_vm1, %v1247_v20 }
  0x3f   : > { %5331 = vmatmul.msk.f32.gmra.mxu1 %vm459_vm1, %v388_v19 }
  0x40   : > { %5369 = vmatmul.msk.f32.gmra.mxu2 %vm459_vm1, %v1245_v14 }
  0x46   : > { %5295 = vmatmul.msk.f32.gmra.mxu0 %vm459_vm1, %v426_v21  ;;  %5408 = vmatmul.msk.f32.gmra.mxu3 %vm459_vm1, %v1248_v23  ;;  %v440_v21 = vld [vmem:[%s6033_s12 + $0x99] sm:$0xff] }
  0x47   : > { %5332 = vmatmul.msk.f32.gmra.mxu1 %vm459_vm1, %v389_v22  ;;  %v403_v22 = vld [vmem:[%s6033_s12 + $0x98] sm:$0xff] }
  0x48   : > { %5370 = vmatmul.msk.f32.gmra.mxu2 %vm459_vm1, %v1246_v17 }
  0x4e   : > { %5296 = vmatmul.msk.f32.gmra.mxu0 %vm459_vm1, %v427_v24  ;;  %5409 = vmatmul.msk.f32.gmra.mxu3 %vm459_vm1, %v1249_v26 }
  0x4f   : > { %5333 = vmatmul.msk.f32.gmra.mxu1 %vm459_vm1, %v390_v25 }
  0x50   : > { %5371 = vmatmul.msk.f32.gmra.mxu2 %vm459_vm1, %v1247_v20 }
  0x56   : > { %5297 = vmatmul.msk.f32.gmra.mxu0 %vm459_vm1, %v428_v27  ;;  %5410 = vmatmul.msk.f32.gmra.mxu3 %vm459_vm1, %v1250_v29 }
  0x57   : > { %5334 = vmatmul.msk.f32.gmra.mxu1 %vm459_vm1, %v391_v28 }
  0x58   : > { %5372 = vmatmul.msk.f32.gmra.mxu2 %vm459_vm1, %v1248_v23  ;;  %v1262_v23 = vld [vmem:[%s6033_s12 + $0xaa] sm:$0xff] }
  0x5e   : > { %5298 = vmatmul.msk.f32.gmra.mxu0 %vm459_vm1, %v429_v30  ;;  %5411 = vmatmul.msk.f32.gmra.mxu3 %vm459_vm1, %v1251_v32 }
  0x5f   : > { %5335 = vmatmul.msk.f32.gmra.mxu1 %vm459_vm1, %v392_v31  ;;  %v441_v31 = vld [vmem:[%s6033_s12 + $0xa1] sm:$0xff] }
  0x60   : > { %5373 = vmatmul.msk.f32.gmra.mxu2 %vm459_vm1, %v1249_v26 }
  0x66   : > { %5299 = vmatmul.msk.f32.gmra.mxu0 %vm459_vm1, %v430_v33  ;;  %5412 = vmatmul.msk.f32.gmra.mxu3 %vm459_vm1, %v1252_v35  ;;  %v1263_v33 = vld [vmem:[%s6033_s12 + $0xb2] sm:$0xff] }
  0x67   : > { %5336 = vmatmul.msk.f32.gmra.mxu1 %vm459_vm1, %v393_v34 }
  0x68   : > { %5374 = vmatmul.msk.f32.gmra.mxu2 %vm459_vm1, %v1250_v29 }
  0x6e   : > { %5300 = vmatmul.msk.f32.gmra.mxu0 %vm459_vm1, %v431_v36  ;;  %5413 = vmatmul.msk.f32.gmra.mxu3 %vm459_vm1, %v1253_v38 }
  0x6f   : > { %5337 = vmatmul.msk.f32.gmra.mxu1 %vm459_vm1, %v394_v37 }
  0x70   : > { %5375 = vmatmul.msk.f32.gmra.mxu2 %vm459_vm1, %v1251_v32  ;;  %v404_v32 = vld [vmem:[%s6033_s12 + $0xa0] sm:$0xff] }
  0x76   : > { %5301 = vmatmul.msk.f32.gmra.mxu0 %vm459_vm1, %v432_v39  ;;  %5414 = vmatmul.msk.f32.gmra.mxu3 %vm459_vm1, %v1254_v41 }
  0x77   : > { %5338 = vmatmul.msk.f32.gmra.mxu1 %vm459_vm1, %v395_v40 }
  0x78   : > { %5376 = vmatmul.msk.f32.gmra.mxu2 %vm459_vm1, %v1252_v35 }
  0x7e   : > { %5302 = vmatmul.msk.f32.gmra.mxu0 %vm459_vm1, %v433_v42  ;;  %5415 = vmatmul.msk.f32.gmra.mxu3 %vm459_vm1, %v1255_v44  ;;  %v405_v42 = vld [vmem:[%s6033_s12 + $0xa8] sm:$0xff] }
  0x7f   : > { %5339 = vmatmul.msk.f32.gmra.mxu1 %vm459_vm1, %v396_v43  ;;  %v1264_v43 = vld [vmem:[%s6033_s12 + $0xba] sm:$0xff] }
  0x80   : > { %5377 = vmatmul.msk.f32.gmra.mxu2 %vm459_vm1, %v1253_v38 }
  0x86   : > { %5303 = vmatmul.msk.f32.gmra.mxu0 %vm459_vm1, %v434_v45  ;;  %5416 = vmatmul.msk.f32.gmra.mxu3 %vm459_vm1, %v1256_v47 }
  0x87   : > { %5340 = vmatmul.msk.f32.gmra.mxu1 %vm459_vm1, %v397_v46 }
  0x88   : > { %5378 = vmatmul.msk.f32.gmra.mxu2 %vm459_vm1, %v1254_v41  ;;  %v442_v41 = vld [vmem:[%s6033_s12 + $0xa9] sm:$0xff] }
  0x8e   : > { %5304 = vmatmul.msk.f32.gmra.mxu0 %vm459_vm1, %v435_v48  ;;  %5417 = vmatmul.msk.f32.gmra.mxu3 %vm459_vm1, %v1257_v50 }
  0x8f   : > { %5341 = vmatmul.msk.f32.gmra.mxu1 %vm459_vm1, %v398_v49 }
  0x90   : > { %5379 = vmatmul.msk.f32.gmra.mxu2 %vm459_vm1, %v1255_v44 }
  0x96   : > { %5305 = vmatmul.msk.f32.gmra.mxu0 %vm459_vm1, %v436_v51  ;;  %5418 = vmatmul.msk.f32.gmra.mxu3 %vm459_vm1, %v1258_v53  ;;  %v443_v51 = vld [vmem:[%s6033_s12 + $0xb1] sm:$0xff] }
  0x97   : > { %5342 = vmatmul.msk.f32.gmra.mxu1 %vm459_vm1, %v399_v52  ;;  %v406_v52 = vld [vmem:[%s6033_s12 + $0xb0] sm:$0xff] }
  0x98   : > { %5380 = vmatmul.msk.f32.gmra.mxu2 %vm459_vm1, %v1256_v47 }
  0x9b   : > { %v589_v54 = vpop.f32.mrf.mxu0 }
  0x9c   : > { %v825_v55 = vpop.f32.mrf.mxu1 }
  0x9d   : > { %v826_v59 = vadd.f32 %v825_v55, %v589_v54 }
  0x9e   : > { %5306 = vmatmul.msk.f32.gmra.mxu0 %vm459_vm1, %v437_v56  ;;  %5419 = vmatmul.msk.f32.gmra.mxu3 %vm459_vm1, %v1259_v58 }
  0x9f   : > { %5343 = vmatmul.msk.f32.gmra.mxu1 %vm459_vm1, %v400_v57 }
  0xa0   : > { %5381 = vmatmul.msk.f32.gmra.mxu2 %vm459_vm1, %v1257_v50 }
  0xa1   : > { %v1409_v61 = vpop.f32.mrf.mxu3 }
  0xa3   : > { %v1099_v60 = vpop.f32.mrf.mxu2  ;;  %v592_v63 = vpop.f32.mrf.mxu0 }
  0xa4   : > { %v1207_v62 = vadd.f32 %v1099_v60, %v826_v59  ;;  %v828_v0 = vpop.f32.mrf.mxu1 }
  0xa5   : > { %v829_v5 = vadd.f32 %v828_v0, %v592_v63  ;;  %v1266_v63 = vld [vmem:[%s6033_s12 + $0xca] sm:$0xff] }
  0xa6   : > { %v6159_v4 = vadd.f32 %v1409_v61, %v1207_v62  ;;  %5307 = vmatmul.msk.f32.gmra.mxu0 %vm459_vm1, %v438_v1  ;;  %5420 = vmatmul.msk.f32.gmra.mxu3 %vm459_vm1, %v1260_v3  ;;  %v444_v61 = vld [vmem:[%s6033_s12 + $0xb9] sm:$0xff] }
  0xa7   : > { %5344 = vmatmul.msk.f32.gmra.mxu1 %vm459_vm1, %v401_v2  ;;  %v407_v62 = vld [vmem:[%s6033_s12 + $0xb8] sm:$0xff] }
  0xa8   : > { %5382 = vmatmul.msk.f32.gmra.mxu2 %vm459_vm1, %v1258_v53  ;;  %v1265_v53 = vld [vmem:[%s6033_s12 + $0xc2] sm:$0xff] }
  0xa9   : > { %v1412_v7 = vpop.f32.mrf.mxu3 }
  0xab   : > { %v1102_v6 = vpop.f32.mrf.mxu2  ;;  %v595_v9 = vpop.f32.mrf.mxu0 }
  0xac   : > { %v1208_v8 = vadd.f32 %v1102_v6, %v829_v5  ;;  %v831_v10 = vpop.f32.mrf.mxu1 }
  0xad   : > { %v832_v15 = vadd.f32 %v831_v10, %v595_v9  ;;  %v408_v9 = vld [vmem:[%s6033_s12 + $0xc0] sm:$0xff]  ;;  %v1267_v10 = vld [vmem:[%s6033_s12 + $0xd2] sm:$0xff] }
  0xae   : > { %v6168_v14 = vadd.f32 %v1412_v7, %v1208_v8  ;;  %5308 = vmatmul.msk.f32.gmra.mxu0 %vm459_vm1, %v439_v11  ;;  %5421 = vmatmul.msk.f32.gmra.mxu3 %vm459_vm1, %v1261_v13  ;;  %v445_v8 = vld [vmem:[%s6033_s12 + $0xc1] sm:$0xff] }
  0xaf   : > { %5345 = vmatmul.msk.f32.gmra.mxu1 %vm459_vm1, %v402_v12 }
  0xb0   : > { %5383 = vmatmul.msk.f32.gmra.mxu2 %vm459_vm1, %v1259_v58 }
  0xb1   : > { %v1415_v17 = vpop.f32.mrf.mxu3 }
  0xb3   : > { %v1105_v16 = vpop.f32.mrf.mxu2  ;;  %v598_v19 = vpop.f32.mrf.mxu0 }
  0xb4   : > { %v1209_v18 = vadd.f32 %v1105_v16, %v832_v15  ;;  %v834_v20 = vpop.f32.mrf.mxu1 }
  0xb5   : > { %v835_v25 = vadd.f32 %v834_v20, %v598_v19  ;;  %v446_v19 = vld [vmem:[%s6033_s12 + $0xc9] sm:$0xff] }
  0xb6   : > { %v6177_v24 = vadd.f32 %v1415_v17, %v1209_v18  ;;  %5309 = vmatmul.msk.f32.gmra.mxu0 %vm459_vm1, %v440_v21  ;;  %5422 = vmatmul.msk.f32.gmra.mxu3 %vm459_vm1, %v1262_v23  ;;  %v409_v20 = vld [vmem:[%s6033_s12 + $0xc8] sm:$0xff]  ;;  %v1268_v21 = vld [vmem:[%s6033_s12 + $0xda] sm:$0xff] }
  0xb7   : > { %5346 = vmatmul.msk.f32.gmra.mxu1 %vm459_vm1, %v403_v22 }
  0xb8   : > { %5384 = vmatmul.msk.f32.gmra.mxu2 %vm459_vm1, %v1260_v3 }
  0xb9   : > { %v1418_v27 = vpop.f32.mrf.mxu3 }
  0xbb   : > { %v1108_v26 = vpop.f32.mrf.mxu2  ;;  %v601_v29 = vpop.f32.mrf.mxu0 }
  0xbc   : > { %v1210_v28 = vadd.f32 %v1108_v26, %v835_v25  ;;  %v837_v30 = vpop.f32.mrf.mxu1 }
  0xbd   : > { %v838_v35 = vadd.f32 %v837_v30, %v601_v29  ;;  %v447_v30 = vld [vmem:[%s6033_s12 + $0xd1] sm:$0xff] }
  0xbe   : > { %v6186_v34 = vadd.f32 %v1418_v27, %v1210_v28  ;;  %5310 = vmatmul.msk.f32.gmra.mxu0 %vm459_vm1, %v441_v31  ;;  %5423 = vmatmul.msk.f32.gmra.mxu3 %vm459_vm1, %v1263_v33  ;;  %v410_v31 = vld [vmem:[%s6033_s12 + $0xd0] sm:$0xff] }
  0xbf   : > { %5347 = vmatmul.msk.f32.gmra.mxu1 %vm459_vm1, %v404_v32  ;;  %v1269_v32 = vld [vmem:[%s6033_s12 + $0xe2] sm:$0xff] }
  0xc0   : > { %5385 = vmatmul.msk.f32.gmra.mxu2 %vm459_vm1, %v1261_v13 }
  0xc1   : > { %v1421_v37 = vpop.f32.mrf.mxu3 }
  0xc3   : > { %v1111_v36 = vpop.f32.mrf.mxu2  ;;  %v604_v39 = vpop.f32.mrf.mxu0 }
  0xc4   : > { %v1211_v38 = vadd.f32 %v1111_v36, %v838_v35  ;;  %v840_v40 = vpop.f32.mrf.mxu1 }
  0xc5   : > { %v841_v45 = vadd.f32 %v840_v40, %v604_v39 }
  0xc6   : > { %v6195_v44 = vadd.f32 %v1421_v37, %v1211_v38  ;;  %5311 = vmatmul.msk.f32.gmra.mxu0 %vm459_vm1, %v442_v41  ;;  %5424 = vmatmul.msk.f32.gmra.mxu3 %vm459_vm1, %v1264_v43  ;;  %v448_v41 = vld [vmem:[%s6033_s12 + $0xd9] sm:$0xff] }
  0xc7   : > { %5348 = vmatmul.msk.f32.gmra.mxu1 %vm459_vm1, %v405_v42  ;;  %v411_v42 = vld [vmem:[%s6033_s12 + $0xd8] sm:$0xff] }
  0xc8   : > { %5386 = vmatmul.msk.f32.gmra.mxu2 %vm459_vm1, %v1262_v23 }
  0xc9   : > { %v1424_v47 = vpop.f32.mrf.mxu3 }
  0xcb   : > { %v1114_v46 = vpop.f32.mrf.mxu2  ;;  %v607_v49 = vpop.f32.mrf.mxu0 }
  0xcc   : > { %v1212_v48 = vadd.f32 %v1114_v46, %v841_v45  ;;  %v843_v50 = vpop.f32.mrf.mxu1 }
  0xcd   : > { %v844_v55 = vadd.f32 %v843_v50, %v607_v49 }
  0xce   : > { %v6204_v54 = vadd.f32 %v1424_v47, %v1212_v48  ;;  %5312 = vmatmul.msk.f32.gmra.mxu0 %vm459_vm1, %v443_v51  ;;  %5425 = vmatmul.msk.f32.gmra.mxu3 %vm459_vm1, %v1265_v53 }
  0xcf   : > { %5349 = vmatmul.msk.f32.gmra.mxu1 %vm459_vm1, %v406_v52  ;;  %v449_v52 = vld [vmem:[%s6033_s12 + $0xe1] sm:$0xff] }
  0xd0   : > { %5387 = vmatmul.msk.f32.gmra.mxu2 %vm459_vm1, %v1263_v33 }
  0xd1   : > { %v1427_v57 = vpop.f32.mrf.mxu3 }
  0xd3   : > { %v1117_v56 = vpop.f32.mrf.mxu2  ;;  %v610_v59 = vpop.f32.mrf.mxu0 }
  0xd4   : > { %v1213_v58 = vadd.f32 %v1117_v56, %v844_v55  ;;  %v846_v60 = vpop.f32.mrf.mxu1  ;;  %v1271_v55 = vld [vmem:[%s6033_s12 + $0xf2] sm:$0xff] }
  0xd5   : > { %v847_v1 = vadd.f32 %v846_v60, %v610_v59 }
  0xd6   : > { %v6213_v0 = vadd.f32 %v1427_v57, %v1213_v58  ;;  %5313 = vmatmul.msk.f32.gmra.mxu0 %vm459_vm1, %v444_v61  ;;  %5426 = vmatmul.msk.f32.gmra.mxu3 %vm459_vm1, %v1266_v63 }
  0xd7   : > { %5350 = vmatmul.msk.f32.gmra.mxu1 %vm459_vm1, %v407_v62 }
  0xd8   : > { %5388 = vmatmul.msk.f32.gmra.mxu2 %vm459_vm1, %v1264_v43  ;;  %v1270_v43 = vld [vmem:[%s6033_s12 + $0xea] sm:$0xff] }
  0xd9   : > { %v1430_v3 = vpop.f32.mrf.mxu3 }
  0xdb   : > { %v1120_v2 = vpop.f32.mrf.mxu2  ;;  %v613_v6 = vpop.f32.mrf.mxu0 }
  0xdc   : > { %v1214_v5 = vadd.f32 %v1120_v2, %v847_v1  ;;  %v849_v7 = vpop.f32.mrf.mxu1  ;;  %v413_v1 = vld [vmem:[%s6033_s12 + $0xe8] sm:$0xff]  ;;  %v1272_v2 = vld [vmem:[%s6033_s12 + $0xfa] sm:$0xff] }
  0xdd   : > { %v850_v12 = vadd.f32 %v849_v7, %v613_v6 }
  0xde   : > { %v6222_v11 = vadd.f32 %v1430_v3, %v1214_v5  ;;  %5314 = vmatmul.msk.f32.gmra.mxu0 %vm459_vm1, %v445_v8  ;;  %5427 = vmatmul.msk.f32.gmra.mxu3 %vm459_vm1, %v1267_v10 }
  0xdf   : > { %5351 = vmatmul.msk.f32.gmra.mxu1 %vm459_vm1, %v408_v9 }
  0xe0   : > { %5389 = vmatmul.msk.f32.gmra.mxu2 %vm459_vm1, %v1265_v53  ;;  %v412_v53 = vld [vmem:[%s6033_s12 + $0xe0] sm:$0xff] }
  0xe1   : > { %v1433_v15 = vpop.f32.mrf.mxu3 }
  0xe3   : > { %v1123_v13 = vpop.f32.mrf.mxu2  ;;  %v616_v17 = vpop.f32.mrf.mxu0 }
  0xe4   : > { %v1215_v16 = vadd.f32 %v1123_v13, %v850_v12  ;;  %v852_v18 = vpop.f32.mrf.mxu1  ;;  %v451_v12 = vld [vmem:[%s6033_s12 + $0xf1] sm:$0xff] }
  0xe5   : > { %v853_v23 = vadd.f32 %v852_v18, %v616_v17  ;;  %v414_v13 = vld [vmem:[%s6033_s12 + $0xf0] sm:$0xff] }
  0xe6   : > { %v6231_v22 = vadd.f32 %v1433_v15, %v1215_v16  ;;  %5315 = vmatmul.msk.f32.gmra.mxu0 %vm459_vm1, %v446_v19  ;;  %5428 = vmatmul.msk.f32.gmra.mxu3 %vm459_vm1, %v1268_v21  ;;  %v1273_v15 = vld [vmem:[%s6033_s12 + $0x102] sm:$0xff]  ;;  %v5439_v17 = vld [vmem:[%s7624_s1 + $0x10] sm:$0xf] }
  0xe7   : > { %5352 = vmatmul.msk.f32.gmra.mxu1 %vm459_vm1, %v409_v20  ;;  %5440 = vmatpush.msk.msrb.mxu0 %vm568_vm0, %v5439_v17  ;;  %v456_v17 = vld [vmem:[%s6033_s12 + $0x119] sm:$0xff] }
  0xe8   : > { %5390 = vmatmul.msk.f32.gmra.mxu2 %vm459_vm1, %v1266_v63  ;;  %v450_v63 = vld [vmem:[%s6033_s12 + $0xe9] sm:$0xff] }
  0xe9   : > { %v1436_v26 = vpop.f32.mrf.mxu3 }
  0xeb   : > { %v1126_v25 = vpop.f32.mrf.mxu2  ;;  %v619_v28 = vpop.f32.mrf.mxu0 }
  0xec   : > { %v1216_v27 = vadd.f32 %v1126_v25, %v853_v23  ;;  %v855_v29 = vpop.f32.mrf.mxu1 }
  0xed   : > { %v856_v35 = vadd.f32 %v855_v29, %v619_v28  ;;  %v1274_v28 = vld [vmem:[%s6033_s12 + $0x10a] sm:$0xff] }
  0xee   : > { %v6240_v33 = vadd.f32 %v1436_v26, %v1216_v27  ;;  %5316 = vmatmul.msk.f32.gmra.mxu0 %vm459_vm1, %v447_v30  ;;  %5429 = vmatmul.msk.f32.gmra.mxu3 %vm459_vm1, %v1269_v32  ;;  %v452_v26 = vld [vmem:[%s6033_s12 + $0xf9] sm:$0xff] }
  0xef   : > { %5353 = vmatmul.msk.f32.gmra.mxu1 %vm459_vm1, %v410_v31  ;;  %v415_v27 = vld [vmem:[%s6033_s12 + $0xf8] sm:$0xff] }
  0xf0   : > { %5391 = vmatmul.msk.f32.gmra.mxu2 %vm459_vm1, %v1267_v10 }
  0xf1   : > { %v1439_v37 = vpop.f32.mrf.mxu3 }
  0xf3   : > { %v1129_v36 = vpop.f32.mrf.mxu2  ;;  %v622_v39 = vpop.f32.mrf.mxu0 }
  0xf4   : > { %v1217_v38 = vadd.f32 %v1129_v36, %v856_v35  ;;  %v858_v40 = vpop.f32.mrf.mxu1 }
  0xf5   : > { %v859_v46 = vadd.f32 %v858_v40, %v622_v39  ;;  %v416_v39 = vld [vmem:[%s6033_s12 + $0x100] sm:$0xff]  ;;  %v1275_v40 = vld [vmem:[%s6033_s12 + $0x112] sm:$0xff] }
  0xf6   : > { %v6249_v45 = vadd.f32 %v1439_v37, %v1217_v38  ;;  %5317 = vmatmul.msk.f32.gmra.mxu0 %vm459_vm1, %v448_v41  ;;  %5430 = vmatmul.msk.f32.gmra.mxu3 %vm459_vm1, %v1270_v43  ;;  %v453_v38 = vld [vmem:[%s6033_s12 + $0x101] sm:$0xff] }
  0xf7   : > { %5354 = vmatmul.msk.f32.gmra.mxu1 %vm459_vm1, %v411_v42  ;;  %v5515_v42 = vld [vmem:[%s7624_s1 + $0x18] sm:$0xf] }
  0xf8   : > { %5392 = vmatmul.msk.f32.gmra.mxu2 %vm459_vm1, %v1268_v21 }
  0xf9   : > { %v1442_v48 = vpop.f32.mrf.mxu3  ;;  %5516 = vmatpush.msk.msrb.mxu2 %vm568_vm0, %v5515_v42 }
  0xfb   : > { %v1132_v47 = vpop.f32.mrf.mxu2  ;;  %v625_v50 = vpop.f32.mrf.mxu0 }
  0xfc   : > { %v1218_v49 = vadd.f32 %v1132_v47, %v859_v46  ;;  %v861_v51 = vpop.f32.mrf.mxu1  ;;  %v5553_v46 = vld [vmem:[%s7624_s1 + $0x1c] sm:$0xf] }
  0xfd   : > { %v862_v57 = vadd.f32 %v861_v51, %v625_v50  ;;  %5554 = vmatpush.msk.msrb.mxu3 %vm568_vm0, %v5553_v46  ;;  %v1554_v46 = vld [vmem:[%s6033_s12 + $0x1b] sm:$0xff] }
  0xfe   : > { %v6258_v56 = vadd.f32 %v1442_v48, %v1218_v49  ;;  %5318 = vmatmul.msk.f32.gmra.mxu0 %vm459_vm1, %v449_v52  ;;  %5431 = vmatmul.msk.f32.gmra.mxu3 %vm459_vm1, %v1271_v55 }
  0xff   : > { %5355 = vmatmul.msk.f32.gmra.mxu1 %vm459_vm1, %v412_v53  ;;  %v454_v53 = vld [vmem:[%s6033_s12 + $0x109] sm:$0xff] }
 0x100   : > { %5393 = vmatmul.msk.f32.gmra.mxu2 %vm459_vm1, %v1269_v32 }
 0x101   : > { %v1445_v59 = vpop.f32.mrf.mxu3 }
 0x103   : > { %v1135_v58 = vpop.f32.mrf.mxu2  ;;  %v628_v61 = vpop.f32.mrf.mxu0 }
 0x104   : > { %v1219_v60 = vadd.f32 %v1135_v58, %v862_v57  ;;  %v864_v62 = vpop.f32.mrf.mxu1  ;;  %v1276_v57 = vld [vmem:[%s6033_s12 + $0x11a] sm:$0xff] }
 0x105   : > { %v865_v5 = vadd.f32 %v864_v62, %v628_v61 }
 0x106   : > { %v6267_v3 = vadd.f32 %v1445_v59, %v1219_v60  ;;  %5319 = vmatmul.msk.f32.gmra.mxu0 %vm459_vm1, %v450_v63  ;;  %5432 = vmatmul.msk.f32.gmra.mxu3 %vm459_vm1, %v1272_v2 }
 0x107   : > { %5356 = vmatmul.msk.f32.gmra.mxu1 %vm459_vm1, %v413_v1 }
 0x108   : > { %5394 = vmatmul.msk.f32.gmra.mxu2 %vm459_vm1, %v1270_v43  ;;  %v5477_v43 = vld [vmem:[%s7624_s1 + $0x14] sm:$0xf] }
 0x109   : > { %v1448_v7 = vpop.f32.mrf.mxu3  ;;  %5478 = vmatpush.msk.msrb.mxu1 %vm568_vm0, %v5477_v43 }
 0x10b   : > { %v1138_v6 = vpop.f32.mrf.mxu2  ;;  %v631_v9 = vpop.f32.mrf.mxu0 }
 0x10c   : > { %v1220_v8 = vadd.f32 %v1138_v6, %v865_v5  ;;  %v867_v10 = vpop.f32.mrf.mxu1  ;;  %v418_v5 = vld [vmem:[%s6033_s12 + $0x110] sm:$0xff]  ;;  %v1277_v6 = vld [vmem:[%s6033_s12 + $0x122] sm:$0xff] }
 0x10d   : > { %v868_v18 = vadd.f32 %v867_v10, %v631_v9 }
 0x10e   : > { %v6276_v16 = vadd.f32 %v1448_v7, %v1220_v8  ;;  %5320 = vmatmul.msk.f32.gmra.mxu0 %vm459_vm1, %v451_v12  ;;  %5433 = vmatmul.msk.f32.gmra.mxu3 %vm459_vm1, %v1273_v15 }
 0x10f   : > { %5357 = vmatmul.msk.f32.gmra.mxu1 %vm459_vm1, %v414_v13 }
 0x110   : > { %5395 = vmatmul.msk.f32.gmra.mxu2 %vm459_vm1, %v1271_v55  ;;  %v417_v55 = vld [vmem:[%s6033_s12 + $0x108] sm:$0xff] }
 0x111   : > { %v1451_v20 = vpop.f32.mrf.mxu3 }
 0x113   : > { %v1141_v19 = vpop.f32.mrf.mxu2  ;;  %v634_v23 = vpop.f32.mrf.mxu0 }
 0x114   : > { %v1221_v21 = vadd.f32 %v1141_v19, %v868_v18  ;;  %v870_v25 = vpop.f32.mrf.mxu1  ;;  %v419_v18 = vld [vmem:[%s6033_s12 + $0x118] sm:$0xff]  ;;  %v1278_v19 = vld [vmem:[%s6033_s12 + $0x12a] sm:$0xff] }
 0x115   : > { %v871_v30 = vadd.f32 %v870_v25, %v634_v23 }
 0x116   : > { %v6289_v29 = vadd.f32 %v1451_v20, %v1221_v21  ;;  %5321 = vmatmul.msk.f32.gmra.mxu0 %vm459_vm1, %v452_v26  ;;  %5434 = vmatmul.msk.f32.gmra.mxu3 %vm459_vm1, %v1274_v28 }
 0x117   : > { %5358 = vmatmul.msk.f32.gmra.mxu1 %vm459_vm1, %v415_v27 }
 0x118   : > { %5396 = vmatmul.msk.f32.gmra.mxu2 %vm459_vm1, %v1272_v2  ;;  %v455_v2 = vld [vmem:[%s6033_s12 + $0x111] sm:$0xff] }
 0x119   : > { %v1454_v32 = vpop.f32.mrf.mxu3 }
 0x11b   : > { %v1144_v31 = vpop.f32.mrf.mxu2  ;;  %v637_v36 = vpop.f32.mrf.mxu0 }
 0x11c   : > { %v1222_v35 = vadd.f32 %v1144_v31, %v871_v30  ;;  %v873_v37 = vpop.f32.mrf.mxu1  ;;  %v1553_v30 = vld [vmem:[%s6033_s12 + $0x13] sm:$0xff] }
 0x11d   : > { %v874_v47 = vadd.f32 %v873_v37, %v637_v36  ;;  %v1863_v31 = vld [vmem:[%s6033_s12 + $0x14] sm:$0xff] }
 0x11e   : > { %v6298_v41 = vadd.f32 %v1454_v32, %v1222_v35  ;;  %5322 = vmatmul.msk.f32.gmra.mxu0 %vm459_vm1, %v453_v38  ;;  %5435 = vmatmul.msk.f32.gmra.mxu3 %vm459_vm1, %v1275_v40  ;;  %v2173_v32 = vld [vmem:[%s6033_s12 + $0x24] sm:$0xff] }
 0x11f   : > { %5359 = vmatmul.msk.f32.gmra.mxu1 %vm459_vm1, %v416_v39  ;;  %v2483_v35 = vld [vmem:[%s6033_s12 + $0x25] sm:$0xff] }
 0x120   : > { %5397 = vmatmul.msk.f32.gmra.mxu2 %vm459_vm1, %v1273_v15 }
 0x121   : > { %v1457_v49 = vpop.f32.mrf.mxu3 }
 0x123   : > { %v1147_v48 = vpop.f32.mrf.mxu2  ;;  %v640_v51 = vpop.f32.mrf.mxu0 }
 0x124   : > { %v1223_v50 = vadd.f32 %v1147_v48, %v874_v47  ;;  %v876_v52 = vpop.f32.mrf.mxu1  ;;  %v1864_v47 = vld [vmem:[%s6033_s12 + $0x1c] sm:$0xff]  ;;  %v2174_v48 = vld [vmem:[%s6033_s12 + $0x2c] sm:$0xff] }
 0x125   : > { %v877_v59 = vadd.f32 %v876_v52, %v640_v51 }
 0x126   : > { %v6319_v58 = vadd.f32 %v1457_v49, %v1223_v50  ;;  %5323 = vmatmul.msk.f32.gmra.mxu0 %vm459_vm1, %v454_v53  ;;  %5436 = vmatmul.msk.f32.gmra.mxu3 %vm459_vm1, %v1276_v57  ;;  %v2484_v49 = vld [vmem:[%s6033_s12 + $0x2d] sm:$0xff] }
 0x127   : > { %5360 = vmatmul.msk.f32.gmra.mxu1 %vm459_vm1, %v417_v55 }
 0x128   : > { %5398 = vmatmul.msk.f32.gmra.mxu2 %vm459_vm1, %v1274_v28 }
 0x129   : > { %v1460_v61 = vpop.f32.mrf.mxu3 }
 0x12b   : > { %v1150_v60 = vpop.f32.mrf.mxu2  ;;  %v643_v63 = vpop.f32.mrf.mxu0 }
 0x12c   : > { %v1224_v62 = vadd.f32 %v1150_v60, %v877_v59  ;;  %v879_v1 = vpop.f32.mrf.mxu1  ;;  %v1555_v60 = vld [vmem:[%s6033_s12 + $0x23] sm:$0xff] }
 0x12d   : > { %v880_v8 = vadd.f32 %v879_v1, %v643_v63 }
 0x12e   : > { %v6328_v7 = vadd.f32 %v1460_v61, %v1224_v62  ;;  %5324 = vmatmul.msk.f32.gmra.mxu0 %vm459_vm1, %v455_v2  ;;  %5437 = vmatmul.msk.f32.gmra.mxu3 %vm459_vm1, %v1277_v6  ;;  %v2175_v61 = vld [vmem:[%s6033_s12 + $0x34] sm:$0xff] }
 0x12f   : > { %5361 = vmatmul.msk.f32.gmra.mxu1 %vm459_vm1, %v418_v5  ;;  %v2485_v62 = vld [vmem:[%s6033_s12 + $0x35] sm:$0xff] }
 0x130   : > { %5399 = vmatmul.msk.f32.gmra.mxu2 %vm459_vm1, %v1275_v40 }
 0x131   : > { %v1463_v10 = vpop.f32.mrf.mxu3 }
 0x133   : > { %v1153_v9 = vpop.f32.mrf.mxu2  ;;  %v646_v13 = vpop.f32.mrf.mxu0 }
 0x134   : > { %v1225_v12 = vadd.f32 %v1153_v9, %v880_v8  ;;  %v882_v15 = vpop.f32.mrf.mxu1 }
 0x135   : > { %v883_v21 = vadd.f32 %v882_v15, %v646_v13  ;;  %v2486_v13 = vld [vmem:[%s6033_s12 + $0x3d] sm:$0xff] }
 0x136   : > { %v6337_v20 = vadd.f32 %v1463_v10, %v1225_v12  ;;  %5325 = vmatmul.msk.f32.gmra.mxu0 %vm459_vm1, %v456_v17  ;;  %5438 = vmatmul.msk.f32.gmra.mxu3 %vm459_vm1, %v1278_v19  ;;  %v1556_v10 = vld [vmem:[%s6033_s12 + $0x2b] sm:$0xff]  ;;  %v2176_v12 = vld [vmem:[%s6033_s12 + $0x3c] sm:$0xff] }
 0x137   : > { %5362 = vmatmul.msk.f32.gmra.mxu1 %vm459_vm1, %v419_v18 }
 0x138   : > { %5400 = vmatmul.msk.f32.gmra.mxu2 %vm459_vm1, %v1276_v57 }
 0x139   : > { %v1466_v25 = vpop.f32.mrf.mxu3 }
 0x13b   : > { %v1156_v23 = vpop.f32.mrf.mxu2  ;;  %v649_v27 = vpop.f32.mrf.mxu0 }
 0x13c   : > { %v1226_v26 = vadd.f32 %v1156_v23, %v883_v21  ;;  %v885_v28 = vpop.f32.mrf.mxu1 }
 0x13d   : > { %v886_v37 = vadd.f32 %v885_v28, %v649_v27  ;;  %v2177_v27 = vld [vmem:[%s6033_s12 + $0x44] sm:$0xff] }
 0x13e   : > { %v6347_v36 = vadd.f32 %v1466_v25, %v1226_v26  ;;  %5441 = vmatmul.msk.f32.vlgmr.msrb.gmra.mxu0 %vm459_vm1, %v1553_v30  ;;  %5555 = vmatmul.msk.f32.vlgmr.msrb.gmra.mxu3 %vm459_vm1, %v2483_v35  ;;  %v1557_v26 = vld [vmem:[%s6033_s12 + $0x33] sm:$0xff]  ;;  %v2487_v28 = vld [vmem:[%s6033_s12 + $0x45] sm:$0xff] }
 0x13f   : > { %5479 = vmatmul.msk.f32.vlgmr.msrb.gmra.mxu1 %vm459_vm1, %v1863_v31 }
 0x140   : > { %5517 = vmatmul.msk.f32.vlgmr.msrb.gmra.mxu2 %vm459_vm1, %v2173_v32 }
 0x141   : > { %v1469_v39 = vpop.f32.mrf.mxu3 }
 0x143   : > { %v1159_v38 = vpop.f32.mrf.mxu2  ;;  %v652_v42 = vpop.f32.mrf.mxu0 }
 0x144   : > { %v1227_v40 = vadd.f32 %v1159_v38, %v886_v37  ;;  %v888_v43 = vpop.f32.mrf.mxu1 }
 0x145   : > { %v889_v51 = vadd.f32 %v888_v43, %v652_v42  ;;  %v2178_v42 = vld [vmem:[%s6033_s12 + $0x4c] sm:$0xff] }
 0x146   : > { %v6357_v50 = vadd.f32 %v1469_v39, %v1227_v40  ;;  %5442 = vmatmul.msk.f32.gmra.mxu0 %vm459_vm1, %v1554_v46  ;;  %5556 = vmatmul.msk.f32.gmra.mxu3 %vm459_vm1, %v2484_v49  ;;  %v1558_v40 = vld [vmem:[%s6033_s12 + $0x3b] sm:$0xff]  ;;  %v2488_v43 = vld [vmem:[%s6033_s12 + $0x4d] sm:$0xff] }
 0x147   : > { %5480 = vmatmul.msk.f32.gmra.mxu1 %vm459_vm1, %v1864_v47 }
 0x148   : > { %5518 = vmatmul.msk.f32.gmra.mxu2 %vm459_vm1, %v2174_v48 }
 0x149   : > { %v1472_v53 = vpop.f32.mrf.mxu3 }
 0x14b   : > { %v1162_v52 = vpop.f32.mrf.mxu2  ;;  %v655_v57 = vpop.f32.mrf.mxu0 }
 0x14c   : > { %v1228_v55 = vadd.f32 %v1162_v52, %v889_v51  ;;  %v891_v59 = vpop.f32.mrf.mxu1 }
 0x14d   : > { %v892_v1 = vadd.f32 %v891_v59, %v655_v57  ;;  %v2179_v57 = vld [vmem:[%s6033_s12 + $0x54] sm:$0xff] }
 0x14e   : > { %v6366_v63 = vadd.f32 %v1472_v53, %v1228_v55  ;;  %5443 = vmatmul.msk.f32.gmra.mxu0 %vm459_vm1, %v1555_v60  ;;  %5557 = vmatmul.msk.f32.gmra.mxu3 %vm459_vm1, %v2485_v62  ;;  %v1559_v55 = vld [vmem:[%s6033_s12 + $0x43] sm:$0xff]  ;;  %v2489_v59 = vld [vmem:[%s6033_s12 + $0x55] sm:$0xff] }
 0x14f   : > { %5481 = vmatmul.msk.f32.gmra.mxu1 %vm459_vm1, %v2173_v32 }
 0x150   : > { %5519 = vmatmul.msk.f32.gmra.mxu2 %vm459_vm1, %v2175_v61 }
 0x151   : > { %v1475_v5 = vpop.f32.mrf.mxu3 }
 0x153   : > { %v1165_v2 = vpop.f32.mrf.mxu2  ;;  %v658_v8 = vpop.f32.mrf.mxu0 }
 0x154   : > { %v1229_v6 = vadd.f32 %v1165_v2, %v892_v1  ;;  %v894_v9 = vpop.f32.mrf.mxu1 }
 0x155   : > { %v895_v17 = vadd.f32 %v894_v9, %v658_v8  ;;  %v1560_v8 = vld [vmem:[%s6033_s12 + $0x4b] sm:$0xff]  ;;  %v2180_v9 = vld [vmem:[%s6033_s12 + $0x5c] sm:$0xff] }
 0x156   : > { %v6375_v15 = vadd.f32 %v1475_v5, %v1229_v6  ;;  %5444 = vmatmul.msk.f32.gmra.mxu0 %vm459_vm1, %v1556_v10  ;;  %5558 = vmatmul.msk.f32.gmra.mxu3 %vm459_vm1, %v2486_v13  ;;  %v2490_v10 = vld [vmem:[%s6033_s12 + $0x5d] sm:$0xff] }
 0x157   : > { %5482 = vmatmul.msk.f32.gmra.mxu1 %vm459_vm1, %v2174_v48 }
 0x158   : > { %5520 = vmatmul.msk.f32.gmra.mxu2 %vm459_vm1, %v2176_v12 }
 0x159   : > { %v1478_v19 = vpop.f32.mrf.mxu3 }
 0x15b   : > { %v1168_v18 = vpop.f32.mrf.mxu2  ;;  %v661_v23 = vpop.f32.mrf.mxu0 }
 0x15c   : > { %v1230_v21 = vadd.f32 %v1168_v18, %v895_v17  ;;  %v897_v25 = vpop.f32.mrf.mxu1 }
 0x15d   : > { %v898_v31 = vadd.f32 %v897_v25, %v661_v23  ;;  %v1561_v25 = vld [vmem:[%s6033_s12 + $0x53] sm:$0xff] }
 0x15e   : > { %v6384_v30 = vadd.f32 %v1478_v19, %v1230_v21  ;;  %5445 = vmatmul.msk.f32.gmra.mxu0 %vm459_vm1, %v1557_v26  ;;  %5559 = vmatmul.msk.f32.gmra.mxu3 %vm459_vm1, %v2487_v28  ;;  %v2181_v26 = vld [vmem:[%s6033_s12 + $0x64] sm:$0xff] }
 0x15f   : > { %5483 = vmatmul.msk.f32.gmra.mxu1 %vm459_vm1, %v2175_v61 }
 0x160   : > { %5521 = vmatmul.msk.f32.gmra.mxu2 %vm459_vm1, %v2177_v27 }
 0x161   : > { %v1481_v35 = vpop.f32.mrf.mxu3 }
 0x163   : > { %v1171_v32 = vpop.f32.mrf.mxu2  ;;  %v664_v38 = vpop.f32.mrf.mxu0 }
 0x164   : > { %v1231_v37 = vadd.f32 %v1171_v32, %v898_v31  ;;  %v900_v39 = vpop.f32.mrf.mxu1 }
 0x165   : > { %v901_v47 = vadd.f32 %v900_v39, %v664_v38 }
 0x166   : > { %v6393_v46 = vadd.f32 %v1481_v35, %v1231_v37  ;;  %5446 = vmatmul.msk.f32.gmra.mxu0 %vm459_vm1, %v1558_v40  ;;  %5560 = vmatmul.msk.f32.gmra.mxu3 %vm459_vm1, %v2488_v43  ;;  %v1562_v40 = vld [vmem:[%s6033_s12 + $0x5b] sm:$0xff]  ;;  %v2492_v43 = vld [vmem:[%s6033_s12 + $0x6d] sm:$0xff] }
 0x167   : > { %5484 = vmatmul.msk.f32.gmra.mxu1 %vm459_vm1, %v2176_v12 }
 0x168   : > { %5522 = vmatmul.msk.f32.gmra.mxu2 %vm459_vm1, %v2178_v42 }
 0x169   : > { %v1484_v49 = vpop.f32.mrf.mxu3 }
 0x16b   : > { %v1174_v48 = vpop.f32.mrf.mxu2  ;;  %v667_v52 = vpop.f32.mrf.mxu0 }
 0x16c   : > { %v1232_v51 = vadd.f32 %v1174_v48, %v901_v47  ;;  %v903_v53 = vpop.f32.mrf.mxu1 }
 0x16d   : > { %v904_v61 = vadd.f32 %v903_v53, %v667_v52 }
 0x16e   : > { %v6402_v60 = vadd.f32 %v1484_v49, %v1232_v51  ;;  %5447 = vmatmul.msk.f32.gmra.mxu0 %vm459_vm1, %v1559_v55  ;;  %5561 = vmatmul.msk.f32.gmra.mxu3 %vm459_vm1, %v2489_v59  ;;  %v2183_v59 = vld [vmem:[%s6033_s12 + $0x74] sm:$0xff] }
 0x16f   : > { %5485 = vmatmul.msk.f32.gmra.mxu1 %vm459_vm1, %v2177_v27  ;;  %v2491_v27 = vld [vmem:[%s6033_s12 + $0x65] sm:$0xff] }
 0x170   : > { %5523 = vmatmul.msk.f32.gmra.mxu2 %vm459_vm1, %v2179_v57 }
 0x171   : > { %v1487_v1 = vpop.f32.mrf.mxu3 }
 0x173   : > { %v1177_v62 = vpop.f32.mrf.mxu2  ;;  %v670_v5 = vpop.f32.mrf.mxu0 }
 0x174   : > { %v1233_v2 = vadd.f32 %v1177_v62, %v904_v61  ;;  %v906_v6 = vpop.f32.mrf.mxu1  ;;  %v2493_v61 = vld [vmem:[%s6033_s12 + $0x75] sm:$0xff] }
 0x175   : > { %v907_v13 = vadd.f32 %v906_v6, %v670_v5 }
 0x176   : > { %v6411_v12 = vadd.f32 %v1487_v1, %v1233_v2  ;;  %5448 = vmatmul.msk.f32.gmra.mxu0 %vm459_vm1, %v1560_v8  ;;  %5562 = vmatmul.msk.f32.gmra.mxu3 %vm459_vm1, %v2490_v10  ;;  %v1564_v10 = vld [vmem:[%s6033_s12 + $0x6b] sm:$0xff] }
 0x177   : > { %5486 = vmatmul.msk.f32.gmra.mxu1 %vm459_vm1, %v2178_v42  ;;  %v2182_v42 = vld [vmem:[%s6033_s12 + $0x6c] sm:$0xff] }
 0x178   : > { %5524 = vmatmul.msk.f32.gmra.mxu2 %vm459_vm1, %v2180_v9 }
 0x179   : > { %v1490_v18 = vpop.f32.mrf.mxu3 }
 0x17b   : > { %v1180_v17 = vpop.f32.mrf.mxu2  ;;  %v673_v21 = vpop.f32.mrf.mxu0 }
 0x17c   : > { %v1234_v19 = vadd.f32 %v1180_v17, %v907_v13  ;;  %v909_v23 = vpop.f32.mrf.mxu1  ;;  %v2184_v13 = vld [vmem:[%s6033_s12 + $0x7c] sm:$0xff] }
 0x17d   : > { %v910_v31 = vadd.f32 %v909_v23, %v673_v21  ;;  %v2494_v17 = vld [vmem:[%s6033_s12 + $0x7d] sm:$0xff] }
 0x17e   : > { %v6420_v28 = vadd.f32 %v1490_v18, %v1234_v19  ;;  %5449 = vmatmul.msk.f32.gmra.mxu0 %vm459_vm1, %v1561_v25  ;;  %5563 = vmatmul.msk.f32.gmra.mxu3 %vm459_vm1, %v2491_v27 }
 0x17f   : > { %5487 = vmatmul.msk.f32.gmra.mxu1 %vm459_vm1, %v2179_v57  ;;  %v1563_v57 = vld [vmem:[%s6033_s12 + $0x63] sm:$0xff] }
 0x180   : > { %5525 = vmatmul.msk.f32.gmra.mxu2 %vm459_vm1, %v2181_v26 }
 0x181   : > { %v1493_v35 = vpop.f32.mrf.mxu3 }
 0x183   : > { %v1183_v32 = vpop.f32.mrf.mxu2  ;;  %v676_v38 = vpop.f32.mrf.mxu0 }
 0x184   : > { %v1235_v37 = vadd.f32 %v1183_v32, %v910_v31  ;;  %v912_v39 = vpop.f32.mrf.mxu1  ;;  %v1565_v31 = vld [vmem:[%s6033_s12 + $0x73] sm:$0xff]  ;;  %v2185_v32 = vld [vmem:[%s6033_s12 + $0x84] sm:$0xff] }
 0x185   : > { %v913_v48 = vadd.f32 %v912_v39, %v676_v38 }
 0x186   : > { %v6429_v47 = vadd.f32 %v1493_v35, %v1235_v37  ;;  %5450 = vmatmul.msk.f32.gmra.mxu0 %vm459_vm1, %v1562_v40  ;;  %5564 = vmatmul.msk.f32.gmra.mxu3 %vm459_vm1, %v2492_v43  ;;  %v2495_v35 = vld [vmem:[%s6033_s12 + $0x85] sm:$0xff] }
 0x187   : > { %5488 = vmatmul.msk.f32.gmra.mxu1 %vm459_vm1, %v2180_v9 }
 0x188   : > { %5526 = vmatmul.msk.f32.gmra.mxu2 %vm459_vm1, %v2182_v42 }
 0x189   : > { %v1496_v51 = vpop.f32.mrf.mxu3 }
 0x18b   : > { %v1186_v49 = vpop.f32.mrf.mxu2  ;;  %v679_v53 = vpop.f32.mrf.mxu0 }
 0x18c   : > { %v1236_v52 = vadd.f32 %v1186_v49, %v913_v48  ;;  %v915_v55 = vpop.f32.mrf.mxu1  ;;  %v1566_v49 = vld [vmem:[%s6033_s12 + $0x7b] sm:$0xff] }
 0x18d   : > { %v916_v1 = vadd.f32 %v915_v55, %v679_v53 }
 0x18e   : > { %v6438_v62 = vadd.f32 %v1496_v51, %v1236_v52  ;;  %5451 = vmatmul.msk.f32.gmra.mxu0 %vm459_vm1, %v1563_v57  ;;  %5565 = vmatmul.msk.f32.gmra.mxu3 %vm459_vm1, %v2493_v61  ;;  %v2186_v51 = vld [vmem:[%s6033_s12 + $0x8c] sm:$0xff] }
 0x18f   : > { %5489 = vmatmul.msk.f32.gmra.mxu1 %vm459_vm1, %v2181_v26  ;;  %v2496_v52 = vld [vmem:[%s6033_s12 + $0x8d] sm:$0xff] }
 0x190   : > { %5527 = vmatmul.msk.f32.gmra.mxu2 %vm459_vm1, %v2183_v59 }
 0x191   : > { %v1499_v5 = vpop.f32.mrf.mxu3 }
 0x193   : > { %v1189_v2 = vpop.f32.mrf.mxu2  ;;  %v682_v8 = vpop.f32.mrf.mxu0 }
 0x194   : > { %v1237_v6 = vadd.f32 %v1189_v2, %v916_v1  ;;  %v918_v9 = vpop.f32.mrf.mxu1 }
 0x195   : > { %v919_v19 = vadd.f32 %v918_v9, %v682_v8  ;;  %v2497_v8 = vld [vmem:[%s6033_s12 + $0x95] sm:$0xff] }
 0x196   : > { %v6447_v18 = vadd.f32 %v1499_v5, %v1237_v6  ;;  %5452 = vmatmul.msk.f32.gmra.mxu0 %vm459_vm1, %v1564_v10  ;;  %5566 = vmatmul.msk.f32.gmra.mxu3 %vm459_vm1, %v2494_v17  ;;  %v1567_v5 = vld [vmem:[%s6033_s12 + $0x83] sm:$0xff]  ;;  %v2187_v6 = vld [vmem:[%s6033_s12 + $0x94] sm:$0xff] }
 0x197   : > { %5490 = vmatmul.msk.f32.gmra.mxu1 %vm459_vm1, %v2182_v42 }
 0x198   : > { %7639 = vst [vmem:[#allocation9_spill] sm:$0xff] %v6447_v18  ;;  %5528 = vmatmul.msk.f32.gmra.mxu2 %vm459_vm1, %v2184_v13 }
 0x199   : > { %v1502_v23 = vpop.f32.mrf.mxu3 }
 0x19b   : > { %v1192_v21 = vpop.f32.mrf.mxu2  ;;  %v685_v26 = vpop.f32.mrf.mxu0 }
 0x19c   : > { %v1238_v25 = vadd.f32 %v1192_v21, %v919_v19  ;;  %v921_v27 = vpop.f32.mrf.mxu1 }
 0x19d   : > { %v922_v38 = vadd.f32 %v921_v27, %v685_v26  ;;  %v2188_v26 = vld [vmem:[%s6033_s12 + $0x9c] sm:$0xff] }
 0x19e   : > { %v6456_v37 = vadd.f32 %v1502_v23, %v1238_v25  ;;  %5453 = vmatmul.msk.f32.gmra.mxu0 %vm459_vm1, %v1565_v31  ;;  %5567 = vmatmul.msk.f32.gmra.mxu3 %vm459_vm1, %v2495_v35  ;;  %v1568_v25 = vld [vmem:[%s6033_s12 + $0x8b] sm:$0xff]  ;;  %v2498_v27 = vld [vmem:[%s6033_s12 + $0x9d] sm:$0xff] }
 0x19f   : > { %5491 = vmatmul.msk.f32.gmra.mxu1 %vm459_vm1, %v2183_v59 }
 0x1a0   : > { %7640 = vst [vmem:[#allocation10_spill] sm:$0xff] %v6456_v37  ;;  %5529 = vmatmul.msk.f32.gmra.mxu2 %vm459_vm1, %v2185_v32 }
 0x1a1   : > { %v1505_v40 = vpop.f32.mrf.mxu3 }
 0x1a3   : > { %v1195_v39 = vpop.f32.mrf.mxu2  ;;  %v688_v43 = vpop.f32.mrf.mxu0 }
 0x1a4   : > { %v1239_v42 = vadd.f32 %v1195_v39, %v922_v38  ;;  %v924_v48 = vpop.f32.mrf.mxu1 }
 0x1a5   : > { %v925_v55 = vadd.f32 %v924_v48, %v688_v43  ;;  %v1569_v43 = vld [vmem:[%s6033_s12 + $0x93] sm:$0xff] }
 0x1a6   : > { %v6465_v53 = vadd.f32 %v1505_v40, %v1239_v42  ;;  %5454 = vmatmul.msk.f32.gmra.mxu0 %vm459_vm1, %v1566_v49  ;;  %5568 = vmatmul.msk.f32.gmra.mxu3 %vm459_vm1, %v2496_v52  ;;  %v2189_v49 = vld [vmem:[%s6033_s12 + $0xa4] sm:$0xff] }
 0x1a7   : > { %5492 = vmatmul.msk.f32.gmra.mxu1 %vm459_vm1, %v2184_v13  ;;  %v2499_v52 = vld [vmem:[%s6033_s12 + $0xa5] sm:$0xff] }
 0x1a8   : > { %7641 = vst [vmem:[#allocation11_spill] sm:$0xff] %v6465_v53  ;;  %5530 = vmatmul.msk.f32.gmra.mxu2 %vm459_vm1, %v2186_v51 }
 0x1a9   : > { %v1508_v59 = vpop.f32.mrf.mxu3 }
 0x1ab   : > { %v1198_v57 = vpop.f32.mrf.mxu2  ;;  %v691_v1 = vpop.f32.mrf.mxu0 }
 0x1ac   : > { %v1240_v61 = vadd.f32 %v1198_v57, %v925_v55  ;;  %v927_v2 = vpop.f32.mrf.mxu1 }
 0x1ad   : > { %v928_v10 = vadd.f32 %v927_v2, %v691_v1  ;;  %v1570_v2 = vld [vmem:[%s6033_s12 + $0x9b] sm:$0xff] }
 0x1ae   : > { %v6474_v9 = vadd.f32 %v1508_v59, %v1240_v61  ;;  %5455 = vmatmul.msk.f32.gmra.mxu0 %vm459_vm1, %v1567_v5  ;;  %5569 = vmatmul.msk.f32.gmra.mxu3 %vm459_vm1, %v2497_v8  ;;  %v2190_v8 = vld [vmem:[%s6033_s12 + $0xac] sm:$0xff] }
 0x1af   : > { %5493 = vmatmul.msk.f32.gmra.mxu1 %vm459_vm1, %v2185_v32 }
 0x1b0   : > { %7642 = vst [vmem:[#allocation12_spill] sm:$0xff] %v6474_v9  ;;  %5531 = vmatmul.msk.f32.gmra.mxu2 %vm459_vm1, %v2187_v6 }
 0x1b1   : > { %v1511_v17 = vpop.f32.mrf.mxu3 }
 0x1b3   : > { %v1201_v13 = vpop.f32.mrf.mxu2  ;;  %v694_v21 = vpop.f32.mrf.mxu0 }
 0x1b4   : > { %v1241_v19 = vadd.f32 %v1201_v13, %v928_v10  ;;  %v930_v23 = vpop.f32.mrf.mxu1  ;;  %v2500_v10 = vld [vmem:[%s6033_s12 + $0xad] sm:$0xff] }
 0x1b5   : > { %v931_v32 = vadd.f32 %v930_v23, %v694_v21 }
 0x1b6   : > { %v6483_v31 = vadd.f32 %v1511_v17, %v1241_v19  ;;  %5456 = vmatmul.msk.f32.gmra.mxu0 %vm459_vm1, %v1568_v25  ;;  %5570 = vmatmul.msk.f32.gmra.mxu3 %vm459_vm1, %v2498_v27  ;;  %v1571_v25 = vld [vmem:[%s6033_s12 + $0xa3] sm:$0xff] }
 0x1b7   : > { %5494 = vmatmul.msk.f32.gmra.mxu1 %vm459_vm1, %v2186_v51 }
 0x1b8   : > { %7643 = vst [vmem:[#allocation13_spill] sm:$0xff] %v6483_v31  ;;  %5532 = vmatmul.msk.f32.gmra.mxu2 %vm459_vm1, %v2188_v26  ;;  %v2809_v31 = vld [vmem:[%s6033_s12 + $0xa6] sm:$0xff] }
 0x1b9   : > { %v1514_v38 = vpop.f32.mrf.mxu3 }
 0x1bb   : > { %v1204_v35 = vpop.f32.mrf.mxu2  ;;  %v1719_v40 = vpop.f32.mrf.mxu0 }
 0x1bc   : > { %v1242_v39 = vadd.f32 %v1204_v35, %v931_v32  ;;  %v2029_v42 = vpop.f32.mrf.mxu1  ;;  %v1827_v48 = vadd.f32 %v1719_v40, %v6159_v4  ;;  %v2191_v32 = vld [vmem:[%s6033_s12 + $0xb4] sm:$0xff] }
 0x1bd   : > { %v2501_v35 = vld [vmem:[%s6033_s12 + $0xb5] sm:$0xff] }
 0x1be   : > { %v6493_v55 = vadd.f32 %v1514_v38, %v1242_v39  ;;  %v2137_v51 = vadd.f32 %v2029_v42, %v1827_v48  ;;  %5457 = vmatmul.msk.f32.gmra.mxu0 %vm459_vm1, %v1569_v43  ;;  %5571 = vmatmul.msk.f32.gmra.mxu3 %vm459_vm1, %v2499_v52  ;;  %v1572_v48 = vld [vmem:[%s6033_s12 + $0xab] sm:$0xff] }
 0x1bf   : > { %5495 = vmatmul.msk.f32.gmra.mxu1 %vm459_vm1, %v2187_v6 }
 0x1c0   : > { %7644 = vst [vmem:[#allocation14_spill] sm:$0xff] %v6493_v55  ;;  %5533 = vmatmul.msk.f32.gmra.mxu2 %vm459_vm1, %v2189_v49  ;;  %v2808_v55 = vld [vmem:[%s6033_s12 + $0x9e] sm:$0xff] }
 0x1c1   : > { %v2649_v59 = vpop.f32.mrf.mxu3 }
 0x1c3   : > { %v2339_v57 = vpop.f32.mrf.mxu2  ;;  %v1722_v1 = vpop.f32.mrf.mxu0 }
 0x1c4   : > { %v2447_v61 = vadd.f32 %v2339_v57, %v2137_v51  ;;  %v2032_v4 = vpop.f32.mrf.mxu1  ;;  %v1828_v5 = vadd.f32 %v1722_v1, %v6168_v14  ;;  %v2192_v51 = vld [vmem:[%s6033_s12 + $0xbc] sm:$0xff] }
 0x1c5   : > { %v2502_v57 = vld [vmem:[%s6033_s12 + $0xbd] sm:$0xff] }
 0x1c6   : > { %v6503_v13 = vadd.f32 %v2649_v59, %v2447_v61  ;;  %v2138_v6 = vadd.f32 %v2032_v4, %v1828_v5  ;;  %5458 = vmatmul.msk.f32.gmra.mxu0 %vm459_vm1, %v1570_v2  ;;  %5572 = vmatmul.msk.f32.gmra.mxu3 %vm459_vm1, %v2500_v10  ;;  %v1573_v5 = vld [vmem:[%s6033_s12 + $0xb3] sm:$0xff] }
 0x1c7   : > { %5496 = vmatmul.msk.f32.gmra.mxu1 %vm459_vm1, %v2188_v26 }
 0x1c8   : > { %5534 = vmatmul.msk.f32.gmra.mxu2 %vm459_vm1, %v2190_v8 }
 0x1c9   : > { %v2652_v19 = vpop.f32.mrf.mxu3 }
 0x1cb   : > { %v2342_v17 = vpop.f32.mrf.mxu2  ;;  %v1725_v23 = vpop.f32.mrf.mxu0 }
 0x1cc   : > { %v2448_v21 = vadd.f32 %v2342_v17, %v2138_v6  ;;  %v2035_v14 = vpop.f32.mrf.mxu1  ;;  %v1829_v27 = vadd.f32 %v1725_v23, %v6177_v24  ;;  %v2193_v6 = vld [vmem:[%s6033_s12 + $0xc4] sm:$0xff] }
 0x1cd   : > { %v2503_v17 = vld [vmem:[%s6033_s12 + $0xc5] sm:$0xff] }
 0x1ce   : > { %v6513_v38 = vadd.f32 %v2652_v19, %v2448_v21  ;;  %v2139_v26 = vadd.f32 %v2035_v14, %v1829_v27  ;;  %5459 = vmatmul.msk.f32.gmra.mxu0 %vm459_vm1, %v1571_v25  ;;  %5573 = vmatmul.msk.f32.gmra.mxu3 %vm459_vm1, %v2501_v35  ;;  %v1574_v27 = vld [vmem:[%s6033_s12 + $0xbb] sm:$0xff] }
 0x1cf   : > { %5497 = vmatmul.msk.f32.gmra.mxu1 %vm459_vm1, %v2189_v49 }
 0x1d0   : > { %5535 = vmatmul.msk.f32.gmra.mxu2 %vm459_vm1, %v2191_v32 }
 0x1d1   : > { %v2655_v40 = vpop.f32.mrf.mxu3 }
 0x1d3   : > { %v2345_v39 = vpop.f32.mrf.mxu2  ;;  %v1728_v43 = vpop.f32.mrf.mxu0 }
 0x1d4   : > { %v2449_v42 = vadd.f32 %v2345_v39, %v2139_v26  ;;  %v2038_v24 = vpop.f32.mrf.mxu1  ;;  %v1830_v52 = vadd.f32 %v1728_v43, %v6186_v34  ;;  %v2194_v26 = vld [vmem:[%s6033_s12 + $0xcc] sm:$0xff] }
 0x1d5   : > { %v2504_v39 = vld [vmem:[%s6033_s12 + $0xcd] sm:$0xff] }
 0x1d6   : > { %v6523_v59 = vadd.f32 %v2655_v40, %v2449_v42  ;;  %v2140_v49 = vadd.f32 %v2038_v24, %v1830_v52  ;;  %5460 = vmatmul.msk.f32.gmra.mxu0 %vm459_vm1, %v1572_v48  ;;  %5574 = vmatmul.msk.f32.gmra.mxu3 %vm459_vm1, %v2502_v57  ;;  %v1575_v52 = vld [vmem:[%s6033_s12 + $0xc3] sm:$0xff] }
 0x1d7   : > { %5498 = vmatmul.msk.f32.gmra.mxu1 %vm459_vm1, %v2190_v8 }
 0x1d8   : > { %5536 = vmatmul.msk.f32.gmra.mxu2 %vm459_vm1, %v2192_v51 }
 0x1d9   : > { %v2658_v1 = vpop.f32.mrf.mxu3 }
 0x1db   : > { %v2348_v61 = vpop.f32.mrf.mxu2  ;;  %v1731_v2 = vpop.f32.mrf.mxu0 }
 0x1dc   : > { %v2450_v4 = vadd.f32 %v2348_v61, %v2140_v49  ;;  %v2041_v34 = vpop.f32.mrf.mxu1  ;;  %v1831_v10 = vadd.f32 %v1731_v2, %v6195_v44  ;;  %v2195_v49 = vld [vmem:[%s6033_s12 + $0xd4] sm:$0xff] }
 0x1dd   : > { %v2505_v61 = vld [vmem:[%s6033_s12 + $0xd5] sm:$0xff] }
 0x1de   : > { %v6533_v19 = vadd.f32 %v2658_v1, %v2450_v4  ;;  %v2141_v8 = vadd.f32 %v2041_v34, %v1831_v10  ;;  %5461 = vmatmul.msk.f32.gmra.mxu0 %vm459_vm1, %v1573_v5  ;;  %5575 = vmatmul.msk.f32.gmra.mxu3 %vm459_vm1, %v2503_v17  ;;  %v1576_v10 = vld [vmem:[%s6033_s12 + $0xcb] sm:$0xff] }
 0x1df   : > { %5499 = vmatmul.msk.f32.gmra.mxu1 %vm459_vm1, %v2191_v32 }
 0x1e0   : > { %5537 = vmatmul.msk.f32.gmra.mxu2 %vm459_vm1, %v2193_v6 }
 0x1e1   : > { %v2661_v23 = vpop.f32.mrf.mxu3 }
 0x1e3   : > { %v2351_v21 = vpop.f32.mrf.mxu2  ;;  %v1734_v25 = vpop.f32.mrf.mxu0 }
 0x1e4   : > { %v2451_v14 = vadd.f32 %v2351_v21, %v2141_v8  ;;  %v2044_v44 = vpop.f32.mrf.mxu1  ;;  %v1832_v35 = vadd.f32 %v1734_v25, %v6204_v54  ;;  %v2196_v8 = vld [vmem:[%s6033_s12 + $0xdc] sm:$0xff] }
 0x1e5   : > { %v2506_v21 = vld [vmem:[%s6033_s12 + $0xdd] sm:$0xff] }
 0x1e6   : > { %v6543_v40 = vadd.f32 %v2661_v23, %v2451_v14  ;;  %v2142_v32 = vadd.f32 %v2044_v44, %v1832_v35  ;;  %5462 = vmatmul.msk.f32.gmra.mxu0 %vm459_vm1, %v1574_v27  ;;  %5576 = vmatmul.msk.f32.gmra.mxu3 %vm459_vm1, %v2504_v39  ;;  %v1577_v35 = vld [vmem:[%s6033_s12 + $0xd3] sm:$0xff] }
 0x1e7   : > { %5500 = vmatmul.msk.f32.gmra.mxu1 %vm459_vm1, %v2192_v51 }
 0x1e8   : > { %5538 = vmatmul.msk.f32.gmra.mxu2 %vm459_vm1, %v2194_v26 }
 0x1e9   : > { %v2664_v43 = vpop.f32.mrf.mxu3 }
 0x1eb   : > { %v2354_v42 = vpop.f32.mrf.mxu2  ;;  %v1737_v48 = vpop.f32.mrf.mxu0 }
 0x1ec   : > { %v2452_v24 = vadd.f32 %v2354_v42, %v2142_v32  ;;  %v2047_v54 = vpop.f32.mrf.mxu1  ;;  %v1833_v57 = vadd.f32 %v1737_v48, %v6213_v0  ;;  %v2197_v32 = vld [vmem:[%s6033_s12 + $0xe4] sm:$0xff] }
 0x1ed   : > { %v2507_v42 = vld [vmem:[%s6033_s12 + $0xe5] sm:$0xff] }
 0x1ee   : > { %v6553_v1 = vadd.f32 %v2664_v43, %v2452_v24  ;;  %v2143_v51 = vadd.f32 %v2047_v54, %v1833_v57  ;;  %5463 = vmatmul.msk.f32.gmra.mxu0 %vm459_vm1, %v1575_v52  ;;  %5577 = vmatmul.msk.f32.gmra.mxu3 %vm459_vm1, %v2505_v61  ;;  %v1578_v57 = vld [vmem:[%s6033_s12 + $0xdb] sm:$0xff] }
 0x1ef   : > { %5501 = vmatmul.msk.f32.gmra.mxu1 %vm459_vm1, %v2193_v6 }
 0x1f0   : > { %5539 = vmatmul.msk.f32.gmra.mxu2 %vm459_vm1, %v2195_v49 }
 0x1f1   : > { %v2667_v2 = vpop.f32.mrf.mxu3 }
 0x1f3   : > { %v2357_v4 = vpop.f32.mrf.mxu2  ;;  %v1740_v5 = vpop.f32.mrf.mxu0 }
 0x1f4   : > { %v2453_v34 = vadd.f32 %v2357_v4, %v2143_v51  ;;  %v2050_v0 = vpop.f32.mrf.mxu1  ;;  %v1834_v17 = vadd.f32 %v1740_v5, %v6222_v11  ;;  %v2198_v51 = vld [vmem:[%s6033_s12 + $0xec] sm:$0xff] }
 0x1f5   : > { %v2508_v4 = vld [vmem:[%s6033_s12 + $0xed] sm:$0xff] }
 0x1f6   : > { %v6563_v23 = vadd.f32 %v2667_v2, %v2453_v34  ;;  %v2144_v6 = vadd.f32 %v2050_v0, %v1834_v17  ;;  %5464 = vmatmul.msk.f32.gmra.mxu0 %vm459_vm1, %v1576_v10  ;;  %5578 = vmatmul.msk.f32.gmra.mxu3 %vm459_vm1, %v2506_v21  ;;  %v1579_v17 = vld [vmem:[%s6033_s12 + $0xe3] sm:$0xff] }
 0x1f7   : > { %5502 = vmatmul.msk.f32.gmra.mxu1 %vm459_vm1, %v2194_v26 }
 0x1f8   : > { %5540 = vmatmul.msk.f32.gmra.mxu2 %vm459_vm1, %v2196_v8 }
 0x1f9   : > { %v2670_v25 = vpop.f32.mrf.mxu3 }
 0x1fb   : > { %v2360_v14 = vpop.f32.mrf.mxu2  ;;  %v1743_v27 = vpop.f32.mrf.mxu0 }
 0x1fc   : > { %v2454_v44 = vadd.f32 %v2360_v14, %v2144_v6  ;;  %v2053_v11 = vpop.f32.mrf.mxu1  ;;  %v1835_v39 = vadd.f32 %v1743_v27, %v6231_v22  ;;  %v2199_v6 = vld [vmem:[%s6033_s12 + $0xf4] sm:$0xff] }
 0x1fd   : > { %v2509_v14 = vld [vmem:[%s6033_s12 + $0xf5] sm:$0xff] }
 0x1fe   : > { %v6573_v43 = vadd.f32 %v2670_v25, %v2454_v44  ;;  %v2145_v26 = vadd.f32 %v2053_v11, %v1835_v39  ;;  %5465 = vmatmul.msk.f32.gmra.mxu0 %vm459_vm1, %v1577_v35  ;;  %5579 = vmatmul.msk.f32.gmra.mxu3 %vm459_vm1, %v2507_v42  ;;  %v1580_v39 = vld [vmem:[%s6033_s12 + $0xeb] sm:$0xff] }
 0x1ff   : > { %5503 = vmatmul.msk.f32.gmra.mxu1 %vm459_vm1, %v2195_v49 }
 0x200   : > { %5541 = vmatmul.msk.f32.gmra.mxu2 %vm459_vm1, %v2197_v32 }
 0x201   : > { %v2673_v48 = vpop.f32.mrf.mxu3 }
 0x203   : > { %v2363_v24 = vpop.f32.mrf.mxu2  ;;  %v1746_v52 = vpop.f32.mrf.mxu0 }
 0x204   : > { %v2455_v54 = vadd.f32 %v2363_v24, %v2145_v26  ;;  %v2056_v22 = vpop.f32.mrf.mxu1  ;;  %v1836_v61 = vadd.f32 %v1746_v52, %v6240_v33  ;;  %v2200_v26 = vld [vmem:[%s6033_s12 + $0xfc] sm:$0xff] }
 0x205   : > { %v2510_v24 = vld [vmem:[%s6033_s12 + $0xfd] sm:$0xff] }
 0x206   : > { %v6583_v2 = vadd.f32 %v2673_v48, %v2455_v54  ;;  %v2146_v49 = vadd.f32 %v2056_v22, %v1836_v61  ;;  %5466 = vmatmul.msk.f32.gmra.mxu0 %vm459_vm1, %v1578_v57  ;;  %5580 = vmatmul.msk.f32.gmra.mxu3 %vm459_vm1, %v2508_v4  ;;  %v1581_v57 = vld [vmem:[%s6033_s12 + $0xf3] sm:$0xff]  ;;  %v2201_v61 = vld [vmem:[%s6033_s12 + $0x104] sm:$0xff] }
 0x207   : > { %5504 = vmatmul.msk.f32.gmra.mxu1 %vm459_vm1, %v2196_v8  ;;  %v2511_v4 = vld [vmem:[%s6033_s12 + $0x105] sm:$0xff] }
 0x208   : > { %5542 = vmatmul.msk.f32.gmra.mxu2 %vm459_vm1, %v2198_v51 }
 0x209   : > { %v2676_v5 = vpop.f32.mrf.mxu3 }
 0x20b   : > { %v2366_v34 = vpop.f32.mrf.mxu2  ;;  %v1749_v10 = vpop.f32.mrf.mxu0 }
 0x20c   : > { %v2456_v0 = vadd.f32 %v2366_v34, %v2146_v49  ;;  %v2059_v33 = vpop.f32.mrf.mxu1  ;;  %v1837_v21 = vadd.f32 %v1749_v10, %v6249_v45  ;;  %v1582_v34 = vld [vmem:[%s6033_s12 + $0xfb] sm:$0xff] }
 0x20e   : > { %v6593_v25 = vadd.f32 %v2676_v5, %v2456_v0  ;;  %v2147_v8 = vadd.f32 %v2059_v33, %v1837_v21  ;;  %5467 = vmatmul.msk.f32.gmra.mxu0 %vm459_vm1, %v1579_v17  ;;  %5581 = vmatmul.msk.f32.gmra.mxu3 %vm459_vm1, %v2509_v14  ;;  %v2202_v5 = vld [vmem:[%s6033_s12 + $0x10c] sm:$0xff]  ;;  %v1583_v33 = vld [vmem:[%s6033_s12 + $0x103] sm:$0xff]  ;;  %v2203_v17 = vld [vmem:[%s6033_s12 + $0x114] sm:$0xff] }
 0x20f   : > { %5505 = vmatmul.msk.f32.gmra.mxu1 %vm459_vm1, %v2197_v32  ;;  %v2512_v0 = vld [vmem:[%s6033_s12 + $0x10d] sm:$0xff]  ;;  %v2513_v21 = vld [vmem:[%s6033_s12 + $0x115] sm:$0xff] }
 0x210   : > { %5543 = vmatmul.msk.f32.gmra.mxu2 %vm459_vm1, %v2199_v6 }
 0x211   : > { %v2679_v27 = vpop.f32.mrf.mxu3 }
 0x213   : > { %v2369_v44 = vpop.f32.mrf.mxu2  ;;  %v1752_v35 = vpop.f32.mrf.mxu0 }
 0x214   : > { %v2457_v11 = vadd.f32 %v2369_v44, %v2147_v8  ;;  %v2062_v45 = vpop.f32.mrf.mxu1  ;;  %v1838_v42 = vadd.f32 %v1752_v35, %v6258_v56  ;;  %v1584_v8 = vld [vmem:[%s6033_s12 + $0x10b] sm:$0xff]  ;;  %v2204_v44 = vld [vmem:[%s6033_s12 + $0x11c] sm:$0xff]  ;;  %v1585_v35 = vld [vmem:[%s6033_s12 + $0x113] sm:$0xff] }
 0x216   : > { %v6603_v48 = vadd.f32 %v2679_v27, %v2457_v11  ;;  %v2148_v32 = vadd.f32 %v2062_v45, %v1838_v42  ;;  %5468 = vmatmul.msk.f32.gmra.mxu0 %vm459_vm1, %v1580_v39  ;;  %5582 = vmatmul.msk.f32.gmra.mxu3 %vm459_vm1, %v2510_v24  ;;  %v2514_v27 = vld [vmem:[%s6033_s12 + $0x11d] sm:$0xff]  ;;  %v2515_v39 = vld [vmem:[%s6033_s12 + $0x125] sm:$0xff] }
 0x217   : > { %5506 = vmatmul.msk.f32.gmra.mxu1 %vm459_vm1, %v2198_v51  ;;  %v2205_v45 = vld [vmem:[%s6033_s12 + $0x124] sm:$0xff]  ;;  %v2206_v24 = vld [vmem:[%s6033_s12 + $0x12c] sm:$0xff] }
 0x218   : > { %5544 = vmatmul.msk.f32.gmra.mxu2 %vm459_vm1, %v2200_v26 }
 0x219   : > { %v2682_v52 = vpop.f32.mrf.mxu3 }
 0x21b   : > { %v2372_v54 = vpop.f32.mrf.mxu2  ;;  %v6609_v56 = vpop.f32.mrf.mxu0 }
 0x21c   : > { %v2458_v22 = vadd.f32 %v2372_v54, %v2148_v32  ;;  %v2516_v32 = vld [vmem:[%s6033_s12 + $0x12d] sm:$0xff] }
 0x21e   : > { %v6614_v49 = vadd.f32 %v2682_v52, %v2458_v22  ;;  %5469 = vmatmul.msk.f32.gmra.mxu0 %vm459_vm1, %v1581_v57  ;;  %5583 = vmatmul.msk.f32.gmra.mxu3 %vm459_vm1, %v2511_v4  ;;  %v1587_v52 = vld [vmem:[%s6033_s12 + $0x123] sm:$0xff]  ;;  %v2207_v22 = vld [vmem:[%s6033_s12 + $0x134] sm:$0xff]  ;;  %v1588_v4 = vld [vmem:[%s6033_s12 + $0x12b] sm:$0xff] }
 0x21f   : > { %5507 = vmatmul.msk.f32.gmra.mxu1 %vm459_vm1, %v2199_v6  ;;  %v5591_v6 = vld [vmem:[%s7624_s1 + $0x20] sm:$0xf]  ;;  %v2517_v57 = vld [vmem:[%s6033_s12 + $0x135] sm:$0xff] }
 0x220   : > { %5545 = vmatmul.msk.f32.gmra.mxu2 %vm459_vm1, %v2201_v61  ;;  %5592 = vmatpush.msk.msra.mxu0 %vm568_vm0, %v5591_v6 }
 0x223   : > { %v6620_v51 = vpop.f32.mrf.mxu0 }
 0x226   : > { %5470 = vmatmul.msk.f32.gmra.mxu0 %vm459_vm1, %v1582_v34  ;;  %5584 = vmatmul.msk.f32.gmra.mxu3 %vm459_vm1, %v2512_v0  ;;  %v2208_v34 = vld [vmem:[%s6033_s12 + $0x13c] sm:$0xff] }
 0x227   : > { %5508 = vmatmul.msk.f32.gmra.mxu1 %vm459_vm1, %v2200_v26  ;;  %v1586_v26 = vld [vmem:[%s6033_s12 + $0x11b] sm:$0xff] }
 0x228   : > { %5546 = vmatmul.msk.f32.gmra.mxu2 %vm459_vm1, %v2202_v5 }
 0x22b   : > { %v6629_v10 = vpop.f32.mrf.mxu0 }
 0x22e   : > { %5471 = vmatmul.msk.f32.gmra.mxu0 %vm459_vm1, %v1583_v33  ;;  %5585 = vmatmul.msk.f32.gmra.mxu3 %vm459_vm1, %v2513_v21  ;;  %v2793_v33 = vld [vmem:[%s6033_s12 + $0x26] sm:$0xff]  ;;  %v2794_v21 = vld [vmem:[%s6033_s12 + $0x2e] sm:$0xff] }
 0x22f   : > { %5509 = vmatmul.msk.f32.gmra.mxu1 %vm459_vm1, %v2201_v61 }
 0x230   : > { %5547 = vmatmul.msk.f32.gmra.mxu2 %vm459_vm1, %v2203_v17 }
 0x233   : > { %v6642_v14 = vpop.f32.mrf.mxu0 }
 0x236   : > { %5472 = vmatmul.msk.f32.gmra.mxu0 %vm459_vm1, %v1584_v8  ;;  %5586 = vmatmul.msk.f32.gmra.mxu3 %vm459_vm1, %v2514_v27  ;;  %v2795_v8 = vld [vmem:[%s6033_s12 + $0x36] sm:$0xff]  ;;  %v2796_v27 = vld [vmem:[%s6033_s12 + $0x3e] sm:$0xff] }
 0x237   : > { %5510 = vmatmul.msk.f32.gmra.mxu1 %vm459_vm1, %v2202_v5  ;;  %v2518_v5 = vld [vmem:[%s6033_s12 + $0x13d] sm:$0xff] }
 0x238   : > { %5548 = vmatmul.msk.f32.gmra.mxu2 %vm459_vm1, %v2204_v44 }
 0x23b   : > { %v6651_v11 = vpop.f32.mrf.mxu0 }
 0x23e   : > { %5473 = vmatmul.msk.f32.gmra.mxu0 %vm459_vm1, %v1585_v35  ;;  %5587 = vmatmul.msk.f32.gmra.mxu3 %vm459_vm1, %v2515_v39 }
 0x23f   : > { %5511 = vmatmul.msk.f32.gmra.mxu1 %vm459_vm1, %v2203_v17 }
 0x240   : > { %5549 = vmatmul.msk.f32.gmra.mxu2 %vm459_vm1, %v2205_v45 }
 0x243   : > { %v6660_v42 = vpop.f32.mrf.mxu0 }
 0x246   : > { %5474 = vmatmul.msk.f32.gmra.mxu0 %vm459_vm1, %v1586_v26  ;;  %5588 = vmatmul.msk.f32.gmra.mxu3 %vm459_vm1, %v2516_v32  ;;  %v2798_v26 = vld [vmem:[%s6033_s12 + $0x4e] sm:$0xff]  ;;  %v2799_v32 = vld [vmem:[%s6033_s12 + $0x56] sm:$0xff] }
 0x247   : > { %5512 = vmatmul.msk.f32.gmra.mxu1 %vm459_vm1, %v2204_v44 }
 0x248   : > { %5550 = vmatmul.msk.f32.gmra.mxu2 %vm459_vm1, %v2206_v24 }
 0x24b   : > { %v6669_v54 = vpop.f32.mrf.mxu0 }
 0x24e   : > { %5475 = vmatmul.msk.f32.gmra.mxu0 %vm459_vm1, %v1587_v52  ;;  %5589 = vmatmul.msk.f32.gmra.mxu3 %vm459_vm1, %v2517_v57 }
 0x24f   : > { %5513 = vmatmul.msk.f32.gmra.mxu1 %vm459_vm1, %v2205_v45  ;;  %v2797_v45 = vld [vmem:[%s6033_s12 + $0x46] sm:$0xff] }
 0x250   : > { %5551 = vmatmul.msk.f32.gmra.mxu2 %vm459_vm1, %v2207_v22  ;;  %v2800_v22 = vld [vmem:[%s6033_s12 + $0x5e] sm:$0xff] }
 0x253   : > { %v6678_v61 = vpop.f32.mrf.mxu0 }
 0x256   : > { %5476 = vmatmul.msk.f32.gmra.mxu0 %vm459_vm1, %v1588_v4  ;;  %5590 = vmatmul.msk.f32.gmra.mxu3 %vm459_vm1, %v2518_v5  ;;  %v2801_v4 = vld [vmem:[%s6033_s12 + $0x66] sm:$0xff]  ;;  %v2802_v5 = vld [vmem:[%s6033_s12 + $0x6e] sm:$0xff] }
 0x257   : > { %5514 = vmatmul.msk.f32.gmra.mxu1 %vm459_vm1, %v2206_v24 }
 0x258   : > { %5552 = vmatmul.msk.f32.gmra.mxu2 %vm459_vm1, %v2208_v34 }
 0x25b   : > { %v6687_v0 = vpop.f32.mrf.mxu0 }
 0x25e   : > { %5593 = vmatmul.msk.f32.vlgmr.msra.gmra.mxu0 %vm459_vm1, %v2793_v33 }
 0x263   : > { %v6691_v17 = vpop.f32.mrf.mxu0 }
 0x266   : > { %5594 = vmatmul.msk.f32.gmra.mxu0 %vm459_vm1, %v2794_v21  ;;  %v2803_v21 = vld [vmem:[%s6033_s12 + $0x76] sm:$0xff] }
 0x26b   : > { %v6695_v6 = vpop.f32.mrf.mxu0 }
 0x26e   : > { %5595 = vmatmul.msk.f32.gmra.mxu0 %vm459_vm1, %v2795_v8 }
 0x273   : > { %v6699_v44 = vpop.f32.mrf.mxu0 }
 0x276   : > { %5596 = vmatmul.msk.f32.gmra.mxu0 %vm459_vm1, %v2796_v27  ;;  %v2804_v27 = vld [vmem:[%s6033_s12 + $0x7e] sm:$0xff] }
 0x27b   : > { %v6703_v35 = vpop.f32.mrf.mxu0 }
 0x27e   : > { %5597 = vmatmul.msk.f32.gmra.mxu0 %vm459_vm1, %v2797_v45 }
 0x283   : > { %v6707_v39 = vpop.f32.mrf.mxu0 }
 0x286   : > { %5598 = vmatmul.msk.f32.gmra.mxu0 %vm459_vm1, %v2798_v26  ;;  %v2805_v26 = vld [vmem:[%s6033_s12 + $0x86] sm:$0xff] }
 0x28b   : > { %v6711_v24 = vpop.f32.mrf.mxu0 }
 0x28e   : > { %5599 = vmatmul.msk.f32.gmra.mxu0 %vm459_vm1, %v2799_v32 }
 0x293   : > { %v6715_v52 = vpop.f32.mrf.mxu0 }
 0x296   : > { %5600 = vmatmul.msk.f32.gmra.mxu0 %vm459_vm1, %v2800_v22  ;;  %v2806_v22 = vld [vmem:[%s6033_s12 + $0x8e] sm:$0xff] }
 0x29b   : > { %v6719_v57 = vpop.f32.mrf.mxu0 }
 0x29e   : > { %5601 = vmatmul.msk.f32.gmra.mxu0 %vm459_vm1, %v2801_v4 }
 0x2a3   : > { %v6723_v34 = vpop.f32.mrf.mxu0 }
 0x2a6   : > { %5602 = vmatmul.msk.f32.gmra.mxu0 %vm459_vm1, %v2802_v5  ;;  %v2807_v5 = vld [vmem:[%s6033_s12 + $0x96] sm:$0xff] }
 0x2ab   : > { %v6727_v33 = vpop.f32.mrf.mxu0 }
 0x2ac   : > { %7645 = vst [vmem:[#allocation15_spill] sm:$0xff] %v6727_v33 }
 0x2ae   : > { %5603 = vmatmul.msk.f32.gmra.mxu0 %vm459_vm1, %v2803_v21 }
 0x2b3   : > { %v6731_v8 = vpop.f32.mrf.mxu0 }
 0x2b4   : > { %7646 = vst [vmem:[#allocation16_spill] sm:$0xff] %v6731_v8 }
 0x2b6   : > { %5604 = vmatmul.msk.f32.gmra.mxu0 %vm459_vm1, %v2804_v27  ;;  %v6754_v27 = vld [vmem:[%s7626_s3] ss:$0 sm:$0xff] }
 0x2bb   : > { %v6735_v45 = vpop.f32.mrf.mxu0 }
 0x2bc   : > { %7647 = vst [vmem:[#allocation17_spill] sm:$0xff] %v6735_v45 }
 0x2be   : > { %5605 = vmatmul.msk.f32.gmra.mxu0 %vm459_vm1, %v2805_v26 }
 0x2c3   : > { %v6739_v32 = vpop.f32.mrf.mxu0 }
 0x2c4   : > { %7648 = vst [vmem:[#allocation18_spill] sm:$0xff] %v6739_v32 }
 0x2c6   : > { %5606 = vmatmul.msk.f32.gmra.mxu0 %vm459_vm1, %v2806_v22 }
 0x2cb   : > { %v6743_v4 = vpop.f32.mrf.mxu0 }
 0x2cc   : > { %7649 = vst [vmem:[#allocation19_spill] sm:$0xff] %v6743_v4 }
 0x2ce   : > { %5607 = vmatmul.msk.f32.gmra.mxu0 %vm459_vm1, %v2807_v5 }
 0x2d3   : > { %v6747_v21 = vpop.f32.mrf.mxu0 }
 0x2d4   : > { %7650 = vst [vmem:[#allocation20_spill] sm:$0xff] %v6747_v21  ;;  %v2810_v21 = vld [vmem:[%s6033_s12 + $0xae] sm:$0xff] }
 0x2d6   : > { %5608 = vmatmul.msk.f32.gmra.mxu0 %vm459_vm1, %v2808_v55 }
 0x2db   : > { %v2959_v26 = vpop.f32.mrf.mxu0 }
 0x2dc   : > { %v3067_v22 = vadd.f32 %v2959_v26, %v6503_v13  ;;  %v2811_v26 = vld [vmem:[%s6033_s12 + $0xb6] sm:$0xff] }
 0x2de   : > { %v3107_v4 = vadd.f32 %v6754_v27, %v3067_v22  ;;  %5609 = vmatmul.msk.f32.gmra.mxu0 %vm459_vm1, %v2809_v31 }
 0x2e0   : > { %v3143_v5 = vmax.f32 %v3107_v4, 0.0 }
 0x2e2   : > { %3180 = vst.msk [vmem:[#allocation2] sm:$0xff] %vm3179_vm2, %v3143_v5  ;;  %v2813_v5 = vld [vmem:[%s6033_s12 + $0xc6] sm:$0xff] }
 0x2e3   : > { %v2962_v55 = vpop.f32.mrf.mxu0 }
 0x2e4   : > { %v3068_v32 = vadd.f32 %v2962_v55, %v6513_v38 }
 0x2e6   : > { %v3108_v9 = vadd.f32 %v6754_v27, %v3068_v32  ;;  %5610 = vmatmul.msk.f32.gmra.mxu0 %vm459_vm1, %v2810_v21  ;;  %v2812_v32 = vld [vmem:[%s6033_s12 + $0xbe] sm:$0xff] }
 0x2e8   : > { %v3144_v45 = vmax.f32 %v3108_v9, 0.0 }
 0x2ea   : > { %3181 = vst.msk [vmem:[#allocation2 + $0x8] sm:$0xff] %vm3179_vm2, %v3144_v45 }
 0x2eb   : > { %v2965_v13 = vpop.f32.mrf.mxu0 }
 0x2ec   : > { %v3069_v31 = vadd.f32 %v2965_v13, %v6523_v59 }
 0x2ee   : > { %v3109_v4 = vadd.f32 %v6754_v27, %v3069_v31  ;;  %5611 = vmatmul.msk.f32.gmra.mxu0 %vm459_vm1, %v2811_v26 }
 0x2f0   : > { %v3145_v22 = vmax.f32 %v3109_v4, 0.0  ;;  %v2814_v4 = vld [vmem:[%s6033_s12 + $0xce] sm:$0xff] }
 0x2f2   : > { %3182 = vst.msk [vmem:[#allocation2 + $0x10] sm:$0xff] %vm3179_vm2, %v3145_v22 }
 0x2f3   : > { %v2968_v38 = vpop.f32.mrf.mxu0 }
 0x2f4   : > { %v3070_v21 = vadd.f32 %v2968_v38, %v6533_v19  ;;  %v2065_v19 = vpop.f32.mrf.mxu1  ;;  %v2375_v38 = vpop.f32.mrf.mxu2 }
 0x2f6   : > { %v3110_v9 = vadd.f32 %v6754_v27, %v3070_v21  ;;  %5612 = vmatmul.msk.f32.gmra.mxu0 %vm459_vm1, %v2812_v32  ;;  %v2685_v21 = vpop.f32.mrf.mxu3 }
 0x2f8   : > { %v3146_v45 = vmax.f32 %v3110_v9, 0.0 }
 0x2fa   : > { %3183 = vst.msk [vmem:[#allocation2 + $0x18] sm:$0xff] %vm3179_vm2, %v3146_v45  ;;  %v2815_v45 = vld [vmem:[%s6033_s12 + $0xd6] sm:$0xff] }
 0x2fb   : > { %v2971_v59 = vpop.f32.mrf.mxu0 }
 0x2fc   : > { %v3071_v55 = vadd.f32 %v2971_v59, %v6543_v40 }
 0x2fe   : > { %v3111_v13 = vadd.f32 %v6754_v27, %v3071_v55  ;;  %5613 = vmatmul.msk.f32.gmra.mxu0 %vm459_vm1, %v2813_v5  ;;  %v2068_v5 = vpop.f32.mrf.mxu1 }
 0x300   : > { %v3147_v26 = vmax.f32 %v3111_v13, 0.0 }
 0x302   : > { %3184 = vst.msk [vmem:[#allocation2 + $0x20] sm:$0xff] %vm3179_vm2, %v3147_v26  ;;  %v6791_v26 = vpop.f32.mrf.mxu3 }
 0x303   : > { %v2974_v31 = vpop.f32.mrf.mxu0 }
 0x304   : > { %v3072_v22 = vadd.f32 %v2974_v31, %v6553_v1  ;;  %v2378_v1 = vpop.f32.mrf.mxu2 }
 0x306   : > { %v3112_v32 = vadd.f32 %v6754_v27, %v3072_v22  ;;  %5614 = vmatmul.msk.f32.gmra.mxu0 %vm459_vm1, %v2814_v4  ;;  %v2816_v4 = vld [vmem:[%s6033_s12 + $0xde] sm:$0xff] }
 0x308   : > { %v3148_v40 = vmax.f32 %v3112_v32, 0.0 }
 0x30a   : > { %3185 = vst.msk [vmem:[#allocation2 + $0x28] sm:$0xff] %vm3179_vm2, %v3148_v40 }
 0x30b   : > { %v2977_v9 = vpop.f32.mrf.mxu0 }
 0x30c   : > { %v3073_v59 = vadd.f32 %v2977_v9, %v6563_v23  ;;  %v2071_v23 = vpop.f32.mrf.mxu1  ;;  %v6797_v9 = vpop.f32.mrf.mxu2 }
 0x30e   : > { %v3113_v55 = vadd.f32 %v6754_v27, %v3073_v59  ;;  %5615 = vmatmul.msk.f32.gmra.mxu0 %vm459_vm1, %v2815_v45  ;;  %v2817_v59 = vld [vmem:[%s6033_s12 + $0xe6] sm:$0xff] }
 0x310   : > { %v3149_v13 = vmax.f32 %v3113_v55, 0.0 }
 0x312   : > { %3186 = vst.msk [vmem:[#allocation2 + $0x30] sm:$0xff] %vm3179_vm2, %v3149_v13  ;;  %v6802_v13 = vpop.f32.mrf.mxu3 }
 0x313   : > { %v2980_v31 = vpop.f32.mrf.mxu0 }
 0x314   : > { %v3074_v22 = vadd.f32 %v2980_v31, %v6573_v43  ;;  %v6806_v31 = vpop.f32.mrf.mxu1 }
 0x316   : > { %v3114_v32 = vadd.f32 %v6754_v27, %v3074_v22  ;;  %5616 = vmatmul.msk.f32.gmra.mxu0 %vm459_vm1, %v2816_v4  ;;  %v6809_v4 = vpop.f32.mrf.mxu2 }
 0x318   : > { %v3150_v40 = vmax.f32 %v3114_v32, 0.0  ;;  %v2818_v32 = vld [vmem:[%s6033_s12 + $0xee] sm:$0xff] }
 0x31a   : > { %3187 = vst.msk [vmem:[#allocation2 + $0x38] sm:$0xff] %vm3179_vm2, %v3150_v40 }
 0x31b   : > { %v2983_v45 = vpop.f32.mrf.mxu0 }
 0x31c   : > { %v3075_v55 = vadd.f32 %v2983_v45, %v6583_v2  ;;  %v6815_v45 = vpop.f32.mrf.mxu3 }
 0x31e   : > { %v3115_v53 = vadd.f32 %v6754_v27, %v3075_v55  ;;  %5617 = vmatmul.msk.f32.gmra.mxu0 %vm459_vm1, %v2817_v59  ;;  %v6822_v37 = vpop.f32.mrf.mxu2 }
 0x320   : > { %v3151_v43 = vmax.f32 %v3115_v53, 0.0  ;;  %v6818_v53 = vpop.f32.mrf.mxu1 }
 0x322   : > { %3188 = vst.msk [vmem:[#allocation2 + $0x40] sm:$0xff] %vm3179_vm2, %v3151_v43  ;;  %v2819_v43 = vld [vmem:[%s6033_s12 + $0xf6] sm:$0xff] }
 0x323   : > { %v2986_v22 = vpop.f32.mrf.mxu0 }
 0x324   : > { %v3076_v40 = vadd.f32 %v2986_v22, %v6593_v25  ;;  %v1839_v22 = vadd.f32 %v6609_v56, %v6267_v3  ;;  %v1840_v3 = vadd.f32 %v6620_v51, %v6276_v16  ;;  %v1841_v16 = vadd.f32 %v6629_v10, %v6289_v29 }
 0x325   : > { %v1842_v29 = vadd.f32 %v6642_v14, %v6298_v41  ;;  %v1843_v14 = vadd.f32 %v6651_v11, %v6319_v58  ;;  %v1844_v58 = vadd.f32 %v6660_v42, %v6328_v7  ;;  %v1845_v42 = vadd.f32 %v6669_v54, %v6337_v20 }
 0x326   : > { %v3116_v2 = vadd.f32 %v6754_v27, %v3076_v40  ;;  %5618 = vmatmul.msk.f32.gmra.mxu0 %vm459_vm1, %v2818_v32  ;;  %v6828_v40 = vpop.f32.mrf.mxu3  ;;  %v2149_v33 = vadd.f32 %v2065_v19, %v1839_v22  ;;  %v2821_v22 = vld [vmem:[%s6033_s12 + $0x106] sm:$0xff]  ;;  %v1846_v20 = vadd.f32 %v6678_v61, %v6347_v36  ;;  %v1847_v36 = vadd.f32 %v6687_v0, %v6357_v50 }
 0x327   : > { %v1848_v0 = vadd.f32 %v6691_v17, %v6366_v63 }
 0x328   : > { %v3152_v55 = vmax.f32 %v3116_v2, 0.0  ;;  %v2459_v18 = vadd.f32 %v2375_v38, %v2149_v33 }
 0x32a   : > { %3189 = vst.msk [vmem:[#allocation2 + $0x48] sm:$0xff] %vm3179_vm2, %v3152_v55  ;;  %v2820_v55 = vld [vmem:[%s6033_s12 + $0xfe] sm:$0xff] }
 0x32b   : > { %v2989_v59 = vpop.f32.mrf.mxu0 }
 0x32c   : > { %v3077_v8 = vadd.f32 %v2989_v59, %v6603_v48  ;;  %v6833_v59 = vpop.f32.mrf.mxu1 }
 0x32e   : > { %v3117_v25 = vadd.f32 %v6754_v27, %v3077_v8  ;;  %5619 = vmatmul.msk.f32.gmra.mxu0 %vm459_vm1, %v2819_v43  ;;  %v6837_v43 = vpop.f32.mrf.mxu2  ;;  %v6842_v19 = vpop.f32.mrf.mxu3 }
 0x330   : > { %v3153_v32 = vmax.f32 %v3117_v25, 0.0  ;;  %v2769_v25 = vadd.f32 %v2685_v21, %v2459_v18 }
 0x332   : > { %3190 = vst.msk [vmem:[#allocation2 + $0x50] sm:$0xff] %vm3179_vm2, %v3153_v32  ;;  %v2150_v32 = vadd.f32 %v2068_v5, %v1840_v3  ;;  %v2151_v5 = vadd.f32 %v2071_v23, %v1841_v16 }
 0x333   : > { %v2992_v2 = vpop.f32.mrf.mxu0 }
 0x334   : > { %v3078_v48 = vadd.f32 %v2992_v2, %v6614_v49  ;;  %v2460_v38 = vadd.f32 %v2378_v1, %v2150_v32  ;;  %v2823_v32 = vld [vmem:[%s6033_s12 + $0x116] sm:$0xff] }
 0x336   : > { %v3118_v8 = vadd.f32 %v6754_v27, %v3078_v48  ;;  %5620 = vmatmul.msk.f32.gmra.mxu0 %vm459_vm1, %v2820_v55  ;;  %v2083_v55 = vpop.f32.mrf.mxu1  ;;  %v2393_v18 = vpop.f32.mrf.mxu2  ;;  %v2770_v21 = vadd.f32 %v6791_v26, %v2460_v38 }
 0x337   : > { %v2703_v1 = vpop.f32.mrf.mxu3 }
 0x338   : > { %v3154_v56 = vmax.f32 %v3118_v8, 0.0  ;;  %v2822_v8 = vld [vmem:[%s6033_s12 + $0x10e] sm:$0xff] }
 0x33a   : > { %3191 = vst.msk [vmem:[#allocation2 + $0x58] sm:$0xff] %vm3179_vm2, %v3154_v56  ;;  %v2461_v56 = vadd.f32 %v6797_v9, %v2151_v5 }
 0x33b   : > { %v2995_v49 = vpop.f32.mrf.mxu0 }
 0x33c   : > { %v3079_v33 = vadd.f32 %v2995_v49, %v2769_v25  ;;  %v2771_v26 = vadd.f32 %v6802_v13, %v2461_v56 }
 0x33e   : > { %v3119_v2 = vadd.f32 %v6754_v27, %v3079_v33  ;;  %5621 = vmatmul.msk.f32.gmra.mxu0 %vm459_vm1, %v2821_v22  ;;  %v2086_v49 = vpop.f32.mrf.mxu1  ;;  %v2396_v22 = vpop.f32.mrf.mxu2  ;;  %v2152_v33 = vadd.f32 %v6806_v31, %v1842_v29  ;;  %v2824_v31 = vld [vmem:[%s6033_s12 + $0x11e] sm:$0xff]  ;;  %v2154_v29 = vadd.f32 %v6833_v59, %v1844_v58 }
 0x33f   : > { %v2706_v41 = vpop.f32.mrf.mxu3 }
 0x340   : > { %v3155_v51 = vmax.f32 %v3119_v2, 0.0  ;;  %v2462_v38 = vadd.f32 %v6809_v4, %v2152_v33 }
 0x342   : > { %3192 = vst.msk [vmem:[#allocation2 + $0x60] sm:$0xff] %vm3179_vm2, %v3155_v51  ;;  %v2772_v16 = vadd.f32 %v6815_v45, %v2462_v38 }
 0x343   : > { %v2998_v48 = vpop.f32.mrf.mxu0 }
 0x344   : > { %v3080_v3 = vadd.f32 %v2998_v48, %v2770_v21  ;;  %v2153_v48 = vadd.f32 %v6818_v53, %v1843_v14 }
 0x346   : > { %v3120_v25 = vadd.f32 %v6754_v27, %v3080_v3  ;;  %5622 = vmatmul.msk.f32.gmra.mxu0 %vm459_vm1, %v2822_v8  ;;  %v2089_v51 = vpop.f32.mrf.mxu1  ;;  %v2399_v8 = vpop.f32.mrf.mxu2  ;;  %v2463_v5 = vadd.f32 %v6822_v37, %v2153_v48 }
 0x347   : > { %v6875_v45 = vpop.f32.mrf.mxu3 }
 0x348   : > { %v3156_v10 = vmax.f32 %v3120_v25, 0.0  ;;  %v2773_v56 = vadd.f32 %v6828_v40, %v2463_v5  ;;  %v2825_v25 = vld [vmem:[%s6033_s12 + $0x126] sm:$0xff] }
 0x349   : > { %v3228_v63 = vld [vmem:[#allocation2 + $0x60] sm:$0xff] }
 0x34a   : > { %3193 = vst.msk [vmem:[#allocation2 + $0x68] sm:$0xff] %vm3179_vm2, %v3156_v10 }
 0x34b   : > { %v3001_v23 = vpop.f32.mrf.mxu0 }
 0x34c   : > { %v3081_v9 = vadd.f32 %v3001_v23, %v2771_v26  ;;  %v2464_v26 = vadd.f32 %v6837_v43, %v2154_v29  ;;  %v2155_v43 = vadd.f32 %v2083_v55, %v1845_v42  ;;  %v2827_v55 = vld [vmem:[%s6033_s12 + $0x136] sm:$0xff] }
 0x34e   : > { %v3121_v2 = vadd.f32 %v6754_v27, %v3081_v9  ;;  %5623 = vmatmul.msk.f32.gmra.mxu0 %vm459_vm1, %v2823_v32  ;;  %v6881_v10 = vpop.f32.mrf.mxu1  ;;  %v6886_v7 = vpop.f32.mrf.mxu2  ;;  %v2774_v32 = vadd.f32 %v6842_v19, %v2464_v26  ;;  %v2826_v9 = vld [vmem:[%s6033_s12 + $0x12e] sm:$0xff] }
 0x34f   : > { %v6892_v59 = vpop.f32.mrf.mxu3  ;;  %v2158_v17 = vadd.f32 %v6881_v10, %v1848_v0 }
 0x350   : > { %v3157_v13 = vmax.f32 %v3121_v2, 0.0  ;;  %v2465_v2 = vadd.f32 %v2393_v18, %v2155_v43 }
 0x351   : > { %v3328_v0 = vld [vmem:[#allocation2 + $0x62] sm:$0xff] }
 0x352   : > { %3194 = vst.msk [vmem:[#allocation2 + $0x70] sm:$0xff] %vm3179_vm2, %v3157_v13 }
 0x353   : > { %v3004_v21 = vpop.f32.mrf.mxu0 }
 0x354   : > { %v3082_v4 = vadd.f32 %v3004_v21, %v2772_v16  ;;  %v2775_v16 = vadd.f32 %v2703_v1, %v2465_v2 }
 0x356   : > { %v3122_v3 = vadd.f32 %v6754_v27, %v3082_v4  ;;  %5624 = vmatmul.msk.f32.gmra.mxu0 %vm459_vm1, %v2824_v31  ;;  %v6897_v13 = vpop.f32.mrf.mxu1  ;;  %v6901_v19 = vpop.f32.mrf.mxu2  ;;  %v2156_v31 = vadd.f32 %v2086_v49, %v1846_v20 }
 0x357   : > { %v6905_v48 = vpop.f32.mrf.mxu3 }
 0x358   : > { %v3158_v11 = vmax.f32 %v3122_v3, 0.0  ;;  %v2466_v4 = vadd.f32 %v2396_v22, %v2156_v31  ;;  %v3261_v31 = vld [vmem:[#allocation2 + $0x59] sm:$0xff] }
 0x359   : > { %v3230_v50 = vld [vmem:[#allocation2 + $0x70] sm:$0xff] }
 0x35a   : > { %3195 = vst.msk [vmem:[#allocation2 + $0x78] sm:$0xff] %vm3179_vm2, %v3158_v11  ;;  %v2776_v1 = vadd.f32 %v2706_v41, %v2466_v4  ;;  %v2828_v11 = vld [vmem:[%s6033_s12 + $0x13e] sm:$0xff]  ;;  %v3263_v42 = vld [vmem:[#allocation2 + $0x69] sm:$0xff]  ;;  %s377_s12 = sand.u32 1, %s5894_s18  }
 0x35b   : > { %v3007_v53 = vpop.f32.mrf.mxu0  ;;  %s378_s25 = scalar_lea.vmem [#allocation6], %s377_s12  ;;  %s5216_s13 = scalar_lea.sflag [#allocation7], %s377_s12 }
 0x35c   : > { %v3083_v37 = vadd.f32 %v3007_v53, %v2773_v56  ;;  %v2157_v56 = vadd.f32 %v2089_v51, %v1847_v36  ;;  %s5226_s29 = sshll.u32 %s378_s25, 4  ;;  %s5227_s29 = int_to_ptr.vmem [resolvable:$true] %s5226_s29 }
 0x35e   : > { %v3123_v23 = vadd.f32 %v6754_v27, %v3083_v37  ;;  %5625 = vmatmul.msk.f32.gmra.mxu0 %vm459_vm1, %v2825_v25  ;;  %v6911_v3 = vpop.f32.mrf.mxu1  ;;  %v6914_v58 = vpop.f32.mrf.mxu2  ;;  %v2467_v29 = vadd.f32 %v2399_v8, %v2157_v56  ;;  %v3262_v8 = vld [vmem:[#allocation2 + $0x61] sm:$0xff]  ;;  %v3260_v56 = vld [vmem:[#allocation2 + $0x51] sm:$0xff] }
 0x35f   : > { %v6921_v41 = vpop.f32.mrf.mxu3  ;;  %v3296_v36 = vmax.f32 %v3228_v63, %v3262_v8  ;;  %v3258_v8 = vld [vmem:[#allocation2 + $0x41] sm:$0xff]  ;;  %v3397_v63 = vld [vmem:[#allocation2 + $0x6b] sm:$0xff] }
 0x360   : > { %v3159_v40 = vmax.f32 %v3123_v23, 0.0 }
 0x361   : > { %v3264_v25 = vld [vmem:[#allocation2 + $0x71] sm:$0xff] }
 0x362   : > { %3196 = vst.msk [vmem:[#allocation2 + $0x80] sm:$0xff] %vm3179_vm2, %v3159_v40  ;;  %v3231_v26 = vld [vmem:[#allocation2 + $0x78] sm:$0xff]  ;;  %v3298_v51 = vmax.f32 %v3230_v50, %v3264_v25 }
 0x363   : > { %v3010_v33 = vpop.f32.mrf.mxu0 }
 0x364   : > { %v3084_v38 = vadd.f32 %v3010_v33, %v2774_v32  ;;  %v3229_v33 = vld [vmem:[#allocation2 + $0x68] sm:$0xff] }
 0x365   : > { %v3297_v20 = vmax.f32 %v3229_v33, %v3263_v42 }
 0x366   : > { %v3124_v14 = vadd.f32 %v6754_v27, %v3084_v38  ;;  %5626 = vmatmul.msk.f32.gmra.mxu0 %vm459_vm1, %v2826_v9  ;;  %v2777_v38 = vadd.f32 %v6875_v45, %v2467_v29  ;;  %v2468_v45 = vadd.f32 %v6886_v7, %v2158_v17  ;;  %v3226_v29 = vld [vmem:[#allocation2 + $0x50] sm:$0xff] }
 0x367   : > { %v6935_v33 = vpop.f32.mrf.mxu3  ;;  %v3326_v17 = vld [vmem:[#allocation2 + $0x52] sm:$0xff] }
 0x368   : > { %v3160_v54 = vmax.f32 %v3124_v14, 0.0 }
 0x369   : > { %v3265_v22 = vld [vmem:[#allocation2 + $0x79] sm:$0xff] }
 0x36a   : > { %3197 = vst.msk [vmem:[#allocation2 + $0x88] sm:$0xff] %vm3179_vm2, %v3160_v54  ;;  %v3299_v32 = vmax.f32 %v3231_v26, %v3265_v22  ;;  %v3331_v43 = vld [vmem:[#allocation2 + $0x7a] sm:$0xff]  ;;  %v6926_v54 = vpop.f32.mrf.mxu1  ;;  %v3259_v26 = vld [vmem:[#allocation2 + $0x49] sm:$0xff] }
 0x36b   : > { %v3013_v21 = vpop.f32.mrf.mxu0  ;;  %v3399_v50 = vld [vmem:[#allocation2 + $0x7b] sm:$0xff] }
 0x36c   : > { %v3085_v18 = vadd.f32 %v3013_v21, %v2775_v16 }
 0x36e   : > { %v3125_v5 = vadd.f32 %v6754_v27, %v3085_v18  ;;  %5627 = vmatmul.msk.f32.gmra.mxu0 %vm459_vm1, %v2827_v55  ;;  %v3330_v55 = vld [vmem:[#allocation2 + $0x72] sm:$0xff] }
 0x36f   : > { %v3364_v22 = vmax.f32 %v3296_v36, %v3330_v55  ;;  %v3396_v36 = vld [vmem:[#allocation2 + $0x63] sm:$0xff] }
 0x370   : > { %v3161_v61 = vmax.f32 %v3125_v5, 0.0  ;;  %v3365_v5 = vmax.f32 %v3297_v20, %v3331_v43  ;;  %v3327_v43 = vld [vmem:[#allocation2 + $0x5a] sm:$0xff] }
 0x371   : > { %v3332_v23 = vld [vmem:[#allocation2 + $0x82] sm:$0xff] }
 0x372   : > { %3198 = vst.msk [vmem:[#allocation2 + $0x90] sm:$0xff] %vm3179_vm2, %v3161_v61  ;;  %v3366_v14 = vmax.f32 %v3298_v51, %v3332_v23  ;;  %v3227_v61 = vld [vmem:[#allocation2 + $0x58] sm:$0xff]  ;;  %v3433_v7 = vmax.f32 %v3365_v5, %v3399_v50  ;;  %v2778_v51 = vadd.f32 %v6892_v59, %v2468_v45  ;;  %v6940_v5 = vpop.f32.mrf.mxu1 }
 0x373   : > { %v3016_v49 = vpop.f32.mrf.mxu0  ;;  %v3295_v25 = vmax.f32 %v3227_v61, %v3261_v31  ;;  %v3325_v61 = vld [vmem:[#allocation2 + $0x4a] sm:$0xff] }
 0x374   : > { %v3086_v53 = vadd.f32 %v3016_v49, %v2776_v1  ;;  %v6929_v1 = vpop.f32.mrf.mxu2  ;;  %v3400_v49 = vld [vmem:[#allocation2 + $0x83] sm:$0xff]  ;;  %v3256_v45 = vld [vmem:[#allocation2 + $0x31] sm:$0xff] }
 0x376   : > { %v3126_v37 = vadd.f32 %v6754_v27, %v3086_v53  ;;  %5628 = vmatmul.msk.f32.gmra.mxu0 %vm459_vm1, %v2828_v11  ;;  %v3329_v11 = vld [vmem:[#allocation2 + $0x6a] sm:$0xff]  ;;  %v3434_v53 = vmax.f32 %v3366_v14, %v3400_v49 }
 0x377   : > { %v3363_v42 = vmax.f32 %v3295_v25, %v3329_v11  ;;  %v3395_v25 = vld [vmem:[#allocation2 + $0x5b] sm:$0xff] }
 0x378   : > { %v3162_v40 = vmax.f32 %v3126_v37, 0.0  ;;  %v1849_v37 = vadd.f32 %v6695_v6, %v6375_v15 }
 0x379   : > { %v3333_v9 = vld [vmem:[#allocation2 + $0x8a] sm:$0xff]  ;;  %v3431_v59 = vmax.f32 %v3363_v42, %v3397_v63  ;;  %v3394_v42 = vld [vmem:[#allocation2 + $0x53] sm:$0xff] }
 0x37a   : > { %3199 = vst.msk [vmem:[#allocation2 + $0x98] sm:$0xff] %vm3179_vm2, %v3162_v40  ;;  %v3367_v2 = vmax.f32 %v3299_v32, %v3333_v9  ;;  %v3401_v21 = vld [vmem:[#allocation2 + $0x8b] sm:$0xff]  ;;  %v3294_v40 = vmax.f32 %v3226_v29, %v3260_v56  ;;  %v3398_v9 = vld [vmem:[#allocation2 + $0x73] sm:$0xff]  ;;  %v2159_v14 = vadd.f32 %v6897_v13, %v1849_v37  ;;  %v3324_v29 = vld [vmem:[#allocation2 + $0x42] sm:$0xff] }
 0x37b   : > { %v3019_v16 = vpop.f32.mrf.mxu0  ;;  %v3225_v32 = vld [vmem:[#allocation2 + $0x48] sm:$0xff]  ;;  %v3432_v15 = vmax.f32 %v3364_v22, %v3398_v9  ;;  %v3220_v9 = vld [vmem:[#allocation2 + $0x20] sm:$0xff] }
 0x37c   : > { %v3087_v18 = vadd.f32 %v3019_v16, %v2777_v38  ;;  %v3435_v4 = vmax.f32 %v3367_v2, %v3401_v21  ;;  %v3362_v6 = vmax.f32 %v3294_v40, %v3328_v0  ;;  %v3293_v38 = vmax.f32 %v3225_v32, %v3259_v26  ;;  %v3224_v2 = vld [vmem:[#allocation2 + $0x40] sm:$0xff]  ;;  %v6945_v22 = vpop.f32.mrf.mxu2 }
 0x37d   : > { %v3257_v16 = vld [vmem:[#allocation2 + $0x39] sm:$0xff]  ;;  %v3292_v31 = vmax.f32 %v3224_v2, %v3258_v8  ;;  %v3254_v32 = vld [vmem:[#allocation2 + $0x21] sm:$0xff]  ;;  %v6950_v8 = vpop.f32.mrf.mxu3 }
 0x37e   : > { %v3127_v10 = vadd.f32 %v6754_v27, %v3087_v18  ;;  %3537 = vmatpush.msra.mxu1 %v3435_v4  ;;  %v3361_v55 = vmax.f32 %v3293_v38, %v3327_v43  ;;  %v3223_v18 = vld [vmem:[#allocation2 + $0x38] sm:$0xff]  ;;  %v2469_v4 = vadd.f32 %v6901_v19, %v2159_v14  ;;  %v3430_v13 = vmax.f32 %v3362_v6, %v3396_v36  ;;  %v3255_v19 = vld [vmem:[#allocation2 + $0x29] sm:$0xff] }
 0x37f   : > { %v3360_v11 = vmax.f32 %v3292_v31, %v3326_v17  ;;  %v3291_v56 = vmax.f32 %v3223_v18, %v3257_v16  ;;  %v3323_v40 = vld [vmem:[#allocation2 + $0x3a] sm:$0xff]  ;;  %v3393_v6 = vld [vmem:[#allocation2 + $0x4b] sm:$0xff]  ;;  %v3288_v63 = vmax.f32 %v3220_v9, %v3254_v32 }
 0x380   : > { %v3163_v23 = vmax.f32 %v3127_v10, 0.0  ;;  %3538 = vmatpush.msra.mxu1 %v3434_v53  ;;  %v3222_v10 = vld [vmem:[#allocation2 + $0x30] sm:$0xff]  ;;  %v1850_v53 = vadd.f32 %v6699_v44, %v6384_v30  ;;  %v3429_v50 = vmax.f32 %v3361_v55, %v3395_v25  ;;  %v3253_v2 = vld [vmem:[#allocation2 + $0x19] sm:$0xff]  ;;  %v3217_v25 = vld [vmem:[#allocation2 + $0x8] sm:$0xff] }
 0x381   : > { %v3359_v0 = vmax.f32 %v3291_v56, %v3325_v61  ;;  %v3290_v26 = vmax.f32 %v3222_v10, %v3256_v45  ;;  %v3428_v30 = vmax.f32 %v3360_v11, %v3394_v42  ;;  %v3322_v38 = vld [vmem:[#allocation2 + $0x32] sm:$0xff]  ;;  %v1851_v61 = vadd.f32 %v6703_v35, %v6393_v46  ;;  %v2107_v45 = vpop.f32.mrf.mxu1  ;;  %v3251_v11 = vld [vmem:[#allocation2 + $0x9] sm:$0xff] }
 0x382   : > { %3200 = vst.msk [vmem:[#allocation2 + $0xa0] sm:$0xff] %vm3179_vm2, %v3163_v23  ;;  %3539 = vmatpush.msra.mxu1 %v3433_v7  ;;  %v3221_v23 = vld [vmem:[#allocation2 + $0x28] sm:$0xff]  ;;  %v2779_v7 = vadd.f32 %v6905_v48, %v2469_v4  ;;  %v2160_v43 = vadd.f32 %v6911_v3, %v1850_v53  ;;  %v3219_v17 = vld [vmem:[#allocation2 + $0x18] sm:$0xff]  ;;  %v3356_v18 = vmax.f32 %v3288_v63, %v3322_v38  ;;  %v3218_v36 = vld [vmem:[#allocation2 + $0x10] sm:$0xff] }
 0x383   : > { %v3022_v20 = vpop.f32.mrf.mxu0  ;;  %v3358_v44 = vmax.f32 %v3290_v26, %v3324_v29  ;;  %v3427_v48 = vmax.f32 %v3359_v0, %v3393_v6  ;;  %v3252_v55 = vld [vmem:[#allocation2 + $0x11] sm:$0xff]  ;;  %v3287_v4 = vmax.f32 %v3219_v17, %v3253_v2  ;;  %v3250_v0 = vld [vmem:[#allocation2 + $0x1] sm:$0xff]  ;;  %v3285_v26 = vmax.f32 %v3217_v25, %v3251_v11 }
 0x384   : > { %v3088_v21 = vadd.f32 %v3022_v20, %v2778_v51  ;;  %3540 = vmatpush.msra.mxu1 %v3432_v15  ;;  %v3289_v51 = vmax.f32 %v3221_v23, %v3255_v19  ;;  %v2470_v16 = vadd.f32 %v6914_v58, %v2160_v43  ;;  %v3286_v53 = vmax.f32 %v3218_v36, %v3252_v55  ;;  %v2417_v19 = vpop.f32.mrf.mxu2  ;;  %v3389_v42 = vld [vmem:[#allocation2 + $0x2b] sm:$0xff]  ;;  %v3388_v43 = vld [vmem:[#allocation2 + $0x23] sm:$0xff]  ;;  %v3386_v17 = vld [vmem:[#allocation2 + $0x13] sm:$0xff] }
 0x385   : > { %v2161_v23 = vadd.f32 %v6926_v54, %v1851_v61  ;;  %v3318_v32 = vld [vmem:[#allocation2 + $0x12] sm:$0xff]  ;;  %v2727_v9 = vpop.f32.mrf.mxu3  ;;  %v1852_v54 = vadd.f32 %v6707_v39, %v6402_v60 }
 0x386   : > { %v3128_v49 = vadd.f32 %v6754_v27, %v3088_v21  ;;  %3541 = vmatpush.msra.mxu1 %v3431_v59  ;;  %v3357_v20 = vmax.f32 %v3289_v51, %v3323_v40  ;;  %v3392_v21 = vld [vmem:[#allocation2 + $0x43] sm:$0xff]  ;;  %v2780_v29 = vadd.f32 %v6921_v41, %v2470_v16 }
 0x387   : > { %v3321_v59 = vld [vmem:[#allocation2 + $0x2a] sm:$0xff]  ;;  %v3426_v3 = vmax.f32 %v3358_v44, %v3392_v21  ;;  %v3216_v40 = vld [vmem:[#allocation2] sm:$0xff]  ;;  %v2162_v55 = vadd.f32 %v6940_v5, %v1852_v54 }
 0x388   : > { %v3164_v37 = vmax.f32 %v3128_v49, 0.0  ;;  %3542 = vmatpush.msra.mxu1 %v3430_v13  ;;  %v3391_v49 = vld [vmem:[#allocation2 + $0x3b] sm:$0xff]  ;;  %v3355_v10 = vmax.f32 %v3287_v4, %v3321_v59  ;;  %v3284_v51 = vmax.f32 %v3216_v40, %v3250_v0 }
 0x389   : > { %v3320_v13 = vld [vmem:[#allocation2 + $0x22] sm:$0xff]  ;;  %v3425_v58 = vmax.f32 %v3357_v20, %v3391_v49  ;;  %v2110_v63 = vpop.f32.mrf.mxu1 }
 0x38a   : > { %3201 = vst.msk [vmem:[#allocation2 + $0xa8] sm:$0xff] %vm3179_vm2, %v3164_v37  ;;  %3543 = vmatpush.msra.mxu1 %v3429_v50  ;;  %v3390_v37 = vld [vmem:[#allocation2 + $0x33] sm:$0xff]  ;;  %v3354_v35 = vmax.f32 %v3286_v53, %v3320_v13  ;;  %v3423_v44 = vmax.f32 %v3355_v10, %v3389_v42  ;;  %v3352_v2 = vmax.f32 %v3284_v51, %v3318_v32 }
 0x38b   : > { %v3025_v15 = vpop.f32.mrf.mxu0  ;;  %v3319_v50 = vld [vmem:[#allocation2 + $0x1a] sm:$0xff]  ;;  %v3424_v46 = vmax.f32 %v3356_v18, %v3390_v37  ;;  %v1853_v18 = vadd.f32 %v6711_v24, %v6411_v12  ;;  %v1856_v42 = vadd.f32 %v6723_v34, %v6438_v62 }
 0x38c   : > { %v3089_v14 = vadd.f32 %v3025_v15, %v2779_v7  ;;  %3544 = vmatpush.msra.mxu1 %v3428_v30  ;;  %v3353_v41 = vmax.f32 %v3285_v26, %v3319_v50  ;;  %v2471_v15 = vadd.f32 %v6929_v1, %v2161_v23  ;;  %v3422_v38 = vmax.f32 %v3354_v35, %v3388_v43  ;;  %v2420_v21 = vpop.f32.mrf.mxu2  ;;  %v7651_v43 = vld [vmem:[#allocation9_spill] sm:$0xff] }
 0x38d   : > { %v3420_v1 = vmax.f32 %v3352_v2, %v3386_v17  ;;  %v2730_v39 = vpop.f32.mrf.mxu3  ;;  %v2163_v49 = vadd.f32 %v2107_v45, %v1853_v18 }
 0x38e   : > { %v3129_v31 = vadd.f32 %v6754_v27, %v3089_v14  ;;  %3545 = vmatpush.msra.mxu1 %v3427_v48  ;;  %v3387_v14 = vld [vmem:[#allocation2 + $0x1b] sm:$0xff]  ;;  %v2781_v16 = vadd.f32 %v6935_v33, %v2471_v15 }
 0x38f   : > { %v3421_v20 = vmax.f32 %v3353_v41, %v3387_v14  ;;  %v2473_v11 = vadd.f32 %v2417_v19, %v2163_v49  ;;  %v1855_v19 = vadd.f32 %v6719_v57, %v6429_v47  ;;  %v7652_v15 = vld [vmem:[#allocation15_spill] sm:$0xff] }
 0x390   : > { %v3165_v56 = vmax.f32 %v3129_v31, 0.0  ;;  %3546 = vmatpush.msra.mxu1 %v3426_v3  ;;  %v2472_v3 = vadd.f32 %v6945_v22, %v2162_v55  ;;  %v1854_v22 = vadd.f32 %v6715_v52, %v6420_v28 }
 0x391   : > { %v2113_v36 = vpop.f32.mrf.mxu1  ;;  %v2783_v53 = vadd.f32 %v2727_v9, %v2473_v11 }
 0x392   : > { %3202 = vst.msk [vmem:[#allocation2 + $0xb0] sm:$0xff] %vm3179_vm2, %v3165_v56  ;;  %3547 = vmatpush.msra.mxu1 %v3425_v58  ;;  %v2782_v33 = vadd.f32 %v6950_v8, %v2472_v3  ;;  %v2164_v24 = vadd.f32 %v2110_v63, %v1854_v22 }
 0x393   : > { %v3028_v7 = vpop.f32.mrf.mxu0 }
 0x394   : > { %v3090_v30 = vadd.f32 %v3028_v7, %v2780_v29  ;;  %3548 = vmatpush.msra.mxu1 %v3424_v46  ;;  %v2423_v5 = vpop.f32.mrf.mxu2  ;;  %v2474_v29 = vadd.f32 %v2420_v21, %v2164_v24  ;;  %v2165_v46 = vadd.f32 %v2113_v36, %v1855_v19  ;;  %v7655_v36 = vld [vmem:[#allocation11_spill] sm:$0xff] }
 0x395   : > { %v2733_v10 = vpop.f32.mrf.mxu3 }
 0x396   : > { %v3130_v6 = vadd.f32 %v6754_v27, %v3090_v30  ;;  %3549 = vmatpush.msra.mxu1 %v3423_v44  ;;  %v2784_v0 = vadd.f32 %v2730_v39, %v2474_v29  ;;  %v2475_v26 = vadd.f32 %v2423_v5, %v2165_v46 }
 0x398   : > { %v3166_v48 = vmax.f32 %v3130_v6, 0.0  ;;  %3550 = vmatpush.msra.mxu1 %v3422_v38  ;;  %v2785_v30 = vadd.f32 %v2733_v10, %v2475_v26  ;;  %v1857_v6 = vadd.f32 %v7652_v15, %v7651_v43  ;;  %v7659_v26 = vld [vmem:[#allocation13_spill] sm:$0xff]  ;;  %v7662_v43 = vld [vmem:[#allocation20_spill] sm:$0xff] }
 0x399   : > { %v2116_v25 = vpop.f32.mrf.mxu1 }
 0x39a   : > { %3203 = vst.msk [vmem:[#allocation2 + $0xb8] sm:$0xff] %vm3179_vm2, %v3166_v48  ;;  %3551 = vmatpush.msra.mxu1 %v3421_v20  ;;  %v2166_v57 = vadd.f32 %v2116_v25, %v1856_v42  ;;  %v7658_v25 = vld [vmem:[#allocation18_spill] sm:$0xff] }
 0x39b   : > { %v3031_v59 = vpop.f32.mrf.mxu0 }
 0x39c   : > { %v3091_v31 = vadd.f32 %v3031_v59, %v2781_v16  ;;  %3552 = vmatpush.msra.mxu1 %v3420_v1  ;;  %v2426_v37 = vpop.f32.mrf.mxu2  ;;  %v7653_v16 = vld [vmem:[#allocation10_spill] sm:$0xff]  ;;  %v7654_v1 = vld [vmem:[#allocation16_spill] sm:$0xff] }
 0x39d   : > { %v2736_v28 = vpop.f32.mrf.mxu3  ;;  %v2476_v51 = vadd.f32 %v2426_v37, %v2166_v57  ;;  %v1858_v21 = vadd.f32 %v7654_v1, %v7653_v16 }
 0x39e   : > { %v3131_v60 = vadd.f32 %v6754_v27, %v3091_v31 }
 0x39f   : > { %v2786_v14 = vadd.f32 %v2736_v28, %v2476_v51 }
 0x3a0   : > { %v3167_v4 = vmax.f32 %v3131_v60, 0.0 }
 0x3a1   : > { %v2119_v7 = vpop.f32.mrf.mxu1 }
 0x3a2   : > { %3204 = vst.msk [vmem:[#allocation2 + $0xc0] sm:$0xff] %vm3179_vm2, %v3167_v4  ;;  %v2167_v54 = vadd.f32 %v2119_v7, %v1857_v6 }
 0x3a3   : > { %v3034_v61 = vpop.f32.mrf.mxu0 }
 0x3a4   : > { %v3092_v13 = vadd.f32 %v3034_v61, %v2782_v33  ;;  %v2429_v32 = vpop.f32.mrf.mxu2  ;;  %v7656_v61 = vld [vmem:[#allocation17_spill] sm:$0xff] }
 0x3a5   : > { %v2739_v41 = vpop.f32.mrf.mxu3  ;;  %v2477_v20 = vadd.f32 %v2429_v32, %v2167_v54  ;;  %v1859_v49 = vadd.f32 %v7656_v61, %v7655_v36 }
 0x3a6   : > { %v3132_v56 = vadd.f32 %v6754_v27, %v3092_v13 }
 0x3a7   : > { %v2787_v55 = vadd.f32 %v2739_v41, %v2477_v20 }
 0x3a8   : > { %v3168_v58 = vmax.f32 %v3132_v56, 0.0 }
 0x3a9   : > { %v2122_v2 = vpop.f32.mrf.mxu1 }
 0x3aa   : > { %3205 = vst.msk [vmem:[#allocation2 + $0xc8] sm:$0xff] %vm3179_vm2, %v3168_v58  ;;  %v2168_v60 = vadd.f32 %v2122_v2, %v1858_v21 }
 0x3ab   : > { %v3037_v12 = vpop.f32.mrf.mxu0 }
 0x3ac   : > { %v3093_v8 = vadd.f32 %v3037_v12, %v2783_v53  ;;  %v2432_v62 = vpop.f32.mrf.mxu2 }
 0x3ad   : > { %v2742_v17 = vpop.f32.mrf.mxu3  ;;  %v2478_v4 = vadd.f32 %v2432_v62, %v2168_v60 }
 0x3ae   : > { %v3133_v45 = vadd.f32 %v6754_v27, %v3093_v8  ;;  %v7657_v8 = vld [vmem:[#allocation12_spill] sm:$0xff] }
 0x3af   : > { %v2788_v11 = vadd.f32 %v2742_v17, %v2478_v4  ;;  %v1860_v29 = vadd.f32 %v7658_v25, %v7657_v8 }
 0x3b0   : > { %v3169_v50 = vmax.f32 %v3133_v45, 0.0 }
 0x3b1   : > { %v2125_v31 = vpop.f32.mrf.mxu1 }
 0x3b2   : > { %3206 = vst.msk [vmem:[#allocation2 + $0xd0] sm:$0xff] %vm3179_vm2, %v3169_v50  ;;  %v2169_v22 = vadd.f32 %v2125_v31, %v1859_v49  ;;  %v5839_v31 = vld [vmem:[%s7626_s3] ss:$0 sm:$0xff] }
 0x3b3   : > { %v3040_v52 = vpop.f32.mrf.mxu0 }
 0x3b4   : > { %v3094_v35 = vadd.f32 %v3040_v52, %v2784_v0  ;;  %v2435_v18 = vpop.f32.mrf.mxu2 }
 0x3b5   : > { %v2745_v5 = vpop.f32.mrf.mxu3  ;;  %v2479_v53 = vadd.f32 %v2435_v18, %v2169_v22 }
 0x3b6   : > { %v3134_v23 = vadd.f32 %v6754_v27, %v3094_v35 }
 0x3b7   : > { %v2789_v37 = vadd.f32 %v2745_v5, %v2479_v53 }
 0x3b8   : > { %v3170_v40 = vmax.f32 %v3134_v23, 0.0  ;;  %v7660_v23 = vld [vmem:[#allocation19_spill] sm:$0xff] }
 0x3b9   : > { %v2128_v10 = vpop.f32.mrf.mxu1  ;;  %v1861_v7 = vadd.f32 %v7660_v23, %v7659_v26  ;;  %v3242_v23 = vld [vmem:[#allocation2 + $0xd0] sm:$0xff] }
 0x3ba   : > { %3207 = vst.msk [vmem:[#allocation2 + $0xd8] sm:$0xff] %vm3179_vm2, %v3170_v40  ;;  %v2170_v0 = vadd.f32 %v2128_v10, %v1860_v29 }
 0x3bb   : > { %v3043_v47 = vpop.f32.mrf.mxu0 }
 0x3bc   : > { %v3095_v44 = vadd.f32 %v3043_v47, %v2785_v30  ;;  %v2438_v24 = vpop.f32.mrf.mxu2 }
 0x3bd   : > { %v2748_v19 = vpop.f32.mrf.mxu3  ;;  %v2480_v52 = vadd.f32 %v2438_v24, %v2170_v0 }
 0x3be   : > { %v3135_v9 = vadd.f32 %v6754_v27, %v3095_v44 }
 0x3bf   : > { %v2790_v32 = vadd.f32 %v2748_v19, %v2480_v52  ;;  %v3454_v52 = vld [vmem:[%s7628_s5] sm:$0xff] }
 0x3c0   : > { %v3171_v38 = vmax.f32 %v3135_v9, 0.0  ;;  %v7661_v9 = vld [vmem:[#allocation14_spill] sm:$0xff]  ;;  %3553 = vmatmul.f32.vlgmr.msra.gmra.mxu1 %v3454_v52 }
 0x3c1   : > { %v2131_v35 = vpop.f32.mrf.mxu1  ;;  %v1862_v15 = vadd.f32 %v7662_v43, %v7661_v9  ;;  %v3276_v10 = vld [vmem:[#allocation2 + $0xd1] sm:$0xff]  ;;  %v3274_v43 = vld [vmem:[#allocation2 + $0xc1] sm:$0xff] }
 0x3c2   : > { %3208 = vst.msk [vmem:[#allocation2 + $0xe0] sm:$0xff] %vm3179_vm2, %v3171_v38  ;;  %v2171_v47 = vadd.f32 %v2131_v35, %v1861_v7  ;;  %v3243_v24 = vld [vmem:[#allocation2 + $0xd8] sm:$0xff]  ;;  %v3275_v7 = vld [vmem:[#allocation2 + $0xc9] sm:$0xff] }
 0x3c3   : > { %v3046_v34 = vpop.f32.mrf.mxu0 }
 0x3c4   : > { %v3096_v48 = vadd.f32 %v3046_v34, %v2786_v14  ;;  %v2441_v40 = vpop.f32.mrf.mxu2 }
 0x3c5   : > { %v2751_v44 = vpop.f32.mrf.mxu3  ;;  %v2481_v41 = vadd.f32 %v2441_v40, %v2171_v47  ;;  %v3310_v40 = vmax.f32 %v3242_v23, %v3276_v10  ;;  %v3408_v23 = vld [vmem:[#allocation2 + $0xc3] sm:$0xff] }
 0x3c6   : > { %v3136_v63 = vadd.f32 %v6754_v27, %v3096_v48 }
 0x3c7   : > { %v2791_v2 = vadd.f32 %v2751_v44, %v2481_v41 }
 0x3c8   : > { %v3172_v59 = vmax.f32 %v3136_v63, 0.0 }
 0x3c9   : > { %v2134_v38 = vpop.f32.mrf.mxu1  ;;  %v3277_v8 = vld [vmem:[#allocation2 + $0xd9] sm:$0xff] }
 0x3ca   : > { %3209 = vst.msk [vmem:[#allocation2 + $0xe8] sm:$0xff] %vm3179_vm2, %v3172_v59  ;;  %v2172_v34 = vadd.f32 %v2134_v38, %v1862_v15  ;;  %v3311_v26 = vmax.f32 %v3243_v24, %v3277_v8  ;;  %v3343_v9 = vld [vmem:[#allocation2 + $0xda] sm:$0xff] }
 0x3cb   : > { %v3049_v3 = vpop.f32.mrf.mxu0  ;;  %v3339_v24 = vld [vmem:[#allocation2 + $0xba] sm:$0xff] }
 0x3cc   : > { %v3097_v39 = vadd.f32 %v3049_v3, %v2787_v55  ;;  %v2444_v14 = vpop.f32.mrf.mxu2  ;;  %v3270_v8 = vld [vmem:[#allocation2 + $0xa1] sm:$0xff] }
 0x3cd   : > { %v2482_v48 = vadd.f32 %v2444_v14, %v2172_v34  ;;  %v2754_v63 = vpop.f32.mrf.mxu3 }
 0x3ce   : > { %v3137_v33 = vadd.f32 %v6754_v27, %v3097_v39 }
 0x3cf   : > { %v2792_v16 = vadd.f32 %v2754_v63, %v2482_v48  ;;  %v3240_v48 = vld [vmem:[#allocation2 + $0xc0] sm:$0xff] }
 0x3d0   : > { %v3173_v13 = vmax.f32 %v3137_v33, 0.0 }
 0x3d1   : > { %v3245_v61 = vld [vmem:[#allocation2 + $0xe8] sm:$0xff] }
 0x3d2   : > { %3210 = vst.msk [vmem:[#allocation2 + $0xf0] sm:$0xff] %vm3179_vm2, %v3173_v13  ;;  %v3278_v5 = vld [vmem:[#allocation2 + $0xe1] sm:$0xff] }
 0x3d3   : > { %v3052_v56 = vpop.f32.mrf.mxu0 }
 0x3d4   : > { %v3098_v58 = vadd.f32 %v3052_v56, %v2788_v11 }
 0x3d6   : > { %v3138_v12 = vadd.f32 %v6754_v27, %v3098_v58  ;;  %v3244_v58 = vld [vmem:[#allocation2 + $0xe0] sm:$0xff] }
 0x3d8   : > { %v3174_v45 = vmax.f32 %v3138_v12, 0.0 }
 0x3d9   : > { %v3246_v60 = vld [vmem:[#allocation2 + $0xf0] sm:$0xff] }
 0x3da   : > { %3211 = vst.msk [vmem:[#allocation2 + $0xf8] sm:$0xff] %vm3179_vm2, %v3174_v45  ;;  %v3279_v4 = vld [vmem:[#allocation2 + $0xe9] sm:$0xff] }
 0x3db   : > { %v3055_v50 = vpop.f32.mrf.mxu0  ;;  %v3313_v22 = vmax.f32 %v3245_v61, %v3279_v4  ;;  %v3345_v19 = vld [vmem:[#allocation2 + $0xea] sm:$0xff] }
 0x3dc   : > { %v3099_v28 = vadd.f32 %v3055_v50, %v2789_v37  ;;  %v3312_v37 = vmax.f32 %v3244_v58, %v3278_v5  ;;  %v3413_v63 = vld [vmem:[#allocation2 + $0xeb] sm:$0xff]  ;;  %v3411_v5 = vld [vmem:[#allocation2 + $0xdb] sm:$0xff] }
 0x3de   : > { %v3139_v46 = vadd.f32 %v6754_v27, %v3099_v28 }
 0x3e0   : > { %v3175_v42 = vmax.f32 %v3139_v46, 0.0 }
 0x3e1   : > { %v3280_v55 = vld [vmem:[#allocation2 + $0xf1] sm:$0xff] }
 0x3e2   : > { %3212 = vst.msk [vmem:[#allocation2 + $0x100] sm:$0xff] %vm3179_vm2, %v3175_v42  ;;  %v3247_v39 = vld [vmem:[#allocation2 + $0xf8] sm:$0xff]  ;;  %v3314_v36 = vmax.f32 %v3246_v60, %v3280_v55  ;;  %v3308_v55 = vmax.f32 %v3240_v48, %v3274_v43  ;;  %v3405_v48 = vld [vmem:[#allocation2 + $0xab] sm:$0xff] }
 0x3e3   : > { %v3058_v30 = vpop.f32.mrf.mxu0  ;;  %v3346_v12 = vld [vmem:[#allocation2 + $0xf2] sm:$0xff] }
 0x3e4   : > { %v3100_v57 = vadd.f32 %v3058_v30, %v2790_v32  ;;  %v3380_v35 = vmax.f32 %v3312_v37, %v3346_v12  ;;  %v3344_v32 = vld [vmem:[#allocation2 + $0xe2] sm:$0xff]  ;;  %v3414_v15 = vld [vmem:[#allocation2 + $0xf3] sm:$0xff] }
 0x3e5   : > { %v3378_v34 = vmax.f32 %v3310_v40, %v3344_v32  ;;  %v3272_v60 = vld [vmem:[#allocation2 + $0xb1] sm:$0xff]  ;;  %v3236_v37 = vld [vmem:[#allocation2 + $0xa0] sm:$0xff] }
 0x3e6   : > { %v3140_v51 = vadd.f32 %v6754_v27, %v3100_v57  ;;  %v3379_v57 = vmax.f32 %v3311_v26, %v3345_v19  ;;  %v3448_v14 = vmax.f32 %v3380_v35, %v3414_v15  ;;  %v3410_v12 = vld [vmem:[#allocation2 + $0xd3] sm:$0xff]  ;;  %v3409_v19 = vld [vmem:[#allocation2 + $0xcb] sm:$0xff] }
 0x3e7   : > { %v3235_v35 = vld [vmem:[#allocation2 + $0x98] sm:$0xff] }
 0x3e8   : > { %v3176_v6 = vmax.f32 %v3140_v51, 0.0  ;;  %v3241_v51 = vld [vmem:[#allocation2 + $0xc8] sm:$0xff]  ;;  %v3268_v26 = vld [vmem:[#allocation2 + $0x91] sm:$0xff] }
 0x3e9   : > { %v3281_v59 = vld [vmem:[#allocation2 + $0xf9] sm:$0xff] }
 0x3ea   : > { %3213 = vst.msk [vmem:[#allocation2 + $0x108] sm:$0xff] %vm3179_vm2, %v3176_v6  ;;  %v3347_v13 = vld [vmem:[#allocation2 + $0xfa] sm:$0xff] }
 0x3eb   : > { %v3061_v62 = vpop.f32.mrf.mxu0  ;;  %v3381_v45 = vmax.f32 %v3313_v22, %v3347_v13  ;;  %v3415_v42 = vld [vmem:[#allocation2 + $0xfb] sm:$0xff]  ;;  %v3456_v13 = vld [vmem:[%s7628_s5 + $0x10] sm:$0xff] }
 0x3ec   : > { %v3101_v54 = vadd.f32 %v3061_v62, %v2791_v2  ;;  %v3248_v30 = vld [vmem:[#allocation2 + $0x100] sm:$0xff]  ;;  %v3309_v2 = vmax.f32 %v3241_v51, %v3275_v7  ;;  %v3337_v7 = vld [vmem:[#allocation2 + $0xaa] sm:$0xff] }
 0x3ed   : > { %v3449_v47 = vmax.f32 %v3381_v45, %v3415_v42  ;;  %v3460_v42 = vld [vmem:[%s7628_s5 + $0x30] sm:$0xff] }
 0x3ee   : > { %v3141_v20 = vadd.f32 %v6754_v27, %v3101_v54  ;;  %v3315_v27 = vmax.f32 %v3247_v39, %v3281_v59  ;;  %v3377_v59 = vmax.f32 %v3309_v2, %v3343_v9  ;;  %v3412_v39 = vld [vmem:[#allocation2 + $0xe3] sm:$0xff]  ;;  %v3335_v2 = vld [vmem:[#allocation2 + $0x9a] sm:$0xff] }
 0x3ef   : > { %v3267_v51 = vld [vmem:[#allocation2 + $0x89] sm:$0xff] }
 0x3f0   : > { %v3177_v17 = vmax.f32 %v3141_v20, 0.0  ;;  %v3273_v20 = vld [vmem:[#allocation2 + $0xb9] sm:$0xff]  ;;  %v3445_v22 = vmax.f32 %v3377_v59, %v3411_v5  ;;  %v3463_v59 = vld [vmem:[%s7628_s5 + $0x48] sm:$0xff] }
 0x3f1   : > { %v3348_v18 = vld [vmem:[#allocation2 + $0x102] sm:$0xff]  ;;  %v3461_v5 = vld [vmem:[%s7628_s5 + $0x38] sm:$0xff] }
 0x3f2   : > { %3214 = vst.msk [vmem:[#allocation2 + $0x110] sm:$0xff] %vm3179_vm2, %v3177_v17  ;;  %v3382_v56 = vmax.f32 %v3314_v36, %v3348_v18  ;;  %v3416_v29 = vld [vmem:[#allocation2 + $0x103] sm:$0xff] }
 0x3f3   : > { %v3064_v1 = vpop.f32.mrf.mxu0  ;;  %v3249_v50 = vld [vmem:[#allocation2 + $0x108] sm:$0x1f] }
 0x3f4   : > { %v3102_v21 = vadd.f32 %v3064_v1, %v2792_v16  ;;  %v3283_v0 = vld [vmem:[#allocation2 + $0x109] sm:$0x1f]  ;;  %v3282_v28 = vld [vmem:[#allocation2 + $0x101] sm:$0xff]  ;;  %v3450_v46 = vmax.f32 %v3382_v56, %v3416_v29  ;;  %v3342_v16 = vld [vmem:[#allocation2 + $0xd2] sm:$0xff]  ;;  %v3447_v1 = vmax.f32 %v3379_v57, %v3413_v63 }
 0x3f5   : > { %v3317_v44 = vmax.f32 %v3249_v50, %v3283_v0  ;;  %v3316_v41 = vmax.f32 %v3248_v30, %v3282_v28  ;;  %v3376_v61 = vmax.f32 %v3308_v55, %v3342_v16  ;;  %v3271_v56 = vld [vmem:[#allocation2 + $0xa9] sm:$0xff]  ;;  %v3338_v50 = vld [vmem:[#allocation2 + $0xb2] sm:$0xff] }
 0x3f6   : > { %v3142_v3 = vadd.f32 %v5839_v31, %v3102_v21  ;;  %v3239_v31 = vld [vmem:[#allocation2 + $0xb8] sm:$0xff]  ;;  %v3459_v57 = vld [vmem:[%s7628_s5 + $0x28] sm:$0xff] }
 0x3f7   : > { %v3307_v4 = vmax.f32 %v3239_v31, %v3273_v20  ;;  %v3269_v0 = vld [vmem:[#allocation2 + $0x99] sm:$0xff] }
 0x3f8   : > { %v3178_v33 = vmax.f32 %v3142_v3, 0.0  ;;  %v3341_v3 = vld [vmem:[#allocation2 + $0xca] sm:$0xff]  ;;  %v3303_v30 = vmax.f32 %v3235_v35, %v3269_v0  ;;  %v3232_v20 = vld [vmem:[#allocation2 + $0x80] sm:$0xff]  ;;  %v3334_v63 = vld [vmem:[#allocation2 + $0x92] sm:$0xff] }
 0x3f9   : > { %v3349_v49 = vld [vmem:[#allocation2 + $0x10a] sm:$0xff]  ;;  %v3375_v58 = vmax.f32 %v3307_v4, %v3341_v3  ;;  %v3462_v3 = vld [vmem:[%s7628_s5 + $0x40] sm:$0xff] }
 0x3fa   : > { %3215 = vst.msk [vmem:[#allocation2 + $0x118] sm:$0xff] %vm3179_vm2, %v3178_v33  ;;  %v3383_v11 = vmax.f32 %v3315_v27, %v3349_v49  ;;  %v3417_v53 = vld [vmem:[#allocation2 + $0x10b] sm:$0xff]  ;;  %v3457_v33 = vld [vmem:[%s7628_s5 + $0x18] sm:$0xff]  ;;  %v3446_v27 = vmax.f32 %v3378_v34, %v3412_v39  ;;  %v3371_v43 = vmax.f32 %v3303_v30, %v3337_v7  ;;  %v3482_v35 = vld [vmem:[%s7628_s5 + $0xe0] sm:$0xff] }
 0x3fb   : > { %v3238_v49 = vld [vmem:[#allocation2 + $0xb0] sm:$0xff]  ;;  %3556 = vmatmul.f32.gmra.mxu1 %v3457_v33  ;;  %v3443_v28 = vmax.f32 %v3375_v58, %v3409_v19  ;;  %v3455_v33 = vld [vmem:[%s7628_s5 + $0x8] sm:$0xff] }
 0x3fc   : > { %v3451_v25 = vmax.f32 %v3383_v11, %v3417_v53  ;;  %v3340_v11 = vld [vmem:[#allocation2 + $0xc2] sm:$0xff]  ;;  %v3306_v10 = vmax.f32 %v3238_v49, %v3272_v60  ;;  %v3469_v49 = vld [vmem:[%s7628_s5 + $0x78] sm:$0xff] }
 0x3fd   : > { %v3237_v53 = vld [vmem:[#allocation2 + $0xa8] sm:$0xff]  ;;  %v3403_v60 = vld [vmem:[#allocation2 + $0x9b] sm:$0xff] }
 0x3fe   : > { %3593 = vmatpush.msra.mxu2 %v3451_v25  ;;  %v3444_v25 = vmax.f32 %v3376_v61, %v3410_v12  ;;  %v3374_v29 = vmax.f32 %v3306_v10, %v3340_v11  ;;  %v3305_v45 = vmax.f32 %v3237_v53, %v3271_v56  ;;  %v3458_v61 = vld [vmem:[%s7628_s5 + $0x20] sm:$0xff]  ;;  %v3472_v11 = vld [vmem:[%s7628_s5 + $0x90] sm:$0xff]  ;;  %v3471_v56 = vld [vmem:[%s7628_s5 + $0x88] sm:$0xff] }
 0x3ff   : > { %v3475_v58 = vld [vmem:[%s7628_s5 + $0xa8] sm:$0xff]  ;;  %v3474_v10 = vld [vmem:[%s7628_s5 + $0xa0] sm:$0xff] }
 0x400   : > { %3594 = vmatpush.msra.mxu2 %v3450_v46  ;;  %v3373_v52 = vmax.f32 %v3305_v45, %v3339_v24  ;;  %v3304_v46 = vmax.f32 %v3236_v37, %v3270_v8  ;;  %v3442_v40 = vmax.f32 %v3374_v29, %v3408_v23  ;;  %v3467_v53 = vld [vmem:[%s7628_s5 + $0x68] sm:$0xff]  ;;  %v3478_v12 = vld [vmem:[%s7628_s5 + $0xc0] sm:$0xff]  ;;  %v3477_v24 = vld [vmem:[%s7628_s5 + $0xb8] sm:$0xff] }
 0x401   : > { %v3351_v6 = vld [vmem:[#allocation2 + $0x11a] sm:$0x1f]  ;;  %v3350_v38 = vld [vmem:[#allocation2 + $0x112] sm:$0xff]  ;;  %v3470_v8 = vld [vmem:[%s7628_s5 + $0x80] sm:$0xff] }
 0x402   : > { %3595 = vmatpush.msra.mxu2 %v3449_v47  ;;  %v3385_v62 = vmax.f32 %v3317_v44, %v3351_v6  ;;  %v3384_v54 = vmax.f32 %v3316_v41, %v3350_v38  ;;  %v3419_v17 = vld [vmem:[#allocation2 + $0x11b] sm:$0x1f]  ;;  %v3418_v18 = vld [vmem:[#allocation2 + $0x113] sm:$0xff]  ;;  %v3372_v32 = vmax.f32 %v3304_v46, %v3338_v50  ;;  %v3336_v41 = vld [vmem:[#allocation2 + $0xa2] sm:$0xff] }
 0x403   : > { %v3234_v47 = vld [vmem:[#allocation2 + $0x90] sm:$0xff]  ;;  %v3407_v44 = vld [vmem:[#allocation2 + $0xbb] sm:$0xff]  ;;  %3559 = vmatmul.f32.gmra.mxu1 %v3460_v42  ;;  %v3233_v6 = vld [vmem:[#allocation2 + $0x88] sm:$0xff] }
 0x404   : > { %3596 = vmatpush.msra.mxu2 %v3448_v14  ;;  %v3453_v21 = vmax.f32 %v3385_v62, %v3419_v17  ;;  %v3452_v36 = vmax.f32 %v3384_v54, %v3418_v18  ;;  %v3441_v9 = vmax.f32 %v3373_v52, %v3407_v44  ;;  %v3302_v15 = vmax.f32 %v3234_v47, %v3268_v26  ;;  %v3406_v38 = vld [vmem:[#allocation2 + $0xb3] sm:$0xff]  ;;  %v3266_v14 = vld [vmem:[#allocation2 + $0x81] sm:$0xff] }
 0x405   : > { %v3440_v62 = vmax.f32 %v3372_v32, %v3406_v38  ;;  %v3301_v54 = vmax.f32 %v3233_v6, %v3267_v51  ;;  %v3439_v17 = vmax.f32 %v3371_v43, %v3405_v48  ;;  %v3402_v18 = vld [vmem:[#allocation2 + $0x93] sm:$0xff]  ;;  %v3483_v19 = vld [vmem:[%s7628_s5 + $0xe8] sm:$0xff]  ;;  %v3729_v47 = vld [vmem:[%s7625_s2] sm:$0xff] }
 0x406   : > { %3597 = vmatpush.msra.mxu2 %v3447_v1  ;;  %5629 = vmatpush.msk.msra.mxu3 %vm3533_vm3, %v3453_v21  ;;  %v3370_v34 = vmax.f32 %v3302_v15, %v3336_v41  ;;  %v3300_v1 = vmax.f32 %v3232_v20, %v3266_v14  ;;  %v3404_v21 = vld [vmem:[#allocation2 + $0xa3] sm:$0xff]  ;;  %v3480_v29 = vld [vmem:[%s7628_s5 + $0xd0] sm:$0xff]  ;;  %v3473_v45 = vld [vmem:[%s7628_s5 + $0x98] sm:$0xff] }
 0x407   : > { %v3369_v16 = vmax.f32 %v3301_v54, %v3335_v2  ;;  %v3484_v37 = vld [vmem:[%s7628_s5 + $0xf0] sm:$0xff]  ;;  %v3487_v0 = vld [vmem:[%s7628_s5 + $0x108] sm:$0xff]  ;;  %v3489_v46 = vld [vmem:[%s7628_s5 + $0x118] sm:$0xff] }
 0x408   : > { %3598 = vmatpush.msra.mxu2 %v3446_v27  ;;  %3664 = vmatpush.msra.mxu3 %v3452_v36  ;;  %v3438_v55 = vmax.f32 %v3370_v34, %v3404_v21  ;;  %v3368_v31 = vmax.f32 %v3300_v1, %v3334_v63  ;;  %v3466_v27 = vld [vmem:[%s7628_s5 + $0x60] sm:$0xff]  ;;  %v3465_v36 = vld [vmem:[%s7628_s5 + $0x58] sm:$0xff]  ;;  %v3476_v50 = vld [vmem:[%s7628_s5 + $0xb0] sm:$0xff] }
 0x409   : > { %5630 = vmatmul.msk.f32.vlgmr.msra.gmra.mxu3 %vm3493_vm4, %v3456_v13  ;;  %v3437_v39 = vmax.f32 %v3369_v16, %v3403_v60  ;;  %v3468_v13 = vld [vmem:[%s7628_s5 + $0x70] sm:$0xff]  ;;  %v3479_v52 = vld [vmem:[%s7628_s5 + $0xc8] sm:$0xff]  ;;  %v3485_v26 = vld [vmem:[%s7628_s5 + $0xf8] sm:$0xff] }
 0x40a   : > { %3599 = vmatpush.msra.mxu2 %v3445_v22  ;;  %v3436_v4 = vmax.f32 %v3368_v31, %v3402_v18  ;;  %v3464_v22 = vld [vmem:[%s7628_s5 + $0x50] sm:$0xff]  ;;  %v3491_v7 = vld [vmem:[%s7628_s5 + $0x128] sm:$0x3f] }
 0x40b   : > { %3562 = vmatmul.f32.gmra.mxu1 %v3463_v59  ;;  %v3488_v23 = vld [vmem:[%s7628_s5 + $0x110] sm:$0xff]  ;;  %v5643_v41 = vld [vmem:[%s7625_s2 + $0x8] sm:$0xff] }
 0x40c   : > { %3600 = vmatpush.msra.mxu2 %v3444_v25  ;;  %v3481_v25 = vld [vmem:[%s7628_s5 + $0xd8] sm:$0xff]  ;;  %v3492_v42 = vld [vmem:[%s7628_s5 + $0x130] sm:$0x3f]  ;;  %3787 = vmatpush.msrb.mxu1 %v5643_v41 }
 0x40d   : > { %v5664_v51 = vld [vmem:[%s7625_s2 + $0x10] sm:$0xff] }
 0x40e   : > { %3601 = vmatpush.msra.mxu2 %v3443_v28  ;;  %v3486_v28 = vld [vmem:[%s7628_s5 + $0x100] sm:$0xff]  ;;  %3953 = vmatpush.msrb.mxu3 %v5664_v51 }
 0x410   : > { %3602 = vmatpush.msra.mxu2 %v3442_v40  ;;  %v3490_v40 = vld [vmem:[%s7628_s5 + $0x120] sm:$0x3f] }
 0x411   : > { %5631 = vmatmul.msk.f32.gmra.mxu3 %vm3493_vm4, %v3459_v57 }
 0x412   : > { %3603 = vmatpush.msra.mxu2 %v3441_v9 }
 0x413   : > { %3565 = vmatmul.f32.gmra.mxu1 %v3466_v27 }
 0x414   : > { %3604 = vmatpush.msra.mxu2 %v3440_v62 }
 0x416   : > { %3605 = vmatpush.msra.mxu2 %v3439_v17 }
 0x418   : > { %3606 = vmatpush.msra.mxu2 %v3438_v55 }
 0x419   : > { %5632 = vmatmul.msk.f32.gmra.mxu3 %vm3493_vm4, %v3462_v3 }
 0x41a   : > { %3607 = vmatpush.msra.mxu2 %v3437_v39 }
 0x41b   : > { %3568 = vmatmul.f32.gmra.mxu1 %v3469_v49 }
 0x41c   : > { %3608 = vmatpush.msra.mxu2 %v3436_v4 }
 0x41d   : > { %3609 = vmatmul.f32.vlgmr.msra.gmra.mxu2 %v3455_v33 }
 0x41e   : > { %3864 = vmatpush.msrb.mxu2 %v3729_v47  ;;  %v5697_v47 = vld [vmem:[%s7625_s2 + $0x28] sm:$0xff] }
 0x41f   : > { %4250 = vmatpush.msra.mxu3 %v5697_v47 }
 0x421   : > { %5633 = vmatmul.msk.f32.gmra.mxu3 %vm3493_vm4, %v3465_v36 }
 0x423   : > { %3571 = vmatmul.f32.gmra.mxu1 %v3472_v11 }
 0x425   : > { %3612 = vmatmul.f32.gmra.mxu2 %v3458_v61 }
 0x429   : > { %5634 = vmatmul.msk.f32.gmra.mxu3 %vm3493_vm4, %v3468_v13 }
 0x42b   : > { %3574 = vmatmul.f32.gmra.mxu1 %v3475_v58 }
 0x42d   : > { %3615 = vmatmul.f32.gmra.mxu2 %v3461_v5 }
 0x431   : > { %5635 = vmatmul.msk.f32.gmra.mxu3 %vm3493_vm4, %v3471_v56 }
 0x433   : > { %3577 = vmatmul.f32.gmra.mxu1 %v3478_v12 }
 0x435   : > { %3618 = vmatmul.f32.gmra.mxu2 %v3464_v22 }
 0x439   : > { %5636 = vmatmul.msk.f32.gmra.mxu3 %vm3493_vm4, %v3474_v10 }
 0x43b   : > { %3580 = vmatmul.f32.gmra.mxu1 %v3481_v25 }
 0x43d   : > { %3621 = vmatmul.f32.gmra.mxu2 %v3467_v53  ;;  %v3554_v32 = vpop.f32.mrf.mxu1 }
 0x441   : > { %5637 = vmatmul.msk.f32.gmra.mxu3 %vm3493_vm4, %v3477_v24 }
 0x443   : > { %3583 = vmatmul.f32.gmra.mxu1 %v3484_v37 }
 0x445   : > { %3624 = vmatmul.f32.gmra.mxu2 %v3470_v8 }
 0x449   : > { %5638 = vmatmul.msk.f32.gmra.mxu3 %vm3493_vm4, %v3480_v29 }
 0x44b   : > { %3586 = vmatmul.f32.gmra.mxu1 %v3487_v0 }
 0x44d   : > { %3627 = vmatmul.f32.gmra.mxu2 %v3473_v45 }
 0x451   : > { %5639 = vmatmul.msk.f32.gmra.mxu3 %vm3493_vm4, %v3483_v19 }
 0x453   : > { %3589 = vmatmul.f32.gmra.mxu1 %v3490_v40 }
 0x455   : > { %3630 = vmatmul.f32.gmra.mxu2 %v3476_v50 }
 0x459   : > { %5640 = vmatmul.msk.f32.gmra.mxu3 %vm3493_vm4, %v3486_v28 }
 0x45d   : > { %3633 = vmatmul.f32.gmra.mxu2 %v3479_v52 }
 0x461   : > { %5641 = vmatmul.msk.f32.gmra.mxu3 %vm3493_vm4, %v3489_v46 }
 0x465   : > { %3636 = vmatmul.f32.gmra.mxu2 %v3482_v35 }
 0x469   : > { %5642 = vmatmul.msk.f32.gmra.mxu3 %vm3493_vm4, %v3492_v42 }
 0x46d   : > { %3639 = vmatmul.f32.gmra.mxu2 %v3485_v26 }
 0x475   : > { %3642 = vmatmul.f32.gmra.mxu2 %v3488_v23 }
 0x478   : > { %v3557_v57 = vpop.f32.mrf.mxu1 }
 0x47d   : > { %3645 = vmatmul.f32.gmra.mxu2 %v3491_v7 }
 0x480   : > { %v3560_v9 = vpop.f32.mrf.mxu1 }
 0x488   : > { %v3563_v2 = vpop.f32.mrf.mxu1 }
 0x48c   : > { %v3666_v30 = vpop.f32.mrf.mxu3 }
 0x490   : > { %v3566_v63 = vpop.f32.mrf.mxu1 }
 0x494   : > { %v3669_v44 = vpop.f32.mrf.mxu3 }
 0x498   : > { %v3569_v60 = vpop.f32.mrf.mxu1 }
 0x49c   : > { %v3672_v43 = vpop.f32.mrf.mxu3 }
 0x4a0   : > { %v3610_v15 = vpop.f32.mrf.mxu2  ;;  %v3572_v56 = vpop.f32.mrf.mxu1 }
 0x4a1   : > { %v3611_v6 = vadd.f32 %v3610_v15, %v3554_v32  ;;  %v5686_v32 = vld [vmem:[%s7625_s2 + $0x20] sm:$0xff] }
 0x4a2   : > { %4151 = vmatpush.msra.mxu2 %v5686_v32 }
 0x4a3   : > { %v3667_v38 = vadd.f32 %v3666_v30, %v3611_v6  ;;  %v5675_v30 = vld [vmem:[%s7625_s2 + $0x18] sm:$0xff] }
 0x4a4   : > { %v3675_v62 = vpop.f32.mrf.mxu3  ;;  %4052 = vmatpush.msra.mxu1 %v5675_v30 }
 0x4a5   : > { %3705 = vst.msk [vmem:[#allocation4] sm:$0xff] %vm3179_vm2, %v3667_v38 }
 0x4a8   : > { %v3613_v14 = vpop.f32.mrf.mxu2  ;;  %v3575_v25 = vpop.f32.mrf.mxu1 }
 0x4a9   : > { %v3614_v34 = vadd.f32 %v3613_v14, %v3557_v57 }
 0x4ab   : > { %v3670_v54 = vadd.f32 %v3669_v44, %v3614_v34 }
 0x4ac   : > { %v3719_v48 = vld [vmem:[#allocation4] sm:$0xff]  ;;  %v3678_v16 = vpop.f32.mrf.mxu3 }
 0x4ad   : > { %3706 = vst.msk [vmem:[#allocation4 + $0x8] sm:$0xff] %vm3179_vm2, %v3670_v54  ;;  %5654 = vmatmul.msk.f32.vlgmr.msrb.gmra.mxu2 %vm3179_vm2, %v3719_v48 }
 0x4b0   : > { %v3616_v20 = vpop.f32.mrf.mxu2  ;;  %v3578_v46 = vpop.f32.mrf.mxu1 }
 0x4b1   : > { %v3617_v17 = vadd.f32 %v3616_v20, %v3560_v9 }
 0x4b3   : > { %v3673_v1 = vadd.f32 %v3672_v43, %v3617_v17 }
 0x4b4   : > { %v3730_v21 = vld [vmem:[#allocation4 + $0x1] sm:$0xff]  ;;  %v3681_v27 = vpop.f32.mrf.mxu3 }
 0x4b5   : > { %v3720_v59 = vld [vmem:[#allocation4 + $0x8] sm:$0xff]  ;;  %3707 = vst.msk [vmem:[#allocation4 + $0x10] sm:$0xff] %vm3179_vm2, %v3673_v1  ;;  %5644 = vmatmul.msk.f32.vlgmr.msrb.gmra.mxu1 %vm3179_vm2, %v3730_v21 }
 0x4b6   : > { %v3896_v55 = vld [vmem:[#allocation4 + $0x2] sm:$0xff]  ;;  %5655 = vmatmul.msk.f32.gmra.mxu2 %vm3179_vm2, %v3720_v59 }
 0x4b7   : > { %5665 = vmatmul.msk.f32.vlgmr.msrb.gmra.mxu3 %vm3179_vm2, %v3896_v55 }
 0x4b8   : > { %v3619_v31 = vpop.f32.mrf.mxu2  ;;  %v3581_v41 = vpop.f32.mrf.mxu1 }
 0x4b9   : > { %v3620_v3 = vadd.f32 %v3619_v31, %v3563_v2 }
 0x4bb   : > { %v3676_v39 = vadd.f32 %v3675_v62, %v3620_v3 }
 0x4bc   : > { %v3731_v18 = vld [vmem:[#allocation4 + $0x9] sm:$0xff]  ;;  %v3684_v22 = vpop.f32.mrf.mxu3 }
 0x4bd   : > { %v3721_v4 = vld [vmem:[#allocation4 + $0x10] sm:$0xff]  ;;  %3708 = vst.msk [vmem:[#allocation4 + $0x18] sm:$0xff] %vm3179_vm2, %v3676_v39  ;;  %5645 = vmatmul.msk.f32.gmra.mxu1 %vm3179_vm2, %v3731_v18 }
 0x4be   : > { %v7161_v33 = vld [vmem:[#allocation4 + $0xa] sm:$0xff]  ;;  %5656 = vmatmul.msk.f32.gmra.mxu2 %vm3179_vm2, %v3721_v4 }
 0x4bf   : > { %5666 = vmatmul.msk.f32.gmra.mxu3 %vm3179_vm2, %v7161_v33 }
 0x4c0   : > { %v3622_v36 = vpop.f32.mrf.mxu2  ;;  %v3584_v48 = vpop.f32.mrf.mxu1 }
 0x4c1   : > { %v3623_v61 = vadd.f32 %v3622_v36, %v3566_v63 }
 0x4c3   : > { %v3679_v49 = vadd.f32 %v3678_v16, %v3623_v61 }
 0x4c4   : > { %v3732_v13 = vld [vmem:[#allocation4 + $0x11] sm:$0xff]  ;;  %v3687_v45 = vpop.f32.mrf.mxu3 }
 0x4c5   : > { %v3722_v5 = vld [vmem:[#allocation4 + $0x18] sm:$0xff]  ;;  %3709 = vst.msk [vmem:[#allocation4 + $0x20] sm:$0xff] %vm3179_vm2, %v3679_v49  ;;  %5646 = vmatmul.msk.f32.gmra.mxu1 %vm3179_vm2, %v3732_v13  ;;  %v4193_v49 = vld [vmem:[#allocation4 + $0xc] sm:$0xff] }
 0x4c6   : > { %v7168_v11 = vld [vmem:[#allocation4 + $0x12] sm:$0xff]  ;;  %5657 = vmatmul.msk.f32.gmra.mxu2 %vm3179_vm2, %v3722_v5 }
 0x4c7   : > { %5667 = vmatmul.msk.f32.gmra.mxu3 %vm3179_vm2, %v7168_v11  ;;  %v4095_v61 = vld [vmem:[#allocation4 + $0x13] sm:$0xff] }
 0x4c8   : > { %v3625_v58 = vpop.f32.mrf.mxu2  ;;  %v3587_v55 = vpop.f32.mrf.mxu1 }
 0x4c9   : > { %v3626_v10 = vadd.f32 %v3625_v58, %v3569_v60 }
 0x4cb   : > { %v3682_v53 = vadd.f32 %v3681_v27, %v3626_v10  ;;  %v4094_v27 = vld [vmem:[#allocation4 + $0xb] sm:$0xff]  ;;  %v7240_v10 = vld [vmem:[#allocation4 + $0x14] sm:$0xff] }
 0x4cc   : > { %v3733_v12 = vld [vmem:[#allocation4 + $0x19] sm:$0xff]  ;;  %v3690_v26 = vpop.f32.mrf.mxu3 }
 0x4cd   : > { %v3723_v24 = vld [vmem:[#allocation4 + $0x20] sm:$0xff]  ;;  %3710 = vst.msk [vmem:[#allocation4 + $0x28] sm:$0xff] %vm3179_vm2, %v3682_v53  ;;  %5647 = vmatmul.msk.f32.gmra.mxu1 %vm3179_vm2, %v3733_v12 }
 0x4ce   : > { %v7175_v8 = vld [vmem:[#allocation4 + $0x1a] sm:$0xff]  ;;  %5658 = vmatmul.msk.f32.gmra.mxu2 %vm3179_vm2, %v3723_v24 }
 0x4cf   : > { %5668 = vmatmul.msk.f32.gmra.mxu3 %vm3179_vm2, %v7175_v8  ;;  %v4096_v58 = vld [vmem:[#allocation4 + $0x1b] sm:$0xff] }
 0x4d0   : > { %v3628_v29 = vpop.f32.mrf.mxu2  ;;  %v3590_v36 = vpop.f32.mrf.mxu1  ;;  %v7247_v53 = vld [vmem:[#allocation4 + $0x1c] sm:$0xff] }
 0x4d1   : > { %v3629_v37 = vadd.f32 %v3628_v29, %v3572_v56 }
 0x4d3   : > { %v3685_v19 = vadd.f32 %v3684_v22, %v3629_v37 }
 0x4d4   : > { %v3734_v50 = vld [vmem:[#allocation4 + $0x21] sm:$0xff]  ;;  %v3693_v6 = vpop.f32.mrf.mxu3 }
 0x4d5   : > { %v3724_v0 = vld [vmem:[#allocation4 + $0x28] sm:$0xff]  ;;  %3711 = vst.msk [vmem:[#allocation4 + $0x30] sm:$0xff] %vm3179_vm2, %v3685_v19  ;;  %5648 = vmatmul.msk.f32.gmra.mxu1 %vm3179_vm2, %v3734_v50  ;;  %v5708_v50 = vld [vmem:[%s7625_s2 + $0x30] sm:$0xff] }
 0x4d6   : > { %v7182_v28 = vld [vmem:[#allocation4 + $0x22] sm:$0xff]  ;;  %5659 = vmatmul.msk.f32.gmra.mxu2 %vm3179_vm2, %v3724_v0  ;;  %v5730_v0 = vld [vmem:[%s7625_s2 + $0x40] sm:$0xff]  ;;  %4349 = vmatpush.msrb.mxu1 %v5708_v50 }
 0x4d7   : > { %5669 = vmatmul.msk.f32.gmra.mxu3 %vm3179_vm2, %v7182_v28 }
 0x4d8   : > { %v3631_v52 = vpop.f32.mrf.mxu2  ;;  %4547 = vmatpush.msrb.mxu3 %v5730_v0 }
 0x4d9   : > { %v3632_v35 = vadd.f32 %v3631_v52, %v3575_v25  ;;  %v5719_v25 = vld [vmem:[%s7625_s2 + $0x38] sm:$0xff] }
 0x4da   : > { %4448 = vmatpush.msrb.mxu2 %v5719_v25 }
 0x4db   : > { %v3688_v23 = vadd.f32 %v3687_v45, %v3632_v35 }
 0x4dc   : > { %v3735_v7 = vld [vmem:[#allocation4 + $0x29] sm:$0xff]  ;;  %v3696_v20 = vpop.f32.mrf.mxu3 }
 0x4dd   : > { %v3725_v42 = vld [vmem:[#allocation4 + $0x30] sm:$0xff]  ;;  %3712 = vst.msk [vmem:[#allocation4 + $0x38] sm:$0xff] %vm3179_vm2, %v3688_v23  ;;  %5649 = vmatmul.msk.f32.gmra.mxu1 %vm3179_vm2, %v3735_v7 }
 0x4de   : > { %v7189_v40 = vld [vmem:[#allocation4 + $0x2a] sm:$0xff]  ;;  %5660 = vmatmul.msk.f32.gmra.mxu2 %vm3179_vm2, %v3725_v42 }
 0x4df   : > { %5670 = vmatmul.msk.f32.gmra.mxu3 %vm3179_vm2, %v7189_v40  ;;  %v4098_v12 = vld [vmem:[#allocation4 + $0x2b] sm:$0xff] }
 0x4e0   : > { %v3634_v57 = vpop.f32.mrf.mxu2 }
 0x4e1   : > { %v3635_v44 = vadd.f32 %v3634_v57, %v3578_v46 }
 0x4e3   : > { %v3691_v51 = vadd.f32 %v3690_v26, %v3635_v44 }
 0x4e4   : > { %v3736_v9 = vld [vmem:[#allocation4 + $0x31] sm:$0xff]  ;;  %v3699_v3 = vpop.f32.mrf.mxu3 }
 0x4e5   : > { %v3726_v43 = vld [vmem:[#allocation4 + $0x38] sm:$0xff]  ;;  %3713 = vst.msk [vmem:[#allocation4 + $0x40] sm:$0xff] %vm3179_vm2, %v3691_v51  ;;  %5650 = vmatmul.msk.f32.gmra.mxu1 %vm3179_vm2, %v3736_v9 }
 0x4e6   : > { %v7205_v15 = vld [vmem:[#allocation4 + $0x32] sm:$0xff]  ;;  %5661 = vmatmul.msk.f32.gmra.mxu2 %vm3179_vm2, %v3726_v43 }
 0x4e7   : > { %5671 = vmatmul.msk.f32.gmra.mxu3 %vm3179_vm2, %v7205_v15  ;;  %v4099_v24 = vld [vmem:[#allocation4 + $0x33] sm:$0xff] }
 0x4e8   : > { %v3637_v38 = vpop.f32.mrf.mxu2  ;;  %v7271_v45 = vld [vmem:[#allocation4 + $0x34] sm:$0xff] }
 0x4e9   : > { %v3638_v2 = vadd.f32 %v3637_v38, %v3581_v41 }
 0x4eb   : > { %v3694_v14 = vadd.f32 %v3693_v6, %v3638_v2 }
 0x4ec   : > { %v3737_v62 = vld [vmem:[#allocation4 + $0x39] sm:$0xff]  ;;  %v3702_v56 = vpop.f32.mrf.mxu3 }
 0x4ed   : > { %v3727_v34 = vld [vmem:[#allocation4 + $0x40] sm:$0xff]  ;;  %3714 = vst.msk [vmem:[#allocation4 + $0x48] sm:$0xff] %vm3179_vm2, %v3694_v14  ;;  %5651 = vmatmul.msk.f32.gmra.mxu1 %vm3179_vm2, %v3737_v62  ;;  %v4391_v14 = vld [vmem:[#allocation4 + $0x15] sm:$0xff] }
 0x4ee   : > { %v7212_v54 = vld [vmem:[#allocation4 + $0x3a] sm:$0xff]  ;;  %5662 = vmatmul.msk.f32.gmra.mxu2 %vm3179_vm2, %v3727_v34 }
 0x4ef   : > { %5672 = vmatmul.msk.f32.gmra.mxu3 %vm3179_vm2, %v7212_v54  ;;  %v4100_v29 = vld [vmem:[#allocation4 + $0x3b] sm:$0xff] }
 0x4f0   : > { %v3640_v63 = vpop.f32.mrf.mxu2  ;;  %v7284_v52 = vld [vmem:[#allocation4 + $0x3c] sm:$0xff] }
 0x4f1   : > { %v3641_v17 = vadd.f32 %v3640_v63, %v3584_v48 }
 0x4f3   : > { %v3697_v16 = vadd.f32 %v3696_v20, %v3641_v17  ;;  %v4392_v17 = vld [vmem:[#allocation4 + $0x1d] sm:$0xff] }
 0x4f4   : > { %v3738_v1 = vld [vmem:[#allocation4 + $0x41] sm:$0xff] }
 0x4f5   : > { %v3728_v21 = vld [vmem:[#allocation4 + $0x48] sm:$0xff]  ;;  %3715 = vst.msk [vmem:[#allocation4 + $0x50] sm:$0xff] %vm3179_vm2, %v3697_v16  ;;  %5652 = vmatmul.msk.f32.gmra.mxu1 %vm3179_vm2, %v3738_v1  ;;  %v4490_v16 = vld [vmem:[#allocation4 + $0x16] sm:$0xff] }
 0x4f6   : > { %v7219_v59 = vld [vmem:[#allocation4 + $0x42] sm:$0xff]  ;;  %5663 = vmatmul.msk.f32.gmra.mxu2 %vm3179_vm2, %v3728_v21 }
 0x4f7   : > { %5673 = vmatmul.msk.f32.gmra.mxu3 %vm3179_vm2, %v7219_v59 }
 0x4f8   : > { %v3643_v31 = vpop.f32.mrf.mxu2 }
 0x4f9   : > { %v3644_v60 = vadd.f32 %v3643_v31, %v3587_v55 }
 0x4fb   : > { %v3700_v39 = vadd.f32 %v3699_v3, %v3644_v60  ;;  %v4393_v3 = vld [vmem:[#allocation4 + $0x25] sm:$0xff] }
 0x4fc   : > { %v3739_v18 = vld [vmem:[#allocation4 + $0x49] sm:$0xff]  ;;  %v4491_v60 = vld [vmem:[#allocation4 + $0x1e] sm:$0xff] }
 0x4fd   : > { %v7226_v4 = vld [vmem:[#allocation4 + $0x4a] sm:$0xff]  ;;  %3716 = vst.msk [vmem:[#allocation4 + $0x58] sm:$0xff] %vm3179_vm2, %v3700_v39  ;;  %5653 = vmatmul.msk.f32.gmra.mxu1 %vm3179_vm2, %v3739_v18 }
 0x4fe   : > { %5687 = vmatmul.msk.f32.vlgmr.msra.gmra.mxu2 %vm3179_vm2, %v4094_v27  ;;  %v4102_v42 = vld [vmem:[#allocation4 + $0x4b] sm:$0xff] }
 0x4ff   : > { %5674 = vmatmul.msk.f32.gmra.mxu3 %vm3179_vm2, %v7226_v4  ;;  %v7302_v51 = vld [vmem:[#allocation4 + $0x4c] sm:$0xff] }
 0x500   : > { %v3646_v13 = vpop.f32.mrf.mxu2 }
 0x501   : > { %v3647_v5 = vadd.f32 %v3646_v13, %v3590_v36 }
 0x503   : > { %v3703_v22 = vadd.f32 %v3702_v56, %v3647_v5 }
 0x504   : > { %v4103_v41 = vld [vmem:[#allocation4 + $0x53] sm:$0xff] }
 0x505   : > { %5676 = vmatmul.msk.f32.vlgmr.msra.gmra.mxu1 %vm3179_vm2, %v7161_v33  ;;  %3718 = vst.msk [vmem:[#allocation4 + $0x60] sm:$0x3f] %vm3717_vm5, %v3703_v22  ;;  %v4097_v33 = vld [vmem:[#allocation4 + $0x23] sm:$0xff]  ;;  %v4004_v2 = vld [vmem:[#allocation4 + $0x52] sm:$0xff] }
 0x506   : > { %5688 = vmatmul.msk.f32.gmra.mxu2 %vm3179_vm2, %v4095_v61  ;;  %v7309_v62 = vld [vmem:[#allocation4 + $0x54] sm:$0xff] }
 0x507   : > { %5698 = vmatmul.msk.f32.vlgmr.msra.gmra.mxu3 %vm3179_vm2, %v4193_v49  ;;  %v4394_v61 = vld [vmem:[#allocation4 + $0x2d] sm:$0xff]  ;;  %v4395_v22 = vld [vmem:[#allocation4 + $0x35] sm:$0xff] }
 0x508   : > { %v4492_v49 = vld [vmem:[#allocation4 + $0x26] sm:$0xff] }
 0x50d   : > { %5677 = vmatmul.msk.f32.gmra.mxu1 %vm3179_vm2, %v7168_v11  ;;  %v7254_v11 = vld [vmem:[#allocation4 + $0x24] sm:$0xff] }
 0x50e   : > { %5689 = vmatmul.msk.f32.gmra.mxu2 %vm3179_vm2, %v4096_v58  ;;  %v4493_v58 = vld [vmem:[#allocation4 + $0x2e] sm:$0xff] }
 0x50f   : > { %5699 = vmatmul.msk.f32.gmra.mxu3 %vm3179_vm2, %v7240_v10 }
 0x515   : > { %5678 = vmatmul.msk.f32.gmra.mxu1 %vm3179_vm2, %v7175_v8  ;;  %v7261_v8 = vld [vmem:[#allocation4 + $0x2c] sm:$0xff] }
 0x516   : > { %5690 = vmatmul.msk.f32.gmra.mxu2 %vm3179_vm2, %v4097_v33 }
 0x517   : > { %5700 = vmatmul.msk.f32.gmra.mxu3 %vm3179_vm2, %v7247_v53 }
 0x51d   : > { %5679 = vmatmul.msk.f32.gmra.mxu1 %vm3179_vm2, %v7182_v28  ;;  %v4101_v28 = vld [vmem:[#allocation4 + $0x43] sm:$0xff] }
 0x51e   : > { %5691 = vmatmul.msk.f32.gmra.mxu2 %vm3179_vm2, %v4098_v12  ;;  %v4396_v12 = vld [vmem:[#allocation4 + $0x3d] sm:$0xff] }
 0x51f   : > { %5701 = vmatmul.msk.f32.gmra.mxu3 %vm3179_vm2, %v7254_v11 }
 0x525   : > { %5680 = vmatmul.msk.f32.gmra.mxu1 %vm3179_vm2, %v7189_v40  ;;  %v7293_v40 = vld [vmem:[#allocation4 + $0x44] sm:$0xff] }
 0x526   : > { %5692 = vmatmul.msk.f32.gmra.mxu2 %vm3179_vm2, %v4099_v24 }
 0x527   : > { %5702 = vmatmul.msk.f32.gmra.mxu3 %vm3179_vm2, %v7261_v8 }
 0x52d   : > { %5681 = vmatmul.msk.f32.gmra.mxu1 %vm3179_vm2, %v7205_v15 }
 0x52e   : > { %5693 = vmatmul.msk.f32.gmra.mxu2 %vm3179_vm2, %v4100_v29 }
 0x52f   : > { %5703 = vmatmul.msk.f32.gmra.mxu3 %vm3179_vm2, %v7271_v45 }
 0x530   : > { %v3866_v37 = vpop.f32.mrf.mxu2 }
 0x532   : > { %v3789_v19 = vpop.f32.mrf.mxu1 }
 0x533   : > { %v3867_v46 = vadd.f32 %v3866_v37, %v3789_v19  ;;  %v4397_v37 = vld [vmem:[#allocation4 + $0x45] sm:$0xff] }
 0x534   : > { %v4495_v19 = vld [vmem:[#allocation4 + $0x3e] sm:$0xff] }
 0x535   : > { %5682 = vmatmul.msk.f32.gmra.mxu1 %vm3179_vm2, %v7212_v54 }
 0x536   : > { %5694 = vmatmul.msk.f32.gmra.mxu2 %vm3179_vm2, %v4101_v28 }
 0x537   : > { %5704 = vmatmul.msk.f32.gmra.mxu3 %vm3179_vm2, %v7284_v52 }
 0x539   : > { %v3869_v35 = vpop.f32.mrf.mxu2 }
 0x53a   : > { %v3955_v26 = vpop.f32.mrf.mxu3  ;;  %v3792_v7 = vpop.f32.mrf.mxu1 }
 0x53b   : > { %v7288_v23 = vadd.f32 %v3955_v26, %v3867_v46  ;;  %v3870_v32 = vadd.f32 %v3869_v35, %v3792_v7  ;;  %v4398_v35 = vld [vmem:[#allocation4 + $0x4d] sm:$0xff] }
 0x53c   : > { %v4496_v26 = vld [vmem:[#allocation4 + $0x46] sm:$0xff] }
 0x53d   : > { %5683 = vmatmul.msk.f32.gmra.mxu1 %vm3179_vm2, %v7219_v59 }
 0x53e   : > { %5695 = vmatmul.msk.f32.gmra.mxu2 %vm3179_vm2, %v4102_v42 }
 0x53f   : > { %5705 = vmatmul.msk.f32.gmra.mxu3 %vm3179_vm2, %v7293_v40 }
 0x541   : > { %v3872_v30 = vpop.f32.mrf.mxu2 }
 0x542   : > { %v3958_v47 = vpop.f32.mrf.mxu3  ;;  %v3795_v44 = vpop.f32.mrf.mxu1 }
 0x543   : > { %v7297_v57 = vadd.f32 %v3958_v47, %v3870_v32  ;;  %v3873_v9 = vadd.f32 %v3872_v30, %v3795_v44  ;;  %v4399_v44 = vld [vmem:[#allocation4 + $0x55] sm:$0xff] }
 0x545   : > { %5684 = vmatmul.msk.f32.gmra.mxu1 %vm3179_vm2, %v7226_v4 }
 0x546   : > { %5696 = vmatmul.msk.f32.gmra.mxu2 %vm3179_vm2, %v4103_v41 }
 0x547   : > { %5706 = vmatmul.msk.f32.gmra.mxu3 %vm3179_vm2, %v7302_v51 }
 0x549   : > { %v3875_v43 = vpop.f32.mrf.mxu2 }
 0x54a   : > { %v3961_v15 = vpop.f32.mrf.mxu3  ;;  %v3798_v38 = vpop.f32.mrf.mxu1 }
 0x54b   : > { %v7306_v6 = vadd.f32 %v3961_v15, %v3873_v9  ;;  %v3876_v34 = vadd.f32 %v3875_v43, %v3798_v38 }
 0x54d   : > { %5685 = vmatmul.msk.f32.gmra.mxu1 %vm3179_vm2, %v4004_v2  ;;  %v4400_v2 = vld [vmem:[#allocation4 + $0x5d] sm:$0xff] }
 0x54e   : > { %5720 = vmatmul.msk.f32.vlgmr.msrb.gmra.mxu2 %vm3179_vm2, %v4391_v14 }
 0x54f   : > { %5707 = vmatmul.msk.f32.gmra.mxu3 %vm3179_vm2, %v7309_v62 }
 0x551   : > { %v3878_v54 = vpop.f32.mrf.mxu2 }
 0x552   : > { %v3964_v48 = vpop.f32.mrf.mxu3  ;;  %v3801_v63 = vpop.f32.mrf.mxu1 }
 0x553   : > { %v7314_v20 = vadd.f32 %v3964_v48, %v3876_v34  ;;  %v3879_v1 = vadd.f32 %v3878_v54, %v3801_v63 }
 0x555   : > { %5709 = vmatmul.msk.f32.vlgmr.msrb.gmra.mxu1 %vm3179_vm2, %v7240_v10 }
 0x556   : > { %5721 = vmatmul.msk.f32.gmra.mxu2 %vm3179_vm2, %v4392_v17  ;;  %v4301_v17 = vld [vmem:[#allocation4 + $0x5c] sm:$0xff] }
 0x557   : > { %5731 = vmatmul.msk.f32.vlgmr.msrb.gmra.mxu3 %vm3179_vm2, %v4490_v16 }
 0x559   : > { %v3881_v21 = vpop.f32.mrf.mxu2 }
 0x55a   : > { %v3967_v59 = vpop.f32.mrf.mxu3  ;;  %v3804_v31 = vpop.f32.mrf.mxu1 }
 0x55b   : > { %v7320_v55 = vadd.f32 %v3967_v59, %v3879_v1  ;;  %v3882_v39 = vadd.f32 %v3881_v21, %v3804_v31 }
 0x55d   : > { %5710 = vmatmul.msk.f32.gmra.mxu1 %vm3179_vm2, %v7247_v53 }
 0x55e   : > { %5722 = vmatmul.msk.f32.gmra.mxu2 %vm3179_vm2, %v4393_v3 }
 0x55f   : > { %5732 = vmatmul.msk.f32.gmra.mxu3 %vm3179_vm2, %v4491_v60 }
 0x561   : > { %v7326_v18 = vpop.f32.mrf.mxu2 }
 0x562   : > { %v3970_v4 = vpop.f32.mrf.mxu3  ;;  %v7330_v36 = vpop.f32.mrf.mxu1 }
 0x563   : > { %v7328_v27 = vadd.f32 %v3970_v4, %v3882_v39 }
 0x565   : > { %5711 = vmatmul.msk.f32.gmra.mxu1 %vm3179_vm2, %v7254_v11  ;;  %v4494_v11 = vld [vmem:[#allocation4 + $0x36] sm:$0xff] }
 0x566   : > { %5723 = vmatmul.msk.f32.gmra.mxu2 %vm3179_vm2, %v4394_v61 }
 0x567   : > { %5733 = vmatmul.msk.f32.gmra.mxu3 %vm3179_vm2, %v4492_v49 }
 0x569   : > { %v7336_v13 = vpop.f32.mrf.mxu2 }
 0x56a   : > { %v7338_v5 = vpop.f32.mrf.mxu3  ;;  %v7340_v56 = vpop.f32.mrf.mxu1 }
 0x56d   : > { %5712 = vmatmul.msk.f32.gmra.mxu1 %vm3179_vm2, %v7261_v8 }
 0x56e   : > { %5724 = vmatmul.msk.f32.gmra.mxu2 %vm3179_vm2, %v4395_v22  ;;  %v3885_v22 = vadd.f32 %v7326_v18, %v7330_v36 }
 0x56f   : > { %5734 = vmatmul.msk.f32.gmra.mxu3 %vm3179_vm2, %v4493_v58 }
 0x571   : > { %v7346_v10 = vpop.f32.mrf.mxu2 }
 0x572   : > { %v7348_v33 = vpop.f32.mrf.mxu3  ;;  %v7350_v53 = vpop.f32.mrf.mxu1 }
 0x575   : > { %5713 = vmatmul.msk.f32.gmra.mxu1 %vm3179_vm2, %v7271_v45 }
 0x576   : > { %5725 = vmatmul.msk.f32.gmra.mxu2 %vm3179_vm2, %v4396_v12  ;;  %v3991_v12 = vadd.f32 %v7338_v5, %v3885_v22  ;;  %v3891_v5 = vadd.f32 %v7346_v10, %v7350_v53 }
 0x577   : > { %5735 = vmatmul.msk.f32.gmra.mxu3 %vm3179_vm2, %v4494_v11 }
 0x579   : > { %v3893_v24 = vpop.f32.mrf.mxu2 }
 0x57a   : > { %v7356_v8 = vpop.f32.mrf.mxu3  ;;  %v3816_v25 = vpop.f32.mrf.mxu1 }
 0x57b   : > { %v3894_v29 = vadd.f32 %v3893_v24, %v3816_v25 }
 0x57d   : > { %5714 = vmatmul.msk.f32.gmra.mxu1 %vm3179_vm2, %v7284_v52 }
 0x57e   : > { %5726 = vmatmul.msk.f32.gmra.mxu2 %vm3179_vm2, %v4397_v37  ;;  %v3888_v37 = vadd.f32 %v7336_v13, %v7340_v56 }
 0x57f   : > { %5736 = vmatmul.msk.f32.gmra.mxu3 %vm3179_vm2, %v4495_v19 }
 0x581   : > { %v4153_v45 = vpop.f32.mrf.mxu2 }
 0x582   : > { %v3982_v50 = vpop.f32.mrf.mxu3  ;;  %v4054_v28 = vpop.f32.mrf.mxu1 }
 0x583   : > { %v7362_v0 = vadd.f32 %v3982_v50, %v3894_v29  ;;  %v4084_v46 = vadd.f32 %v4054_v28, %v7288_v23  ;;  %v4497_v23 = vld [vmem:[#allocation4 + $0x4e] sm:$0xff] }
 0x585   : > { %5715 = vmatmul.msk.f32.gmra.mxu1 %vm3179_vm2, %v7293_v40  ;;  %v4183_v52 = vadd.f32 %v4153_v45, %v4084_v46  ;;  %v3992_v45 = vadd.f32 %v7348_v33, %v3888_v37 }
 0x586   : > { %5727 = vmatmul.msk.f32.gmra.mxu2 %vm3179_vm2, %v4398_v35  ;;  %v3993_v35 = vadd.f32 %v7356_v8, %v3891_v5 }
 0x587   : > { %5737 = vmatmul.msk.f32.gmra.mxu3 %vm3179_vm2, %v4496_v26 }
 0x589   : > { %v4156_v7 = vpop.f32.mrf.mxu2 }
 0x58a   : > { %v4252_v42 = vpop.f32.mrf.mxu3  ;;  %v4057_v30 = vpop.f32.mrf.mxu1 }
 0x58b   : > { %v7369_v32 = vadd.f32 %v4252_v42, %v4183_v52  ;;  %v4085_v47 = vadd.f32 %v4057_v30, %v7297_v57  ;;  %v4498_v57 = vld [vmem:[#allocation4 + $0x56] sm:$0xff] }
 0x58d   : > { %5716 = vmatmul.msk.f32.gmra.mxu1 %vm3179_vm2, %v7302_v51  ;;  %v4184_v40 = vadd.f32 %v4156_v7, %v4085_v47 }
 0x58e   : > { %5728 = vmatmul.msk.f32.gmra.mxu2 %vm3179_vm2, %v4399_v44 }
 0x58f   : > { %5738 = vmatmul.msk.f32.gmra.mxu3 %vm3179_vm2, %v4497_v23 }
 0x591   : > { %v4159_v41 = vpop.f32.mrf.mxu2 }
 0x592   : > { %v4255_v9 = vpop.f32.mrf.mxu3  ;;  %v4060_v15 = vpop.f32.mrf.mxu1 }
 0x593   : > { %v7376_v43 = vadd.f32 %v4255_v9, %v4184_v40  ;;  %v4086_v38 = vadd.f32 %v4060_v15, %v7306_v6  ;;  %v4499_v6 = vld [vmem:[#allocation4 + $0x5e] sm:$0xff] }
 0x595   : > { %5717 = vmatmul.msk.f32.gmra.mxu1 %vm3179_vm2, %v7309_v62  ;;  %v4185_v51 = vadd.f32 %v4159_v41, %v4086_v38  ;;  %v7418_v38 = vld [vmem:[%s7627_s4] ss:$0 sm:$0xff] }
 0x596   : > { %5729 = vmatmul.msk.f32.gmra.mxu2 %vm3179_vm2, %v4400_v2 }
 0x597   : > { %5739 = vmatmul.msk.f32.gmra.mxu3 %vm3179_vm2, %v4498_v57 }
 0x599   : > { %v4162_v14 = vpop.f32.mrf.mxu2 }
 0x59a   : > { %v4258_v34 = vpop.f32.mrf.mxu3  ;;  %v4063_v48 = vpop.f32.mrf.mxu1 }
 0x59b   : > { %v7383_v54 = vadd.f32 %v4258_v34, %v4185_v51  ;;  %v4087_v63 = vadd.f32 %v4063_v48, %v7314_v20 }
 0x59d   : > { %5718 = vmatmul.msk.f32.gmra.mxu1 %vm3179_vm2, %v4301_v17  ;;  %v4186_v16 = vadd.f32 %v4162_v14, %v4087_v63 }
 0x59f   : > { %5740 = vmatmul.msk.f32.gmra.mxu3 %vm3179_vm2, %v4499_v6 }
 0x5a1   : > { %v4165_v62 = vpop.f32.mrf.mxu2 }
 0x5a2   : > { %v4261_v1 = vpop.f32.mrf.mxu3  ;;  %v4066_v59 = vpop.f32.mrf.mxu1 }
 0x5a3   : > { %v7388_v21 = vadd.f32 %v4261_v1, %v4186_v16  ;;  %v4088_v31 = vadd.f32 %v4066_v59, %v7320_v55 }
 0x5a5   : > { %v4187_v3 = vadd.f32 %v4165_v62, %v4088_v31 }
 0x5a9   : > { %v4168_v60 = vpop.f32.mrf.mxu2 }
 0x5aa   : > { %v4264_v39 = vpop.f32.mrf.mxu3  ;;  %v4069_v20 = vpop.f32.mrf.mxu1 }
 0x5ab   : > { %v7391_v4 = vadd.f32 %v4264_v39, %v4187_v3  ;;  %v4089_v61 = vadd.f32 %v4069_v20, %v7328_v27 }
 0x5ad   : > { %v4188_v49 = vadd.f32 %v4168_v60, %v4089_v61 }
 0x5b1   : > { %v4171_v58 = vpop.f32.mrf.mxu2 }
 0x5b2   : > { %v4267_v11 = vpop.f32.mrf.mxu3  ;;  %v4072_v25 = vpop.f32.mrf.mxu1 }
 0x5b3   : > { %v7397_v24 = vadd.f32 %v4267_v11, %v4188_v49  ;;  %v4090_v55 = vadd.f32 %v4072_v25, %v3991_v12 }
 0x5b5   : > { %v4189_v29 = vadd.f32 %v4171_v58, %v4090_v55 }
 0x5b9   : > { %v4174_v19 = vpop.f32.mrf.mxu2 }
 0x5ba   : > { %v4270_v27 = vpop.f32.mrf.mxu3  ;;  %v4075_v28 = vpop.f32.mrf.mxu1 }
 0x5bb   : > { %v7402_v50 = vadd.f32 %v4270_v27, %v4189_v29  ;;  %v4091_v18 = vadd.f32 %v4075_v28, %v3992_v45 }
 0x5bd   : > { %v4190_v36 = vadd.f32 %v4174_v19, %v4091_v18 }
 0x5c1   : > { %v4177_v46 = vpop.f32.mrf.mxu2 }
 0x5c2   : > { %v4273_v26 = vpop.f32.mrf.mxu3  ;;  %v4078_v7 = vpop.f32.mrf.mxu1 }
 0x5c3   : > { %v7407_v52 = vadd.f32 %v4273_v26, %v4190_v36  ;;  %v4092_v13 = vadd.f32 %v4078_v7, %v3993_v35 }
 0x5c5   : > { %v4191_v56 = vadd.f32 %v4177_v46, %v4092_v13 }
 0x5c9   : > { %v4180_v42 = vpop.f32.mrf.mxu2 }
 0x5ca   : > { %v4276_v33 = vpop.f32.mrf.mxu3  ;;  %v4081_v47 = vpop.f32.mrf.mxu1 }
 0x5cb   : > { %v7409_v30 = vadd.f32 %v4276_v33, %v4191_v56  ;;  %v4093_v44 = vadd.f32 %v4081_v47, %v7362_v0 }
 0x5cd   : > { %v4192_v23 = vadd.f32 %v4180_v42, %v4093_v44 }
 0x5d1   : > { %v4450_v40 = vpop.f32.mrf.mxu2 }
 0x5d2   : > { %v4279_v41 = vpop.f32.mrf.mxu3  ;;  %v4351_v53 = vpop.f32.mrf.mxu1 }
 0x5d3   : > { %v7412_v10 = vadd.f32 %v4279_v41, %v4192_v23  ;;  %v4381_v8 = vadd.f32 %v4351_v53, %v7369_v32 }
 0x5d5   : > { %v4480_v15 = vadd.f32 %v4450_v40, %v4381_v8 }
 0x5d9   : > { %v4453_v9 = vpop.f32.mrf.mxu2 }
 0x5da   : > { %v4549_v2 = vpop.f32.mrf.mxu3  ;;  %v4354_v51 = vpop.f32.mrf.mxu1 }
 0x5db   : > { %v4579_v57 = vadd.f32 %v4549_v2, %v4480_v15  ;;  %v4382_v14 = vadd.f32 %v4354_v51, %v7376_v43 }
 0x5dd   : > { %v4593_v0 = vadd.f32 %v7418_v38, %v4579_v57  ;;  %v4481_v32 = vadd.f32 %v4453_v9, %v4382_v14 }
 0x5df   : > { %v4603_v34 = vmax.f32 %v4593_v0, 0.0 }
 0x5e1   : > { %4614 = vst.msk [vmem:[#allocation3] sm:$0xff] %vm4613_vm6, %v4603_v34  ;;  %v4456_v48 = vpop.f32.mrf.mxu2 }
 0x5e2   : > { %v4552_v63 = vpop.f32.mrf.mxu3  ;;  %v4357_v6 = vpop.f32.mrf.mxu1 }
 0x5e3   : > { %v4580_v17 = vadd.f32 %v4552_v63, %v4481_v32  ;;  %v4383_v62 = vadd.f32 %v4357_v6, %v7383_v54 }
 0x5e5   : > { %v4594_v16 = vadd.f32 %v7418_v38, %v4580_v17  ;;  %v4482_v31 = vadd.f32 %v4456_v48, %v4383_v62 }
 0x5e7   : > { %v4604_v1 = vmax.f32 %v4594_v16, 0.0 }
 0x5e9   : > { %4615 = vst.msk [vmem:[#allocation3 + $0x8] sm:$0xff] %vm4613_vm6, %v4604_v1  ;;  %v4459_v59 = vpop.f32.mrf.mxu2 }
 0x5ea   : > { %v4555_v3 = vpop.f32.mrf.mxu3  ;;  %v4360_v60 = vpop.f32.mrf.mxu1 }
 0x5eb   : > { %v4581_v43 = vadd.f32 %v4555_v3, %v4482_v31  ;;  %v4384_v20 = vadd.f32 %v4360_v60, %v7388_v21 }
 0x5ed   : > { %v4595_v39 = vadd.f32 %v7418_v38, %v4581_v43  ;;  %v4483_v22 = vadd.f32 %v4459_v59, %v4384_v20 }
 0x5ef   : > { %v4605_v61 = vmax.f32 %v4595_v39, 0.0 }
 0x5f1   : > { %4616 = vst.msk [vmem:[#allocation3 + $0x10] sm:$0xff] %vm4613_vm6, %v4605_v61  ;;  %v4462_v49 = vpop.f32.mrf.mxu2 }
 0x5f2   : > { %v4558_v58 = vpop.f32.mrf.mxu3  ;;  %v4363_v54 = vpop.f32.mrf.mxu1 }
 0x5f3   : > { %v4582_v12 = vadd.f32 %v4558_v58, %v4483_v22  ;;  %v4385_v25 = vadd.f32 %v4363_v54, %v7391_v4 }
 0x5f5   : > { %v4596_v11 = vadd.f32 %v7418_v38, %v4582_v12  ;;  %v4484_v37 = vadd.f32 %v4462_v49, %v4385_v25 }
 0x5f7   : > { %v4606_v55 = vmax.f32 %v4596_v11, 0.0 }
 0x5f9   : > { %4617 = vst.msk [vmem:[#allocation3 + $0x18] sm:$0xff] %vm4613_vm6, %v4606_v55  ;;  %v4465_v29 = vpop.f32.mrf.mxu2 }
 0x5fa   : > { %v4561_v19 = vpop.f32.mrf.mxu3  ;;  %v4366_v21 = vpop.f32.mrf.mxu1 }
 0x5fb   : > { %v4583_v45 = vadd.f32 %v4561_v19, %v4484_v37  ;;  %v4386_v28 = vadd.f32 %v4366_v21, %v7397_v24 }
 0x5fd   : > { %v4597_v27 = vadd.f32 %v7418_v38, %v4583_v45  ;;  %v4485_v36 = vadd.f32 %v4465_v29, %v4386_v28 }
 0x5ff   : > { %v4607_v18 = vmax.f32 %v4597_v27, 0.0 }
 0x601   : > { %4618 = vst.msk [vmem:[#allocation3 + $0x20] sm:$0xff] %vm4613_vm6, %v4607_v18  ;;  %v4468_v5 = vpop.f32.mrf.mxu2 }
 0x602   : > { %v4564_v46 = vpop.f32.mrf.mxu3  ;;  %v4369_v4 = vpop.f32.mrf.mxu1 }
 0x603   : > { %v4584_v35 = vadd.f32 %v4564_v46, %v4485_v36  ;;  %v4387_v7 = vadd.f32 %v4369_v4, %v7402_v50  ;;  %v4627_v46 = vld [vmem:[#allocation3 + $0x18] sm:$0xff] }
 0x605   : > { %v4598_v26 = vadd.f32 %v7418_v38, %v4584_v35  ;;  %v4486_v56 = vadd.f32 %v4468_v5, %v4387_v7 }
 0x607   : > { %v4608_v13 = vmax.f32 %v4598_v26, 0.0  ;;  %v4635_v26 = vld [vmem:[#allocation3 + $0x11] sm:$0xff] }
 0x608   : > { %v4628_v45 = vld [vmem:[#allocation3 + $0x20] sm:$0xff] }
 0x609   : > { %4619 = vst.msk [vmem:[#allocation3 + $0x28] sm:$0xff] %vm4613_vm6, %v4608_v13  ;;  %v4471_v24 = vpop.f32.mrf.mxu2  ;;  %v4636_v28 = vld [vmem:[#allocation3 + $0x19] sm:$0xff] }
 0x60a   : > { %v4567_v42 = vpop.f32.mrf.mxu3  ;;  %v4372_v47 = vpop.f32.mrf.mxu1 }
 0x60b   : > { %v4585_v33 = vadd.f32 %v4567_v42, %v4486_v56  ;;  %v4388_v23 = vadd.f32 %v4372_v47, %v7407_v52  ;;  %v4645_v56 = vmax.f32 %v4627_v46, %v4636_v28  ;;  %v4626_v42 = vld [vmem:[#allocation3 + $0x10] sm:$0xff]  ;;  %v4653_v47 = vld [vmem:[#allocation3 + $0x1a] sm:$0xff]  ;;  %v5779_v28 = vld [vmem:[%s7630_s7 + $0xc8] sm:$0xff] }
 0x60d   : > { %v4599_v44 = vadd.f32 %v7418_v38, %v4585_v33  ;;  %v4487_v41 = vadd.f32 %v4471_v24, %v4388_v23  ;;  %v4634_v24 = vld [vmem:[#allocation3 + $0x9] sm:$0xff] }
 0x60f   : > { %v4609_v40 = vmax.f32 %v4599_v44, 0.0 }
 0x610   : > { %v4629_v11 = vld [vmem:[#allocation3 + $0x28] sm:$0xff] }
 0x611   : > { %4620 = vst.msk [vmem:[#allocation3 + $0x30] sm:$0xff] %vm4613_vm6, %v4609_v40  ;;  %v4474_v2 = vpop.f32.mrf.mxu2  ;;  %v4637_v55 = vld [vmem:[#allocation3 + $0x21] sm:$0xff]  ;;  %v4644_v40 = vmax.f32 %v4626_v42, %v4635_v26 }
 0x612   : > { %v4570_v53 = vpop.f32.mrf.mxu3  ;;  %v4375_v9 = vpop.f32.mrf.mxu1  ;;  %v4646_v5 = vmax.f32 %v4628_v45, %v4637_v55  ;;  %v4654_v4 = vld [vmem:[#allocation3 + $0x22] sm:$0xff]  ;;  %v5776_v55 = vld [vmem:[%s7630_s7 + $0xb8] sm:$0xff] }
 0x613   : > { %v4586_v8 = vadd.f32 %v4570_v53, %v4487_v41  ;;  %v4389_v15 = vadd.f32 %v4375_v9, %v7409_v30  ;;  %v4663_v23 = vmax.f32 %v4645_v56, %v4654_v4  ;;  %v4625_v41 = vld [vmem:[#allocation3 + $0x8] sm:$0xff]  ;;  %v5787_v4 = vld [vmem:[%s7630_s7 + $0xf0] sm:$0xff] }
 0x614   : > { %v4633_v9 = vld [vmem:[#allocation3 + $0x1] sm:$0xff] }
 0x615   : > { %v4600_v50 = vadd.f32 %v7418_v38, %v4586_v8  ;;  %v4488_v51 = vadd.f32 %v4474_v2, %v4389_v15  ;;  %v4652_v8 = vld [vmem:[#allocation3 + $0x12] sm:$0xff]  ;;  %v4662_v15 = vmax.f32 %v4644_v40, %v4653_v47  ;;  %v4643_v2 = vmax.f32 %v4625_v41, %v4634_v24  ;;  %v5785_v26 = vld [vmem:[%s7630_s7 + $0xe8] sm:$0xff]  ;;  %v5754_v47 = vld [vmem:[%s7630_s7 + $0x40] sm:$0xff] }
 0x616   : > { %v5755_v56 = vld [vmem:[%s7630_s7 + $0x48] sm:$0xff]  ;;  %v5757_v40 = vld [vmem:[%s7630_s7 + $0x50] sm:$0xff]  ;;  %v5770_v41 = vld [vmem:[%s7630_s7 + $0x98] sm:$0xff] }
 0x617   : > { %v4610_v57 = vmax.f32 %v4600_v50, 0.0 }
 0x618   : > { %v4638_v20 = vld [vmem:[#allocation3 + $0x29] sm:$0xff] }
 0x619   : > { %4621 = vst.msk [vmem:[#allocation3 + $0x38] sm:$0xff] %vm4613_vm6, %v4610_v57  ;;  %v4477_v63 = vpop.f32.mrf.mxu2  ;;  %v4647_v19 = vmax.f32 %v4629_v11, %v4638_v20  ;;  %v4655_v27 = vld [vmem:[#allocation3 + $0x2a] sm:$0xff]  ;;  %v5760_v20 = vld [vmem:[%s7630_s7 + $0x60] sm:$0xff] }
 0x61a   : > { %v4573_v0 = vpop.f32.mrf.mxu3  ;;  %v4378_v34 = vpop.f32.mrf.mxu1  ;;  %v4664_v13 = vmax.f32 %v4646_v5, %v4655_v27  ;;  %v4673_v53 = vld [vmem:[#allocation3 + $0x2b] sm:$0xff]  ;;  %v4672_v57 = vld [vmem:[#allocation3 + $0x23] sm:$0xff] }
 0x61b   : > { %v4587_v14 = vadd.f32 %v4573_v0, %v4488_v51  ;;  %v4390_v48 = vadd.f32 %v4378_v34, %v7412_v10  ;;  %v4630_v10 = vld [vmem:[#allocation3 + $0x30] sm:$0xff]  ;;  %v4624_v51 = vld [vmem:[#allocation3] sm:$0xff]  ;;  %v4661_v34 = vmax.f32 %v4643_v2, %v4652_v8 }
 0x61c   : > { %v4682_v50 = vmax.f32 %v4664_v13, %v4673_v53  ;;  %v4651_v0 = vld [vmem:[#allocation3 + $0xa] sm:$0xff]  ;;  %v5778_v5 = vld [vmem:[%s7630_s7 + $0xc0] sm:$0xff] }
 0x61d   : > { %v4601_v52 = vadd.f32 %v7418_v38, %v4587_v14  ;;  %v4489_v17 = vadd.f32 %v4477_v63, %v4390_v48  ;;  %v4681_v14 = vmax.f32 %v4663_v23, %v4672_v57  ;;  %v4671_v48 = vld [vmem:[#allocation3 + $0x1b] sm:$0xff]  ;;  %v5769_v8 = vld [vmem:[%s7630_s7 + $0x90] sm:$0xff] }
 0x61f   : > { %v4611_v32 = vmax.f32 %v4601_v52, 0.0  ;;  %v4642_v52 = vmax.f32 %v4624_v51, %v4633_v9  ;;  %v5782_v9 = vld [vmem:[%s7630_s7 + $0xd8] sm:$0xff] }
 0x620   : > { %v4631_v3 = vld [vmem:[#allocation3 + $0x38] sm:$0xff] }
 0x621   : > { %4622 = vst.msk [vmem:[#allocation3 + $0x40] sm:$0xff] %vm4613_vm6, %v4611_v32  ;;  %v4639_v43 = vld [vmem:[#allocation3 + $0x31] sm:$0xff]  ;;  %v4680_v32 = vmax.f32 %v4662_v15, %v4671_v48  ;;  %v4660_v63 = vmax.f32 %v4642_v52, %v4651_v0  ;;  %v4724_v48 = vld [vmem:[%s7632_s9] sm:$0x1] }
 0x622   : > { %v4576_v6 = vpop.f32.mrf.mxu3  ;;  %v4648_v54 = vmax.f32 %v4630_v10, %v4639_v43  ;;  %v4656_v25 = vld [vmem:[#allocation3 + $0x32] sm:$0xff]  ;;  %v5761_v43 = vld [vmem:[%s7630_s7 + $0x68] sm:$0xff] }
 0x623   : > { %v4588_v16 = vadd.f32 %v4576_v6, %v4489_v17  ;;  %v4665_v36 = vmax.f32 %v4647_v19, %v4656_v25  ;;  %v4674_v33 = vld [vmem:[#allocation3 + $0x33] sm:$0xff]  ;;  %4913 = vmatpush.msra.mxu1 %v5761_v43  ;;  %v5772_v19 = vld [vmem:[%s7630_s7 + $0xa0] sm:$0xff] }
 0x624   : > { %v4670_v17 = vld [vmem:[#allocation3 + $0x13] sm:$0xff] }
 0x625   : > { %v4602_v30 = vadd.f32 %v7418_v38, %v4588_v16  ;;  %v4683_v44 = vmax.f32 %v4665_v36, %v4674_v33  ;;  %v4679_v6 = vmax.f32 %v4661_v34, %v4670_v17  ;;  %v4669_v16 = vld [vmem:[#allocation3 + $0xb] sm:$0xff]  ;;  %4914 = vmatpush.msra.mxu1 %v5760_v20  ;;  %v5176_v52 = vld [vmem:[%s7631_s8 + $0x18] sm:$0xff] }
 0x626   : > { %v5763_v10 = vld [vmem:[%s7630_s7 + $0x70] sm:$0xff]  ;;  %v5174_v17 = vld [vmem:[%s7631_s8 + $0x8] sm:$0xff] }
 0x627   : > { %v4612_v62 = vmax.f32 %v4602_v30, 0.0  ;;  %v4678_v30 = vmax.f32 %v4660_v63, %v4669_v16  ;;  %v5751_v36 = vld [vmem:[%s7630_s7 + $0x30] sm:$0xff]  ;;  %v5173_v16 = vld [vmem:[%s7631_s8] sm:$0xff] }
 0x628   : > { %v4632_v1 = vld [vmem:[#allocation3 + $0x40] sm:$0x1f]  ;;  %v5781_v15 = vld [vmem:[%s7630_s7 + $0xd0] sm:$0xff] }
 0x629   : > { %4623 = vst.msk [vmem:[#allocation3 + $0x48] sm:$0xff] %vm4613_vm6, %v4612_v62  ;;  %v4641_v59 = vld [vmem:[#allocation3 + $0x41] sm:$0x1f]  ;;  %v4640_v31 = vld [vmem:[#allocation3 + $0x39] sm:$0xff] }
 0x62a   : > { %v4650_v60 = vmax.f32 %v4632_v1, %v4641_v59  ;;  %v4649_v39 = vmax.f32 %v4631_v3, %v4640_v31  ;;  %v4657_v22 = vld [vmem:[#allocation3 + $0x3a] sm:$0xff]  ;;  %v4688_v1 = vld [vmem:[%s7629_s6 + $0x8] sm:$0xff] }
 0x62b   : > { %v4666_v37 = vmax.f32 %v4648_v54, %v4657_v22  ;;  %v4675_v35 = vld [vmem:[#allocation3 + $0x3b] sm:$0xff]  ;;  %v4727_v59 = vld [vmem:[%s7630_s7 + $0x8] sm:$0xff] }
 0x62c   : > { %v4687_v62 = vld [vmem:[%s7629_s6] sm:$0xff]  ;;  %v5764_v3 = vld [vmem:[%s7630_s7 + $0x78] sm:$0xff]  ;;  %v5767_v22 = vld [vmem:[%s7630_s7 + $0x88] sm:$0xff] }
 0x62d   : > { %v4684_v7 = vmax.f32 %v4666_v37, %v4675_v35  ;;  %v4726_v31 = vld [vmem:[%s7630_s7] sm:$0xff]  ;;  %4941 = vmatpush.msra.mxu2 %v5764_v3  ;;  %4969 = vmatpush.msra.mxu3 %v5767_v22  ;;  %v5773_v37 = vld [vmem:[%s7630_s7 + $0xa8] sm:$0xff]  ;;  %v5788_v35 = vld [vmem:[%s7630_s7 + $0xf8] sm:$0xff] }
 0x62e   : > { %v5748_v54 = vld [vmem:[%s7630_s7 + $0x20] sm:$0xff]  ;;  %5025 = vmatpush.msrb.mxu1 %v5773_v37 }
 0x62f   : > { %4942 = vmatpush.msra.mxu2 %v5763_v10 }
 0x630   : > { %v4659_v61 = vld [vmem:[#allocation3 + $0x4a] sm:$0x1f]  ;;  %v4658_v49 = vld [vmem:[#allocation3 + $0x42] sm:$0xff]  ;;  %5026 = vmatpush.msrb.mxu1 %v5772_v19 }
 0x631   : > { %v4668_v58 = vmax.f32 %v4650_v60, %v4659_v61  ;;  %v4667_v12 = vmax.f32 %v4649_v39, %v4658_v49  ;;  %v4677_v38 = vld [vmem:[#allocation3 + $0x4b] sm:$0x1f]  ;;  %v4676_v21 = vld [vmem:[#allocation3 + $0x43] sm:$0xff]  ;;  %v5746_v60 = vld [vmem:[%s7630_s7 + $0x18] sm:$0xff]  ;;  %5053 = vmatpush.msrb.mxu2 %v5776_v55 }
 0x632   : > { %v5745_v39 = vld [vmem:[%s7630_s7 + $0x10] sm:$0xff]  ;;  %v5749_v49 = vld [vmem:[%s7630_s7 + $0x28] sm:$0xff] }
 0x633   : > { %v4686_v29 = vmax.f32 %v4668_v58, %v4677_v38  ;;  %v4685_v18 = vmax.f32 %v4667_v12, %v4676_v21  ;;  %v5766_v38 = vld [vmem:[%s7630_s7 + $0x80] sm:$0xff]  ;;  %v5752_v21 = vld [vmem:[%s7630_s7 + $0x38] sm:$0xff] }
 0x634   : > { %4970 = vmatpush.msra.mxu3 %v5766_v38 }
 0x635   : > { %5741 = vmatpush.msk.msrb.mxu0 %vm3533_vm3, %v4686_v29  ;;  %v5775_v29 = vld [vmem:[%s7630_s7 + $0xb0] sm:$0xff] }
 0x636   : > { %5054 = vmatpush.msrb.mxu2 %v5775_v29  ;;  %5081 = vmatpush.msrb.mxu3 %v5779_v28  ;;  %v5177_v28 = vld [vmem:[%s7633_s10] sm:$0x1] }
 0x637   : > { %4707 = vmatpush.msrb.mxu0 %v4685_v18 }
 0x638   : > { %5082 = vmatpush.msrb.mxu3 %v5778_v5 }
 0x639   : > { %4708 = vmatpush.msrb.mxu0 %v4684_v7  ;;  %v5784_v7 = vld [vmem:[%s7630_s7 + $0xe0] sm:$0xff] }
 0x63b   : > { %4709 = vmatpush.msrb.mxu0 %v4683_v44  ;;  %v5758_v44 = vld [vmem:[%s7630_s7 + $0x58] sm:$0xff] }
 0x63d   : > { %4710 = vmatpush.msrb.mxu0 %v4682_v50 }
 0x63f   : > { %4711 = vmatpush.msrb.mxu0 %v4681_v14 }
 0x641   : > { %4712 = vmatpush.msrb.mxu0 %v4680_v32  ;;  %v5175_v32 = vld [vmem:[%s7631_s8 + $0x10] sm:$0xff] }
 0x643   : > { %4713 = vmatpush.msrb.mxu0 %v4679_v6 }
 0x645   : > { %4714 = vmatpush.msrb.mxu0 %v4678_v30 }
 0x646   : > { %5742 = vmatmul.msk.f32.vlgmr.msrb.gmra.mxu0 %vm4689_vm7, %v4687_v62 }
 0x647   : > { %4745 = vmatpush.msra.mxu0 %v4727_v59 }
 0x649   : > { %4746 = vmatpush.msra.mxu0 %v4726_v31 }
 0x64b   : > { %4773 = vmatpush.msrb.mxu0 %v5746_v60 }
 0x64d   : > { %4774 = vmatpush.msrb.mxu0 %v5745_v39 }
 0x64e   : > { %5743 = vmatmul.msk.f32.gmra.mxu0 %vm4689_vm7, %v4688_v1 }
 0x6c3   : > { %v4716_v61 = vpop.f32.mrf.mxu0 }
 0x6c4   : > { %4722 = vst.msk [vmem:[#allocation5] sm:$0xff] %vm4613_vm6, %v4716_v61 }
 0x6cb   : > { %v4725_v58 = vld [vmem:[#allocation5] sm:$0x1]  ;;  %v4719_v12 = vpop.f32.mrf.mxu0  ;;  %v4920_v11 = vld [vmem:[#allocation5 + $0x7] sm:$0x1]  ;;  %v4892_v25 = vld [vmem:[#allocation5 + $0x6] sm:$0x1] }
 0x6cc   : > { %5744 = vmatmul.msk.f32.vlgmr.msra.gmra.mxu0 %vm4613_vm6, %v4725_v58  ;;  %4723 = vst.msk [vmem:[#allocation5 + $0x8] sm:$0xff] %vm4613_vm6, %v4719_v12  ;;  %5765 = vmatmul.msk.f32.vlgmr.msra.gmra.mxu2 %vm4613_vm6, %v4920_v11  ;;  %v4752_v45 = vld [vmem:[#allocation5 + $0x1] sm:$0x1]  ;;  %v4780_v42 = vld [vmem:[#allocation5 + $0x2] sm:$0x1] }
 0x6cd   : > { %4801 = vmatpush.msra.mxu0 %v5749_v49  ;;  %5762 = vmatmul.msk.f32.vlgmr.msra.gmra.mxu1 %vm4613_vm6, %v4892_v25  ;;  %v4808_v23 = vld [vmem:[#allocation5 + $0x3] sm:$0x1]  ;;  %v4836_v53 = vld [vmem:[#allocation5 + $0x4] sm:$0x1]  ;;  %v4864_v50 = vld [vmem:[#allocation5 + $0x5] sm:$0x1] }
 0x6ce   : > { %5165 = vmatpush.msra.mxu2 %v5788_v35  ;;  %5137 = vmatpush.msra.mxu1 %v5785_v26 }
 0x6cf   : > { %4802 = vmatpush.msra.mxu0 %v5748_v54 }
 0x6d0   : > { %5166 = vmatpush.msra.mxu2 %v5787_v4  ;;  %5138 = vmatpush.msra.mxu1 %v5784_v7 }
 0x6d3   : > { %v4948_v27 = vld [vmem:[#allocation5 + $0x8] sm:$0x1]  ;;  %v5032_v18 = vld [vmem:[#allocation5 + $0xb] sm:$0x1]  ;;  %v5004_v46 = vld [vmem:[#allocation5 + $0xa] sm:$0x1] }
 0x6d4   : > { %5747 = vmatmul.msk.f32.vlgmr.msrb.gmra.mxu0 %vm4613_vm6, %v4752_v45  ;;  %5768 = vmatmul.msk.f32.vlgmr.msra.gmra.mxu3 %vm4613_vm6, %v4948_v27  ;;  %v5060_v13 = vld [vmem:[#allocation5 + $0xc] sm:$0x1]  ;;  %v5144_v33 = vld [vmem:[#allocation5 + $0xf] sm:$0x1]  ;;  %v5116_v24 = vld [vmem:[#allocation5 + $0xe] sm:$0x1] }
 0x6d5   : > { %4829 = vmatpush.msrb.mxu0 %v5752_v21  ;;  %5777 = vmatmul.msk.f32.vlgmr.msrb.gmra.mxu2 %vm4613_vm6, %v5032_v18  ;;  %v4976_v2 = vld [vmem:[#allocation5 + $0x9] sm:$0x1]  ;;  %v5088_v57 = vld [vmem:[#allocation5 + $0xd] sm:$0x1] }
 0x6d6   : > { %5774 = vmatmul.msk.f32.vlgmr.msrb.gmra.mxu1 %vm4613_vm6, %v5004_v46  ;;  %5194 = vmatpush.msra.mxu3 %v5176_v52 }
 0x6d7   : > { %4830 = vmatpush.msrb.mxu0 %v5751_v36 }
 0x6d8   : > { %5195 = vmatpush.msra.mxu3 %v5175_v32 }
 0x6da   : > { %5196 = vmatpush.msra.mxu3 %v5174_v17 }
 0x6dc   : > { %5750 = vmatmul.msk.f32.vlgmr.msra.gmra.mxu0 %vm4613_vm6, %v4780_v42  ;;  %5780 = vmatmul.msk.f32.vlgmr.msrb.gmra.mxu3 %vm4613_vm6, %v5060_v13 }
 0x6dd   : > { %4857 = vmatpush.msra.mxu0 %v5755_v56  ;;  %5789 = vmatmul.msk.f32.vlgmr.msra.gmra.mxu2 %vm4613_vm6, %v5144_v33 }
 0x6de   : > { %5786 = vmatmul.msk.f32.vlgmr.msra.gmra.mxu1 %vm4613_vm6, %v5116_v24  ;;  %5197 = vmatpush.msra.mxu3 %v5173_v16 }
 0x6df   : > { %4858 = vmatpush.msra.mxu0 %v5754_v47 }
 0x6e4   : > { %5753 = vmatmul.msk.f32.vlgmr.msrb.gmra.mxu0 %vm4613_vm6, %v4808_v23 }
 0x6e5   : > { %4885 = vmatpush.msrb.mxu0 %v5758_v44 }
 0x6e7   : > { %4886 = vmatpush.msrb.mxu0 %v5757_v40 }
 0x6ec   : > { %5756 = vmatmul.msk.f32.vlgmr.msra.gmra.mxu0 %vm4613_vm6, %v4836_v53 }
 0x6ed   : > { %4997 = vmatpush.msra.mxu0 %v5770_v41 }
 0x6ef   : > { %4998 = vmatpush.msra.mxu0 %v5769_v8 }
 0x6f4   : > { %5759 = vmatmul.msk.f32.vlgmr.msrb.gmra.mxu0 %vm4613_vm6, %v4864_v50 }
 0x6f5   : > { %5109 = vmatpush.msrb.mxu0 %v5782_v9 }
 0x6f7   : > { %5110 = vmatpush.msrb.mxu0 %v5781_v15 }
 0x6fc   : > { %5771 = vmatmul.msk.f32.vlgmr.msra.gmra.mxu0 %vm4613_vm6, %v4976_v2 }
 0x704   : > { %5783 = vmatmul.msk.f32.vlgmr.msrb.gmra.mxu0 %vm4613_vm6, %v5088_v57 }
 0x749   : > { %v4748_v51 = vpop.f32.mrf.mxu0 }
 0x74a   : > { %v4751_v63 = vadd.f32 %v4748_v51, %v4724_v48  ;;  %v4916_v3 = vpop.f32.mrf.mxu1 }
 0x74f   : > { %v4944_v60 = vpop.f32.mrf.mxu2 }
 0x751   : > { %v4776_v0 = vpop.f32.mrf.mxu0 }
 0x752   : > { %v4779_v30 = vadd.f32 %v4776_v0, %v4751_v63 }
 0x753   : > { %v5028_v22 = vpop.f32.mrf.mxu1 }
 0x757   : > { %v4972_v10 = vpop.f32.mrf.mxu3 }
 0x758   : > { %v5056_v12 = vpop.f32.mrf.mxu2 }
 0x759   : > { %v4804_v14 = vpop.f32.mrf.mxu0 }
 0x75a   : > { %v4807_v62 = vadd.f32 %v4804_v14, %v4779_v30 }
 0x75b   : > { %v5140_v37 = vpop.f32.mrf.mxu1 }
 0x75f   : > { %v5084_v38 = vpop.f32.mrf.mxu3 }
 0x760   : > { %v5168_v45 = vpop.f32.mrf.mxu2 }
 0x761   : > { %v4832_v34 = vpop.f32.mrf.mxu0 }
 0x762   : > { %v4835_v1 = vadd.f32 %v4832_v34, %v4807_v62 }
 0x769   : > { %v4860_v6 = vpop.f32.mrf.mxu0 }
 0x76a   : > { %v4863_v59 = vadd.f32 %v4860_v6, %v4835_v1 }
 0x771   : > { %v4888_v31 = vpop.f32.mrf.mxu0 }
 0x772   : > { %v4891_v43 = vadd.f32 %v4888_v31, %v4863_v59 }
 0x774   : > { %v4919_v39 = vadd.f32 %v4916_v3, %v4891_v43 }
 0x776   : > { %v4947_v20 = vadd.f32 %v4944_v60, %v4919_v39 }
 0x778   : > { %v4975_v61 = vadd.f32 %v4972_v10, %v4947_v20 }
 0x779   : > { %v5000_v49 = vpop.f32.mrf.mxu0 }
 0x77a   : > { %v5003_v58 = vadd.f32 %v5000_v49, %v4975_v61 }
 0x77c   : > { %v5031_v54 = vadd.f32 %v5028_v22, %v5003_v58 }
 0x77e   : > { %v5059_v11 = vadd.f32 %v5056_v12, %v5031_v54 }
 0x780   : > { %v5087_v25 = vadd.f32 %v5084_v38, %v5059_v11 }
 0x781   : > { %v5112_v55 = vpop.f32.mrf.mxu0 }
 0x782   : > { %v5115_v29 = vadd.f32 %v5112_v55, %v5087_v25 }
 0x784   : > { %v5143_v19 = vadd.f32 %v5140_v37, %v5115_v29 }
 0x786   : > { %v5171_v21 = vadd.f32 %v5168_v45, %v5143_v19 }
 0x788   : > { %v5172_v27 = vmax.f32 %v5171_v21, 0.0 }
 0x78a   : > { %5790 = vmatmul.msk.f32.vlgmr.msra.gmra.mxu3 %vm5178_vm8, %v5172_v27 }
 0x80d   : > { %v5199_v18 = vpop.f32.mrf.mxu3 }
 0x80e   : > { %v5200_v36 = vadd.f32 %v5199_v18, %v5177_v28 }
 0x810   : > { %v5203_v5 = vsel %vm5202_vm9, %v5200_v36, -inf }
 0x811   : > { %5204 = vmax.xlane.f32.xlu0 %v5203_v5 }
 0x884   : > { %v5205_v46 = vpop.xlane.xlu0 %5204 }
 0x885   : > { %v5206_v35 = vsub.f32 %v5200_v36, %v5205_v46 }
 0x887   : > { %v5207_v4 = vmul.f32 1.442695, %v5206_v35 }
 0x889   : > { %5835 = vpow2.f32 %v5207_v4 }
 0x88f   : > { %v5836_v26 = vpop.eup %5835 }
 0x890   : > { %v5209_v7 = vsel %vm5202_vm9, %v5836_v26, 0.0 }
 0x891   : > { %5210 = vadd.xlane.f32.xlu0 %v5209_v7 }
 0x904   : > { %v5211_v13 = vpop.xlane.xlu0 %5210 }
 0x905   : > { %5837 = vrcp.f32 %v5211_v13 }
 0x90b   : > { %v5838_v56 = vpop.eup %5837 }
 0x90c   : > { %v5213_v42 = vmul.f32 %v5838_v56, %v5836_v26 }
 0x90e   : > { %5214 = vst.msk [vmem:[%s378_s25] sm:$0x1] %vm5202_vm9, %v5213_v42 }
 0x90f   : > { %5867 = shalt.err (!%p5864_p3)
}
 0x910   : > { %5794 = dma.vmem_to_hbm [thread:$0]  (%p6002_p5), %s5227_s29, 16, %s5229_s30, %s5216_s13  }
 0x911 PF: > { %p5800_p4 = scmp.ge.s32.totalorder %s5902_s20, 2  ;;  %s5240_s12 = sand.u32 1, %s5890_s17  }
 0x912   : > { %s5241_s0 = scalar_lea.sflag [#allocation7], %s5240_s12 }
 0x913   : > { %p5797_p7 = pnand %p5800_p4, %p6006_p6 }
 0x915   : > { %p5798_p8 = pneg %p5797_p7 }
 0x917   : > { %5885 = dma.done.wait (%p5798_p8), %s5241_s0, 16  }
 0x918   : > { %5887 = vsyncadd (%p5798_p8), %s5241_s0, 4294967280  ;;  %p21_p9 = scmp.ge.s32.totalorder %s5989_s23, 4   ;;  %s7663_s17 = smov %s5894_s18 }
 0x919   : > { %s7664_s18 = smov %s5898_s19  ;;  %s7665_s19 = smov %s6000_s26 }
 0x91a   : > { %s7666_s20 = smov %s5989_s23  ;;  %23 = sbr.rel (!%p21_p9) target bundleno = 5 (0x5), region = 130 }
 0x91f   :  { %5246 = vsyncpa [#allocation7], 1 }
 0x920   :  { %5248 = vsyncpa [#allocation7 + $0x1], 1 }

</bundles_post_ra>
